<compile_context>
chip_gen: v7x
topology: tpu7x:2x2x1
jax: 0.10.0
libtpu: 0.0.40
codegen_flags: <defaults>
</compile_context>

<pallas_src>
import functools

import jax
import jax.numpy as jnp
import numpy as np
from jax.experimental import pallas as pl
from jax.experimental.pallas import tpu as pltpu

EPS = 1e-5
EXPANSION = 4


@functools.lru_cache(maxsize=None)
def _vmem_limit():
    """Generation-aware VMEM budget (~3/4 of physical), conservative fallback."""
    try:
        cap = int(pltpu.get_tpu_info().vmem_capacity_bytes)
    except Exception:
        cap = 64 * 1024 * 1024
    return max(min(cap * 3 // 4, 96 * 1024 * 1024), 32 * 1024 * 1024)


def _pick_tile(m, cap=1024):
    """Largest convenient row-tile: full array if small, else a mult-of-8 divisor."""
    if m <= cap:
        return m
    for t in (1024, 512, 256, 128, 64, 32, 16, 8):
        if t <= cap and m % t == 0:
            return t
    return cap  # non-divisible: kernel masks the partial last tile


def _row0_only(colvec):
    """Place a (1, C) f32 row into row 0 of an (8, C) block, zeros elsewhere."""
    row0 = jax.lax.broadcasted_iota(jnp.int32, (8, 1), 0) == 0
    return jnp.where(row0, colvec, 0.0)


# ----------------------------------------------------------------------------
# Kernel 1: (optional fused BN+ReLU on input) -> bf16 matmul -> pre-BN output
#           + per-TILE partial channel sum / sum-of-squares (parallel grid).
# ----------------------------------------------------------------------------
def _mm_stats_kernel(x_ref, w_ref, scale_ref, shift_ref,
                     y_ref, sum_ref, ssq_ref,
                     *, norm_input, total_rows, tile_rows):
    if norm_input:
        xf = x_ref[...].astype(jnp.float32)
        xf = jnp.maximum(xf * scale_ref[...] + shift_ref[...], 0.0)
        x = xf.astype(jnp.bfloat16)
    else:
        x = x_ref[...]
    y = jnp.dot(x, w_ref[...], preferred_element_type=jnp.float32)
    y_ref[...] = y.astype(y_ref.dtype)

    if total_rows % tile_rows != 0:          # static branch; avoided by tile choice
        i = pl.program_id(0)
        rows = i * tile_rows + jax.lax.broadcasted_iota(jnp.int32, (tile_rows, 1), 0)
        ys = jnp.where(rows < total_rows, y, 0.0)
    else:
        ys = y

    colsum = jnp.sum(ys, axis=0, keepdims=True)
    colssq = jnp.sum(ys * ys, axis=0, keepdims=True)
    sum_ref[...] = _row0_only(colsum)
    ssq_ref[...] = _row0_only(colssq)


def matmul_stats(x2d, w2d, *, norm_scale=None, norm_shift=None,
                 out_dtype=jnp.bfloat16):
    """y = (optionally relu(x*scale+shift)) @ w.  Returns (y, sum_c, sumsq_c)."""
    M, K = x2d.shape
    C = w2d.shape[1]
    norm_input = norm_scale is not None
    if norm_input:
        scale = norm_scale.reshape(1, K).astype(jnp.float32)
        shift = norm_shift.reshape(1, K).astype(jnp.float32)
    else:
        scale = jnp.ones((1, K), jnp.float32)
        shift = jnp.zeros((1, K), jnp.float32)

    tm = _pick_tile(M)
    nt = pl.cdiv(M, tm)
    kernel = functools.partial(_mm_stats_kernel, norm_input=norm_input,
                               total_rows=M, tile_rows=tm)
    y, psum, pssq = pl.pallas_call(
        kernel,
        out_shape=(jax.ShapeDtypeStruct((M, C), out_dtype),
                   jax.ShapeDtypeStruct((nt * 8, C), jnp.float32),
                   jax.ShapeDtypeStruct((nt * 8, C), jnp.float32)),
        grid_spec=pltpu.PrefetchScalarGridSpec(
            num_scalar_prefetch=0,
            grid=(nt,),
            in_specs=[pl.BlockSpec((tm, K), lambda i: (i, 0)),
                      pl.BlockSpec((K, C), lambda i: (0, 0)),
                      pl.BlockSpec((1, K), lambda i: (0, 0)),
                      pl.BlockSpec((1, K), lambda i: (0, 0))],
            out_specs=(pl.BlockSpec((tm, C), lambda i: (i, 0)),
                       pl.BlockSpec((8, C), lambda i: (i, 0)),
                       pl.BlockSpec((8, C), lambda i: (i, 0)))),
        compiler_params=pltpu.CompilerParams(
            dimension_semantics=("parallel",),        # distinct blocks per step
            vmem_limit_bytes=_vmem_limit()),
    )(x2d.astype(jnp.bfloat16), w2d.astype(jnp.bfloat16), scale, shift)
    return y, psum.sum(axis=0, keepdims=True), pssq.sum(axis=0, keepdims=True)


# ----------------------------------------------------------------------------
# Kernel 2: 3x3 conv (pad=1, stride s) with bn1+ReLU folded as normalize-on-read,
#           9 stride-1 polyphase MXU taps, f32 VMEM accumulator initialised by the
#           first tap, per-image partial BN stats (parallel grid).
# ----------------------------------------------------------------------------
def _conv3x3_stats_kernel(ph_ref, w_ref, sc_ref, sh_ref,
                          y_ref, sum_ref, ssq_ref,
                          hbuf_ref, acc_ref,
                          *, stride, out_h, out_w, in_h, in_w):
    s = stride
    C = hbuf_ref.shape[-1]
    Hr, Wr = hbuf_ref.shape[1], hbuf_ref.shape[2]

    # Pass 0: normalize-on-read (bn1 + ReLU, f32 math) of the raw zero-padded
    # conv1 output; the interior mask re-creates the zero conv padding.
    scale = sc_ref[...].reshape(1, 1, C)
    shift = sh_ref[...].reshape(1, 1, C)
    for p in range(s * s):
        py, px = p // s, p % s
        r = jax.lax.broadcasted_iota(jnp.int32, (Hr, Wr, 1), 0)
        c = jax.lax.broadcasted_iota(jnp.int32, (Hr, Wr, 1), 1)
        rp = r * s + py                       # row/col in the zero-padded image
        cp = c * s + px
        interior = (rp >= 1) & (rp <= in_h) & (cp >= 1) & (cp <= in_w)
        xf = ph_ref[p].astype(jnp.float32)
        hn = jnp.where(interior, jnp.maximum(xf * scale + shift, 0.0), 0.0)
        hbuf_ref[p] = hn.astype(jnp.bfloat16)

    # Pass 1: 9 taps as stride-1 MXU matmuls; accumulator initialised by tap 0.
    first = True
    for dy in range(3):
        for dx in range(3):
            phase = (dy % s) * s + (dx % s)
            r0, c0 = dy // s, dx // s
            win = hbuf_ref[phase, r0:r0 + out_h, c0:c0 + out_w, :]
            t = jnp.dot(win.reshape(out_h * out_w, C), w_ref[dy, dx],
                        preferred_element_type=jnp.float32)
            if first:
                acc_ref[...] = t
                first = False
            else:
                acc_ref[...] += t

    y = acc_ref[...]
    y_ref[...] = y.astype(y_ref.dtype)
    sum_ref[...] = _row0_only(jnp.sum(y, axis=0, keepdims=True))
    ssq_ref[...] = _row0_only(jnp.sum(y * y, axis=0, keepdims=True))


def conv3x3_stats(y1_2d, w_hwio, sc1, sh1, *, N, H, W, stride,
                  out_dtype=jnp.bfloat16):
    """3x3 conv (pad=1, stride) on raw conv1 output; bn1+ReLU applied in-kernel.

    Returns (y2d of shape (N*Ho*Wo, Cout), per-channel sum, per-channel sumsq).
    """
    C, Cout = w_hwio.shape[2], w_hwio.shape[3]
    s = stride
    Ho = (H + 2 - 3) // s + 1
    Wo = (W + 2 - 3) // s + 1

    x = y1_2d.reshape(N, H, W, C).astype(jnp.bfloat16)
    hp = jnp.pad(x, ((0, 0), (1, 1), (1, 1), (0, 0)))          # zero conv padding
    Hp, Wp = H + 2, W + 2
    if s == 1:
        ph = hp                                                # no repack needed
        Hr, Wr = Hp, Wp
    else:
        Hp2 = -(-Hp // s) * s
        Wp2 = -(-Wp // s) * s
        hp = jnp.pad(hp, ((0, 0), (0, Hp2 - Hp), (0, Wp2 - Wp), (0, 0)))
        ph = hp.reshape(N, Hp2 // s, s, Wp2 // s, s, C)
        ph = jnp.transpose(ph, (0, 2, 4, 1, 3, 5)).reshape(
            N * s * s, Hp2 // s, Wp2 // s, C)
        Hr, Wr = Hp2 // s, Wp2 // s

    kernel = functools.partial(_conv3x3_stats_kernel, stride=s,
                               out_h=Ho, out_w=Wo, in_h=H, in_w=W)
    y, psum, pssq = pl.pallas_call(
        kernel,
        out_shape=(jax.ShapeDtypeStruct((N * Ho * Wo, Cout), out_dtype),
                   jax.ShapeDtypeStruct((N * 8, Cout), jnp.float32),
                   jax.ShapeDtypeStruct((N * 8, Cout), jnp.float32)),
        grid_spec=pltpu.PrefetchScalarGridSpec(
            num_scalar_prefetch=0,
            grid=(N,),
            in_specs=[pl.BlockSpec((s * s, Hr, Wr, C), lambda n: (n, 0, 0, 0)),
                      pl.BlockSpec((3, 3, C, Cout), lambda n: (0, 0, 0, 0)),
                      pl.BlockSpec((1, C), lambda n: (0, 0)),
                      pl.BlockSpec((1, C), lambda n: (0, 0))],
            out_specs=(pl.BlockSpec((Ho * Wo, Cout), lambda n: (n, 0)),
                       pl.BlockSpec((8, Cout), lambda n: (n, 0)),
                       pl.BlockSpec((8, Cout), lambda n: (n, 0))),
            scratch_shapes=[pltpu.VMEM((s * s, Hr, Wr, C), jnp.bfloat16),
                            pltpu.VMEM((Ho * Wo, Cout), jnp.float32)]),
        compiler_params=pltpu.CompilerParams(
            dimension_semantics=("parallel",),
            vmem_limit_bytes=_vmem_limit()),
    )(ph, w_hwio.astype(jnp.bfloat16), sc1, sh1)
    return y, psum.sum(axis=0, keepdims=True), pssq.sum(axis=0, keepdims=True)


# ----------------------------------------------------------------------------
# Kernel 3: fused bn3-apply + shortcut-BN-apply + residual add + ReLU (bf16 out).
# ----------------------------------------------------------------------------
def _bn_add_relu_kernel(y_ref, r_ref, sy_ref, hy_ref, sr_ref, hr_ref, o_ref):
    y = y_ref[...].astype(jnp.float32) * sy_ref[...] + hy_ref[...]
    r = r_ref[...].astype(jnp.float32) * sr_ref[...] + hr_ref[...]
    o_ref[...] = jnp.maximum(y + r, 0.0).astype(o_ref.dtype)


def bn_add_relu(y2d, res2d, scale_y, shift_y, scale_r, shift_r,
                *, out_dtype=jnp.bfloat16):
    M, C = y2d.shape
    tm = _pick_tile(M)
    return pl.pallas_call(
        _bn_add_relu_kernel,
        out_shape=jax.ShapeDtypeStruct((M, C), out_dtype),
        grid_spec=pltpu.PrefetchScalarGridSpec(
            num_scalar_prefetch=0,
            grid=(pl.cdiv(M, tm),),
            in_specs=[pl.BlockSpec((tm, C), lambda i: (i, 0)),
                      pl.BlockSpec((tm, C), lambda i: (i, 0)),
                      pl.BlockSpec((1, C), lambda i: (0, 0)),
                      pl.BlockSpec((1, C), lambda i: (0, 0)),
                      pl.BlockSpec((1, C), lambda i: (0, 0)),
                      pl.BlockSpec((1, C), lambda i: (0, 0))],
            out_specs=pl.BlockSpec((tm, C), lambda i: (i, 0))),
        compiler_params=pltpu.CompilerParams(
            dimension_semantics=("parallel",),
            vmem_limit_bytes=_vmem_limit()),
    )(y2d, res2d, scale_y, shift_y, scale_r, shift_r)


# ----------------------------------------------------------------------------
# Glue
# ----------------------------------------------------------------------------
def _w1x1_to_2d(w):          # (Cout, Cin, 1, 1) -> (Cin, Cout)
    return jnp.transpose(w[:, :, 0, 0], (1, 0))


def prepare_params(params):
    """One-time weight repack (outside the per-forward path): bf16 matmul layouts."""
    prep = {
        "w1": _w1x1_to_2d(params["w1"]).astype(jnp.bfloat16),
        "w2": jnp.transpose(params["w2"], (2, 3, 1, 0)).astype(jnp.bfloat16),
        "w3": _w1x1_to_2d(params["w3"]).astype(jnp.bfloat16),
        "g1": params["g1"].astype(jnp.float32), "b1": params["b1"].astype(jnp.float32),
        "g2": params["g2"].astype(jnp.float32), "b2": params["b2"].astype(jnp.float32),
        "g3": params["g3"].astype(jnp.float32), "b3": params["b3"].astype(jnp.float32),
    }
    if "ws" in params:
        prep["ws"] = _w1x1_to_2d(params["ws"]).astype(jnp.bfloat16)
        prep["gs"] = params["gs"].astype(jnp.float32)
        prep["bs"] = params["bs"].astype(jnp.float32)
    return prep


def _bn_scale_shift(s, ss, count, gamma, beta):
    """Fold training-mode BN (batch stats) into per-channel scale/shift (f32).

    Note: variance via E[x^2]-E[x]^2 in f32; fine for activation-scale data.
    """
    mean = s / count
    var = jnp.maximum(ss / count - mean * mean, 0.0)
    rstd = jax.lax.rsqrt(var + EPS)
    scale = gamma.reshape(1, -1).astype(jnp.float32) * rstd
    shift = beta.reshape(1, -1).astype(jnp.float32) - mean * scale
    return scale, shift


@functools.partial(jax.jit, static_argnames=("stride",))
def bottleneck_forward_nhwc(x_nhwc, prep, stride):
    """Pallas Bottleneck.forward (training-mode BN).  NHWC bf16 in/out."""
    N, H, W, Cin = x_nhwc.shape
    planes = prep["w1"].shape[1]
    out_planes = prep["w3"].shape[1]
    s = stride
    Ho = (H + 2 - 3) // s + 1
    Wo = (W + 2 - 3) // s + 1
    M1 = N * H * W
    M2 = N * Ho * Wo

    xb = x_nhwc.astype(jnp.bfloat16)
    x2d = xb.reshape(M1, Cin)

    # conv1 (1x1): matmul + bn1 batch statistics (pre-BN output kept in bf16)
    y1, s1, ss1 = matmul_stats(x2d, prep["w1"])
    sc1, sh1 = _bn_scale_shift(s1, ss1, M1, prep["g1"], prep["b1"])

    # conv2 (3x3, stride, pad=1): bn1+ReLU folded into the kernel; stride-1 path
    # skips the polyphase repack entirely (pad only).
    y2, s2, ss2 = conv3x3_stats(y1, prep["w2"], sc1, sh1, N=N, H=H, W=W, stride=s)
    sc2, sh2 = _bn_scale_shift(s2, ss2, M2, prep["g2"], prep["b2"])

    # conv3 (1x1): bn2+ReLU fused into the matmul kernel (normalize-on-read)
    y3, s3, ss3 = matmul_stats(y2, prep["w3"], norm_scale=sc2, norm_shift=sh2)
    sc3, sh3 = _bn_scale_shift(s3, ss3, M2, prep["g3"], prep["b3"])

    # shortcut branch
    if s != 1 or Cin != out_planes:
        xs = xb[:, ::s, ::s, :].reshape(M2, Cin)
        ysc, ssc, ssqsc = matmul_stats(xs, prep["ws"])
        scr, shr = _bn_scale_shift(ssc, ssqsc, M2, prep["gs"], prep["bs"])
        res = ysc
    else:
        res = x2d                                          # identity shortcut
        scr = jnp.ones((1, out_planes), jnp.float32)
        shr = jnp.zeros((1, out_planes), jnp.float32)

    # bn3 + shortcut-BN + residual add + ReLU, fused, bf16 output
    out = bn_add_relu(y3, res, sc3, sh3, scr, shr)
    return out.reshape(N, Ho, Wo, out_planes)


# ----------------------------------------------------------------------------
# Pure-JAX f32 reference (correctness check)
# ----------------------------------------------------------------------------
def _ref_conv(x, w, stride, pad):
    return jax.lax.conv_general_dilated(
        x, w, (stride, stride), [(pad, pad), (pad, pad)],
        dimension_numbers=("NCHW", "OIHW", "NCHW"))


def _ref_bn(y, gamma, beta):
    mean = y.mean(axis=(0, 2, 3), keepdims=True)
    var = ((y - mean) ** 2).mean(axis=(0, 2, 3), keepdims=True)
    yn = (y - mean) / jnp.sqrt(var + EPS)
    return yn * gamma[None, :, None, None] + beta[None, :, None, None]


def bottleneck_reference(x, p, stride):
    out = jax.nn.relu(_ref_bn(_ref_conv(x, p["w1"], 1, 0), p["g1"], p["b1"]))
    out = jax.nn.relu(_ref_bn(_ref_conv(out, p["w2"], stride, 1), p["g2"], p["b2"]))
    out = _ref_bn(_ref_conv(out, p["w3"], 1, 0), p["g3"], p["b3"])
    cin, cout = p["w1"].shape[1], p["w3"].shape[0]
    if stride != 1 or cin != cout:
        sc = _ref_bn(_ref_conv(x, p["ws"], stride, 0), p["gs"], p["bs"])
    else:
        sc = x
    return jax.nn.relu(out + sc)


# ----------------------------------------------------------------------------
# Main
# ----------------------------------------------------------------------------
def _make_params(key, in_planes, planes):
    out_planes = EXPANSION * planes
    ks = jax.random.split(key, 12)
    return {
        "w1": 0.1 * jax.random.normal(ks[0], (planes, in_planes, 1, 1), jnp.float32),
        "w2": 0.1 * jax.random.normal(ks[1], (planes, planes, 3, 3), jnp.float32),
        "w3": 0.1 * jax.random.normal(ks[2], (out_planes, planes, 1, 1), jnp.float32),
        "ws": 0.1 * jax.random.normal(ks[3], (out_planes, in_planes, 1, 1), jnp.float32),
        "g1": 1.0 + 0.1 * jax.random.normal(ks[4], (planes,), jnp.float32),
        "b1": 0.1 * jax.random.normal(ks[5], (planes,), jnp.float32),
        "g2": 1.0 + 0.1 * jax.random.normal(ks[6], (planes,), jnp.float32),
        "b2": 0.1 * jax.random.normal(ks[7], (planes,), jnp.float32),
        "g3": 1.0 + 0.1 * jax.random.normal(ks[8], (out_planes,), jnp.float32),
        "b3": 0.1 * jax.random.normal(ks[9], (out_planes,), jnp.float32),
        "gs": 1.0 + 0.1 * jax.random.normal(ks[10], (out_planes,), jnp.float32),
        "bs": 0.1 * jax.random.normal(ks[11], (out_planes,), jnp.float32),
    }


if __name__ == "__main__":
    key = jax.random.PRNGKey(0)
    k1, k2, k3, k4 = jax.random.split(key, 4)

    # Case 1: stride-2 block with projection shortcut (first block of a stage)
    in_planes, planes, stride = 16, 8, 2
    params = _make_params(k1, in_planes, planes)
    prep = prepare_params(params)
    x = jax.random.normal(k2, (2, in_planes, 16, 16), jnp.float32)
    x_nhwc = jnp.transpose(x, (0, 2, 3, 1)).astype(jnp.bfloat16)
    out_nhwc = jax.block_until_ready(
        bottleneck_forward_nhwc(x_nhwc, prep, stride=stride))
    out = jnp.transpose(out_nhwc.astype(jnp.float32), (0, 3, 1, 2))
    assert out.shape == (2, EXPANSION * planes, 8, 8), out.shape
    ref = jax.block_until_ready(bottleneck_reference(x, params, stride))
    # bf16 MXU operands / bf16 output vs. f32 reference -> modest tolerance
    np.testing.assert_allclose(np.asarray(out), np.asarray(ref), rtol=5e-2, atol=1e-1)

    # Case 2: stride-1 block with identity shortcut
    in_planes2, planes2 = 32, 8
    params2 = _make_params(k3, in_planes2, planes2)
    prep2 = prepare_params(params2)
    x2 = jax.random.normal(k4, (2, in_planes2, 16, 16), jnp.float32)
    x2_nhwc = jnp.transpose(x2, (0, 2, 3, 1)).astype(jnp.bfloat16)
    out2_nhwc = jax.block_until_ready(
        bottleneck_forward_nhwc(x2_nhwc, prep2, stride=1))
    out2 = jnp.transpose(out2_nhwc.astype(jnp.float32), (0, 3, 1, 2))
    assert out2.shape == (2, EXPANSION * planes2, 16, 16), out2.shape
    ref2 = jax.block_until_ready(bottleneck_reference(x2, params2, 1))
    np.testing.assert_allclose(np.asarray(out2), np.asarray(ref2), rtol=5e-2, atol=1e-1)

    print("KERNEL_OK")
</pallas_src>

<mosaic_0001>
module attributes {stable_mosaic.version = 11 : i64} {
  func.func @_mm_stats_kernel(%arg0: i32, %arg1: memref<512x16xbf16, #tpu.memory_space<vmem>>, %arg2: memref<16x8xbf16, #tpu.memory_space<vmem>>, %arg3: memref<1x16xf32, #tpu.memory_space<vmem>>, %arg4: memref<1x16xf32, #tpu.memory_space<vmem>>, %arg5: memref<512x8xbf16, #tpu.memory_space<vmem>>, %arg6: memref<8x8xf32, #tpu.memory_space<vmem>>, %arg7: memref<8x8xf32, #tpu.memory_space<vmem>>) attributes {dimension_semantics = [#tpu.dimension_semantics<parallel>], iteration_bounds = array<i64: 1>, scalar_prefetch = 0 : i64, scratch_operands = 0 : i64, tpu.core_type = #tpu.core_type<tc>, window_params = [{transform_indices = @transform_0, window_bounds = array<i64: 512, 16>}, {pipeline_mode = #tpu.pipeline_mode<synchronous>, transform_indices = @transform_1, window_bounds = array<i64: 16, 8>}, {pipeline_mode = #tpu.pipeline_mode<synchronous>, transform_indices = @transform_2, window_bounds = array<i64: 1, 16>}, {pipeline_mode = #tpu.pipeline_mode<synchronous>, transform_indices = @transform_3, window_bounds = array<i64: 1, 16>}, {transform_indices = @transform_4, window_bounds = array<i64: 512, 8>}, {transform_indices = @transform_5, window_bounds = array<i64: 8, 8>}, {transform_indices = @transform_6, window_bounds = array<i64: 8, 8>}]} {
    %c0 = arith.constant 0 : index
    %c0_0 = arith.constant 0 : index
    %0 = vector.load %arg1[%c0, %c0_0] : memref<512x16xbf16, #tpu.memory_space<vmem>>, vector<512x16xbf16>
    %c0_1 = arith.constant 0 : index
    %c0_2 = arith.constant 0 : index
    %1 = vector.load %arg2[%c0_1, %c0_2] : memref<16x8xbf16, #tpu.memory_space<vmem>>, vector<16x8xbf16>
    %cst = arith.constant dense<0.000000e+00> : vector<512x8xf32>
    %2 = tpu.matmul %0, %1, %cst {dimension_numbers = #tpu.dot_dimension_numbers<[1], [0], [0], [1], [0, 0, 1, 1], [], []>} : vector<512x16xbf16>, vector<16x8xbf16>, vector<512x8xf32> -> vector<512x8xf32>
    %3 = arith.truncf %2 : vector<512x8xf32> to vector<512x8xbf16>
    %c0_3 = arith.constant 0 : index
    %c0_4 = arith.constant 0 : index
    %4 = vector.load %arg5[%c0_3, %c0_4] : memref<512x8xbf16, #tpu.memory_space<vmem>>, vector<512x8xbf16>
    tpu.vector_store %arg5[%c0_3, %c0_4], %3 {strides = array<i32>} : memref<512x8xbf16, #tpu.memory_space<vmem>>, vector<512x8xbf16>,
    %cst_5 = arith.constant dense<0.000000e+00> : vector<8xf32>
    %5 = vector.multi_reduction <add>, %2, %cst_5 [0] : vector<512x8xf32> to vector<8xf32>
    %6 = vector.shape_cast %5 : vector<8xf32> to vector<1x8xf32>
    %7 = arith.mulf %2, %2 : vector<512x8xf32>
    %cst_6 = arith.constant dense<0.000000e+00> : vector<8xf32>
    %8 = vector.multi_reduction <add>, %7, %cst_6 [0] : vector<512x8xf32> to vector<8xf32>
    %9 = vector.shape_cast %8 : vector<8xf32> to vector<1x8xf32>
    %10 = tpu.iota {dimensions = array<i32: 0>} : vector<8x1xi32>
    %c0_i32 = arith.constant 0 : i32
    %11 = vector.broadcast %c0_i32 : i32 to vector<8x1xi32>
    %12 = arith.cmpi eq, %10, %11 : vector<8x1xi32>
    %cst_7 = arith.constant 0.000000e+00 : f32
    %13 = vector.shape_cast %12 : vector<8x1xi1> to vector<8x1xi1>
    %14 = vector.broadcast %13 : vector<8x1xi1> to vector<8x8xi1>
    %15 = vector.shape_cast %6 : vector<1x8xf32> to vector<1x8xf32>
    %16 = vector.broadcast %15 : vector<1x8xf32> to vector<8x8xf32>
    %17 = vector.broadcast %cst_7 : f32 to vector<8x8xf32>
    %18 = arith.select %14, %16, %17 : vector<8x8xi1>, vector<8x8xf32>
    %c0_8 = arith.constant 0 : index
    %c0_9 = arith.constant 0 : index
    %19 = vector.load %arg6[%c0_8, %c0_9] : memref<8x8xf32, #tpu.memory_space<vmem>>, vector<8x8xf32>
    tpu.vector_store %arg6[%c0_8, %c0_9], %18 {strides = array<i32>} : memref<8x8xf32, #tpu.memory_space<vmem>>, vector<8x8xf32>,
    %20 = tpu.iota {dimensions = array<i32: 0>} : vector<8x1xi32>
    %c0_i32_10 = arith.constant 0 : i32
    %21 = vector.broadcast %c0_i32_10 : i32 to vector<8x1xi32>
    %22 = arith.cmpi eq, %20, %21 : vector<8x1xi32>
    %cst_11 = arith.constant 0.000000e+00 : f32
    %23 = vector.shape_cast %22 : vector<8x1xi1> to vector<8x1xi1>
    %24 = vector.broadcast %23 : vector<8x1xi1> to vector<8x8xi1>
    %25 = vector.shape_cast %9 : vector<1x8xf32> to vector<1x8xf32>
    %26 = vector.broadcast %25 : vector<1x8xf32> to vector<8x8xf32>
    %27 = vector.broadcast %cst_11 : f32 to vector<8x8xf32>
    %28 = arith.select %24, %26, %27 : vector<8x8xi1>, vector<8x8xf32>
    %c0_12 = arith.constant 0 : index
    %c0_13 = arith.constant 0 : index
    %29 = vector.load %arg7[%c0_12, %c0_13] : memref<8x8xf32, #tpu.memory_space<vmem>>, vector<8x8xf32>
    tpu.vector_store %arg7[%c0_12, %c0_13], %28 {strides = array<i32>} : memref<8x8xf32, #tpu.memory_space<vmem>>, vector<8x8xf32>,
    return
  }
  func.func @transform_0(%arg0: i32) -> (i32, i32) {
    %c0_i32 = arith.constant 0 : i32
    %c0_i32_0 = arith.constant 0 : i32
    return %arg0, %c0_i32 : i32, i32
  }
  func.func @transform_1(%arg0: i32) -> (i32, i32) {
    %c0_i32 = arith.constant 0 : i32
    %c0_i32_0 = arith.constant 0 : i32
    %c0_i32_1 = arith.constant 0 : i32
    return %c0_i32, %c0_i32_0 : i32, i32
  }
  func.func @transform_2(%arg0: i32) -> (i32, i32) {
    %c0_i32 = arith.constant 0 : i32
    %c0_i32_0 = arith.constant 0 : i32
    %c0_i32_1 = arith.constant 0 : i32
    return %c0_i32, %c0_i32_0 : i32, i32
  }
  func.func @transform_3(%arg0: i32) -> (i32, i32) {
    %c0_i32 = arith.constant 0 : i32
    %c0_i32_0 = arith.constant 0 : i32
    %c0_i32_1 = arith.constant 0 : i32
    return %c0_i32, %c0_i32_0 : i32, i32
  }
  func.func @transform_4(%arg0: i32) -> (i32, i32) {
    %c0_i32 = arith.constant 0 : i32
    %c0_i32_0 = arith.constant 0 : i32
    return %arg0, %c0_i32 : i32, i32
  }
  func.func @transform_5(%arg0: i32) -> (i32, i32) {
    %c0_i32 = arith.constant 0 : i32
    %c0_i32_0 = arith.constant 0 : i32
    return %arg0, %c0_i32 : i32, i32
  }
  func.func @transform_6(%arg0: i32) -> (i32, i32) {
    %c0_i32 = arith.constant 0 : i32
    %c0_i32_0 = arith.constant 0 : i32
    return %arg0, %c0_i32 : i32, i32
  }
}

module attributes {stable_mosaic.version = 11 : i64} {
  func.func @_conv3x3_stats_kernel(%arg0: i32, %arg1: memref<4x9x9x8xbf16, #tpu.memory_space<vmem>>, %arg2: memref<3x3x8x8xbf16, #tpu.memory_space<vmem>>, %arg3: memref<1x8xf32, #tpu.memory_space<vmem>>, %arg4: memref<1x8xf32, #tpu.memory_space<vmem>>, %arg5: memref<64x8xbf16, #tpu.memory_space<vmem>>, %arg6: memref<8x8xf32, #tpu.memory_space<vmem>>, %arg7: memref<8x8xf32, #tpu.memory_space<vmem>>, %arg8: memref<4x9x9x8xbf16, #tpu.memory_space<vmem>>, %arg9: memref<64x8xf32, #tpu.memory_space<vmem>>) attributes {dimension_semantics = [#tpu.dimension_semantics<parallel>], iteration_bounds = array<i64: 2>, scalar_prefetch = 0 : i64, scratch_operands = 2 : i64, tpu.core_type = #tpu.core_type<tc>, window_params = [{transform_indices = @transform_0, window_bounds = array<i64: 4, 9, 9, 8>}, {pipeline_mode = #tpu.pipeline_mode<synchronous>, transform_indices = @transform_1, window_bounds = array<i64: 3, 3, 8, 8>}, {pipeline_mode = #tpu.pipeline_mode<synchronous>, transform_indices = @transform_2, window_bounds = array<i64: 1, 8>}, {pipeline_mode = #tpu.pipeline_mode<synchronous>, transform_indices = @transform_3, window_bounds = array<i64: 1, 8>}, {transform_indices = @transform_4, window_bounds = array<i64: 64, 8>}, {transform_indices = @transform_5, window_bounds = array<i64: 8, 8>}, {transform_indices = @transform_6, window_bounds = array<i64: 8, 8>}]} {
    %c0 = arith.constant 0 : index
    %c0_0 = arith.constant 0 : index
    %0 = vector.load %arg3[%c0, %c0_0] : memref<1x8xf32, #tpu.memory_space<vmem>>, vector<1x8xf32>
    %1 = vector.shape_cast %0 : vector<1x8xf32> to vector<1x1x8xf32>
    %c0_1 = arith.constant 0 : index
    %c0_2 = arith.constant 0 : index
    %2 = vector.load %arg4[%c0_1, %c0_2] : memref<1x8xf32, #tpu.memory_space<vmem>>, vector<1x8xf32>
    %3 = vector.shape_cast %2 : vector<1x8xf32> to vector<1x1x8xf32>
    %4 = tpu.iota {dimensions = array<i32: 0>} : vector<9x9x1xi32>
    %5 = tpu.iota {dimensions = array<i32: 1>} : vector<9x9x1xi32>
    %c2_i32 = arith.constant 2 : i32
    %6 = vector.broadcast %c2_i32 : i32 to vector<9x9x1xi32>
    %7 = arith.muli %4, %6 : vector<9x9x1xi32>
    %c0_i32 = arith.constant 0 : i32
    %8 = vector.broadcast %c0_i32 : i32 to vector<9x9x1xi32>
    %9 = arith.addi %7, %8 : vector<9x9x1xi32>
    %c2_i32_3 = arith.constant 2 : i32
    %10 = vector.broadcast %c2_i32_3 : i32 to vector<9x9x1xi32>
    %11 = arith.muli %5, %10 : vector<9x9x1xi32>
    %c0_i32_4 = arith.constant 0 : i32
    %12 = vector.broadcast %c0_i32_4 : i32 to vector<9x9x1xi32>
    %13 = arith.addi %11, %12 : vector<9x9x1xi32>
    %c1_i32 = arith.constant 1 : i32
    %14 = vector.broadcast %c1_i32 : i32 to vector<9x9x1xi32>
    %15 = arith.cmpi sge, %9, %14 : vector<9x9x1xi32>
    %c16_i32 = arith.constant 16 : i32
    %16 = vector.broadcast %c16_i32 : i32 to vector<9x9x1xi32>
    %17 = arith.cmpi sle, %9, %16 : vector<9x9x1xi32>
    %18 = arith.andi %15, %17 : vector<9x9x1xi1>
    %c1_i32_5 = arith.constant 1 : i32
    %19 = vector.broadcast %c1_i32_5 : i32 to vector<9x9x1xi32>
    %20 = arith.cmpi sge, %13, %19 : vector<9x9x1xi32>
    %21 = arith.andi %18, %20 : vector<9x9x1xi1>
    %c16_i32_6 = arith.constant 16 : i32
    %22 = vector.broadcast %c16_i32_6 : i32 to vector<9x9x1xi32>
    %23 = arith.cmpi sle, %13, %22 : vector<9x9x1xi32>
    %24 = arith.andi %21, %23 : vector<9x9x1xi1>
    %c0_7 = arith.constant 0 : index
    %c0_8 = arith.constant 0 : index
    %c0_9 = arith.constant 0 : index
    %c0_10 = arith.constant 0 : index
    %25 = vector.load %arg1[%c0_7, %c0_8, %c0_9, %c0_10] : memref<4x9x9x8xbf16, #tpu.memory_space<vmem>>, vector<1x9x9x8xbf16>
    %26 = vector.shape_cast %25 : vector<1x9x9x8xbf16> to vector<9x9x8xbf16>
    %27 = arith.extf %26 : vector<9x9x8xbf16> to vector<9x9x8xf32>
    %28 = vector.broadcast %1 : vector<1x1x8xf32> to vector<9x9x8xf32>
    %29 = arith.mulf %27, %28 : vector<9x9x8xf32>
    %30 = vector.broadcast %3 : vector<1x1x8xf32> to vector<9x9x8xf32>
    %31 = arith.addf %29, %30 : vector<9x9x8xf32>
    %cst = arith.constant 0.000000e+00 : f32
    %32 = vector.broadcast %cst : f32 to vector<9x9x8xf32>
    %33 = arith.maximumf %31, %32 : vector<9x9x8xf32>
    %cst_11 = arith.constant 0.000000e+00 : f32
    %34 = vector.shape_cast %24 : vector<9x9x1xi1> to vector<9x9x1xi1>
    %35 = vector.broadcast %34 : vector<9x9x1xi1> to vector<9x9x8xi1>
    %36 = vector.broadcast %cst_11 : f32 to vector<9x9x8xf32>
    %37 = arith.select %35, %33, %36 : vector<9x9x8xi1>, vector<9x9x8xf32>
    %38 = arith.truncf %37 : vector<9x9x8xf32> to vector<9x9x8xbf16>
    %c0_12 = arith.constant 0 : index
    %c0_13 = arith.constant 0 : index
    %c0_14 = arith.constant 0 : index
    %c0_15 = arith.constant 0 : index
    %39 = vector.load %arg8[%c0_12, %c0_13, %c0_14, %c0_15] : memref<4x9x9x8xbf16, #tpu.memory_space<vmem>>, vector<1x9x9x8xbf16>
    %40 = vector.shape_cast %39 : vector<1x9x9x8xbf16> to vector<9x9x8xbf16>
    %41 = vector.shape_cast %38 : vector<9x9x8xbf16> to vector<1x9x9x8xbf16>
    tpu.vector_store %arg8[%c0_12, %c0_13, %c0_14, %c0_15], %41 {strides = array<i32>} : memref<4x9x9x8xbf16, #tpu.memory_space<vmem>>, vector<1x9x9x8xbf16>,
    %42 = tpu.iota {dimensions = array<i32: 0>} : vector<9x9x1xi32>
    %43 = tpu.iota {dimensions = array<i32: 1>} : vector<9x9x1xi32>
    %c2_i32_16 = arith.constant 2 : i32
    %44 = vector.broadcast %c2_i32_16 : i32 to vector<9x9x1xi32>
    %45 = arith.muli %42, %44 : vector<9x9x1xi32>
    %c0_i32_17 = arith.constant 0 : i32
    %46 = vector.broadcast %c0_i32_17 : i32 to vector<9x9x1xi32>
    %47 = arith.addi %45, %46 : vector<9x9x1xi32>
    %c2_i32_18 = arith.constant 2 : i32
    %48 = vector.broadcast %c2_i32_18 : i32 to vector<9x9x1xi32>
    %49 = arith.muli %43, %48 : vector<9x9x1xi32>
    %c1_i32_19 = arith.constant 1 : i32
    %50 = vector.broadcast %c1_i32_19 : i32 to vector<9x9x1xi32>
    %51 = arith.addi %49, %50 : vector<9x9x1xi32>
    %c1_i32_20 = arith.constant 1 : i32
    %52 = vector.broadcast %c1_i32_20 : i32 to vector<9x9x1xi32>
    %53 = arith.cmpi sge, %47, %52 : vector<9x9x1xi32>
    %c16_i32_21 = arith.constant 16 : i32
    %54 = vector.broadcast %c16_i32_21 : i32 to vector<9x9x1xi32>
    %55 = arith.cmpi sle, %47, %54 : vector<9x9x1xi32>
    %56 = arith.andi %53, %55 : vector<9x9x1xi1>
    %c1_i32_22 = arith.constant 1 : i32
    %57 = vector.broadcast %c1_i32_22 : i32 to vector<9x9x1xi32>
    %58 = arith.cmpi sge, %51, %57 : vector<9x9x1xi32>
    %59 = arith.andi %56, %58 : vector<9x9x1xi1>
    %c16_i32_23 = arith.constant 16 : i32
    %60 = vector.broadcast %c16_i32_23 : i32 to vector<9x9x1xi32>
    %61 = arith.cmpi sle, %51, %60 : vector<9x9x1xi32>
    %62 = arith.andi %59, %61 : vector<9x9x1xi1>
    %c1 = arith.constant 1 : index
    %c0_24 = arith.constant 0 : index
    %c0_25 = arith.constant 0 : index
    %c0_26 = arith.constant 0 : index
    %63 = vector.load %arg1[%c1, %c0_24, %c0_25, %c0_26] : memref<4x9x9x8xbf16, #tpu.memory_space<vmem>>, vector<1x9x9x8xbf16>
    %64 = vector.shape_cast %63 : vector<1x9x9x8xbf16> to vector<9x9x8xbf16>
    %65 = arith.extf %64 : vector<9x9x8xbf16> to vector<9x9x8xf32>
    %66 = vector.broadcast %1 : vector<1x1x8xf32> to vector<9x9x8xf32>
    %67 = arith.mulf %65, %66 : vector<9x9x8xf32>
    %68 = vector.broadcast %3 : vector<1x1x8xf32> to vector<9x9x8xf32>
    %69 = arith.addf %67, %68 : vector<9x9x8xf32>
    %cst_27 = arith.constant 0.000000e+00 : f32
    %70 = vector.broadcast %cst_27 : f32 to vector<9x9x8xf32>
    %71 = arith.maximumf %69, %70 : vector<9x9x8xf32>
    %cst_28 = arith.constant 0.000000e+00 : f32
    %72 = vector.shape_cast %62 : vector<9x9x1xi1> to vector<9x9x1xi1>
    %73 = vector.broadcast %72 : vector<9x9x1xi1> to vector<9x9x8xi1>
    %74 = vector.broadcast %cst_28 : f32 to vector<9x9x8xf32>
    %75 = arith.select %73, %71, %74 : vector<9x9x8xi1>, vector<9x9x8xf32>
    %76 = arith.truncf %75 : vector<9x9x8xf32> to vector<9x9x8xbf16>
    %c1_29 = arith.constant 1 : index
    %c0_30 = arith.constant 0 : index
    %c0_31 = arith.constant 0 : index
    %c0_32 = arith.constant 0 : index
    %77 = vector.load %arg8[%c1_29, %c0_30, %c0_31, %c0_32] : memref<4x9x9x8xbf16, #tpu.memory_space<vmem>>, vector<1x9x9x8xbf16>
    %78 = vector.shape_cast %77 : vector<1x9x9x8xbf16> to vector<9x9x8xbf16>
    %79 = vector.shape_cast %76 : vector<9x9x8xbf16> to vector<1x9x9x8xbf16>
    tpu.vector_store %arg8[%c1_29, %c0_30, %c0_31, %c0_32], %79 {strides = array<i32>} : memref<4x9x9x8xbf16, #tpu.memory_space<vmem>>, vector<1x9x9x8xbf16>,
    %80 = tpu.iota {dimensions = array<i32: 0>} : vector<9x9x1xi32>
    %81 = tpu.iota {dimensions = array<i32: 1>} : vector<9x9x1xi32>
    %c2_i32_33 = arith.constant 2 : i32
    %82 = vector.broadcast %c2_i32_33 : i32 to vector<9x9x1xi32>
    %83 = arith.muli %80, %82 : vector<9x9x1xi32>
    %c1_i32_34 = arith.constant 1 : i32
    %84 = vector.broadcast %c1_i32_34 : i32 to vector<9x9x1xi32>
    %85 = arith.addi %83, %84 : vector<9x9x1xi32>
    %c2_i32_35 = arith.constant 2 : i32
    %86 = vector.broadcast %c2_i32_35 : i32 to vector<9x9x1xi32>
    %87 = arith.muli %81, %86 : vector<9x9x1xi32>
    %c0_i32_36 = arith.constant 0 : i32
    %88 = vector.broadcast %c0_i32_36 : i32 to vector<9x9x1xi32>
    %89 = arith.addi %87, %88 : vector<9x9x1xi32>
    %c1_i32_37 = arith.constant 1 : i32
    %90 = vector.broadcast %c1_i32_37 : i32 to vector<9x9x1xi32>
    %91 = arith.cmpi sge, %85, %90 : vector<9x9x1xi32>
    %c16_i32_38 = arith.constant 16 : i32
    %92 = vector.broadcast %c16_i32_38 : i32 to vector<9x9x1xi32>
    %93 = arith.cmpi sle, %85, %92 : vector<9x9x1xi32>
    %94 = arith.andi %91, %93 : vector<9x9x1xi1>
    %c1_i32_39 = arith.constant 1 : i32
    %95 = vector.broadcast %c1_i32_39 : i32 to vector<9x9x1xi32>
    %96 = arith.cmpi sge, %89, %95 : vector<9x9x1xi32>
    %97 = arith.andi %94, %96 : vector<9x9x1xi1>
    %c16_i32_40 = arith.constant 16 : i32
    %98 = vector.broadcast %c16_i32_40 : i32 to vector<9x9x1xi32>
    %99 = arith.cmpi sle, %89, %98 : vector<9x9x1xi32>
    %100 = arith.andi %97, %99 : vector<9x9x1xi1>
    %c2 = arith.constant 2 : index
    %c0_41 = arith.constant 0 : index
    %c0_42 = arith.constant 0 : index
    %c0_43 = arith.constant 0 : index
    %101 = vector.load %arg1[%c2, %c0_41, %c0_42, %c0_43] : memref<4x9x9x8xbf16, #tpu.memory_space<vmem>>, vector<1x9x9x8xbf16>
    %102 = vector.shape_cast %101 : vector<1x9x9x8xbf16> to vector<9x9x8xbf16>
    %103 = arith.extf %102 : vector<9x9x8xbf16> to vector<9x9x8xf32>
    %104 = vector.broadcast %1 : vector<1x1x8xf32> to vector<9x9x8xf32>
    %105 = arith.mulf %103, %104 : vector<9x9x8xf32>
    %106 = vector.broadcast %3 : vector<1x1x8xf32> to vector<9x9x8xf32>
    %107 = arith.addf %105, %106 : vector<9x9x8xf32>
    %cst_44 = arith.constant 0.000000e+00 : f32
    %108 = vector.broadcast %cst_44 : f32 to vector<9x9x8xf32>
    %109 = arith.maximumf %107, %108 : vector<9x9x8xf32>
    %cst_45 = arith.constant 0.000000e+00 : f32
    %110 = vector.shape_cast %100 : vector<9x9x1xi1> to vector<9x9x1xi1>
    %111 = vector.broadcast %110 : vector<9x9x1xi1> to vector<9x9x8xi1>
    %112 = vector.broadcast %cst_45 : f32 to vector<9x9x8xf32>
    %113 = arith.select %111, %109, %112 : vector<9x9x8xi1>, vector<9x9x8xf32>
    %114 = arith.truncf %113 : vector<9x9x8xf32> to vector<9x9x8xbf16>
    %c2_46 = arith.constant 2 : index
    %c0_47 = arith.constant 0 : index
    %c0_48 = arith.constant 0 : index
    %c0_49 = arith.constant 0 : index
    %115 = vector.load %arg8[%c2_46, %c0_47, %c0_48, %c0_49] : memref<4x9x9x8xbf16, #tpu.memory_space<vmem>>, vector<1x9x9x8xbf16>
    %116 = vector.shape_cast %115 : vector<1x9x9x8xbf16> to vector<9x9x8xbf16>
    %117 = vector.shape_cast %114 : vector<9x9x8xbf16> to vector<1x9x9x8xbf16>
    tpu.vector_store %arg8[%c2_46, %c0_47, %c0_48, %c0_49], %117 {strides = array<i32>} : memref<4x9x9x8xbf16, #tpu.memory_space<vmem>>, vector<1x9x9x8xbf16>,
    %118 = tpu.iota {dimensions = array<i32: 0>} : vector<9x9x1xi32>
    %119 = tpu.iota {dimensions = array<i32: 1>} : vector<9x9x1xi32>
    %c2_i32_50 = arith.constant 2 : i32
    %120 = vector.broadcast %c2_i32_50 : i32 to vector<9x9x1xi32>
    %121 = arith.muli %118, %120 : vector<9x9x1xi32>
    %c1_i32_51 = arith.constant 1 : i32
    %122 = vector.broadcast %c1_i32_51 : i32 to vector<9x9x1xi32>
    %123 = arith.addi %121, %122 : vector<9x9x1xi32>
    %c2_i32_52 = arith.constant 2 : i32
    %124 = vector.broadcast %c2_i32_52 : i32 to vector<9x9x1xi32>
    %125 = arith.muli %119, %124 : vector<9x9x1xi32>
    %c1_i32_53 = arith.constant 1 : i32
    %126 = vector.broadcast %c1_i32_53 : i32 to vector<9x9x1xi32>
    %127 = arith.addi %125, %126 : vector<9x9x1xi32>
    %c1_i32_54 = arith.constant 1 : i32
    %128 = vector.broadcast %c1_i32_54 : i32 to vector<9x9x1xi32>
    %129 = arith.cmpi sge, %123, %128 : vector<9x9x1xi32>
    %c16_i32_55 = arith.constant 16 : i32
    %130 = vector.broadcast %c16_i32_55 : i32 to vector<9x9x1xi32>
    %131 = arith.cmpi sle, %123, %130 : vector<9x9x1xi32>
    %132 = arith.andi %129, %131 : vector<9x9x1xi1>
    %c1_i32_56 = arith.constant 1 : i32
    %133 = vector.broadcast %c1_i32_56 : i32 to vector<9x9x1xi32>
    %134 = arith.cmpi sge, %127, %133 : vector<9x9x1xi32>
    %135 = arith.andi %132, %134 : vector<9x9x1xi1>
    %c16_i32_57 = arith.constant 16 : i32
    %136 = vector.broadcast %c16_i32_57 : i32 to vector<9x9x1xi32>
    %137 = arith.cmpi sle, %127, %136 : vector<9x9x1xi32>
    %138 = arith.andi %135, %137 : vector<9x9x1xi1>
    %c3 = arith.constant 3 : index
    %c0_58 = arith.constant 0 : index
    %c0_59 = arith.constant 0 : index
    %c0_60 = arith.constant 0 : index
    %139 = vector.load %arg1[%c3, %c0_58, %c0_59, %c0_60] : memref<4x9x9x8xbf16, #tpu.memory_space<vmem>>, vector<1x9x9x8xbf16>
    %140 = vector.shape_cast %139 : vector<1x9x9x8xbf16> to vector<9x9x8xbf16>
    %141 = arith.extf %140 : vector<9x9x8xbf16> to vector<9x9x8xf32>
    %142 = vector.broadcast %1 : vector<1x1x8xf32> to vector<9x9x8xf32>
    %143 = arith.mulf %141, %142 : vector<9x9x8xf32>
    %144 = vector.broadcast %3 : vector<1x1x8xf32> to vector<9x9x8xf32>
    %145 = arith.addf %143, %144 : vector<9x9x8xf32>
    %cst_61 = arith.constant 0.000000e+00 : f32
    %146 = vector.broadcast %cst_61 : f32 to vector<9x9x8xf32>
    %147 = arith.maximumf %145, %146 : vector<9x9x8xf32>
    %cst_62 = arith.constant 0.000000e+00 : f32
    %148 = vector.shape_cast %138 : vector<9x9x1xi1> to vector<9x9x1xi1>
    %149 = vector.broadcast %148 : vector<9x9x1xi1> to vector<9x9x8xi1>
    %150 = vector.broadcast %cst_62 : f32 to vector<9x9x8xf32>
    %151 = arith.select %149, %147, %150 : vector<9x9x8xi1>, vector<9x9x8xf32>
    %152 = arith.truncf %151 : vector<9x9x8xf32> to vector<9x9x8xbf16>
    %c3_63 = arith.constant 3 : index
    %c0_64 = arith.constant 0 : index
    %c0_65 = arith.constant 0 : index
    %c0_66 = arith.constant 0 : index
    %153 = vector.load %arg8[%c3_63, %c0_64, %c0_65, %c0_66] : memref<4x9x9x8xbf16, #tpu.memory_space<vmem>>, vector<1x9x9x8xbf16>
    %154 = vector.shape_cast %153 : vector<1x9x9x8xbf16> to vector<9x9x8xbf16>
    %155 = vector.shape_cast %152 : vector<9x9x8xbf16> to vector<1x9x9x8xbf16>
    tpu.vector_store %arg8[%c3_63, %c0_64, %c0_65, %c0_66], %155 {strides = array<i32>} : memref<4x9x9x8xbf16, #tpu.memory_space<vmem>>, vector<1x9x9x8xbf16>,
    %c0_67 = arith.constant 0 : index
    %c0_68 = arith.constant 0 : index
    %c0_69 = arith.constant 0 : index
    %c0_70 = arith.constant 0 : index
    %156 = vector.load %arg8[%c0_67, %c0_68, %c0_69, %c0_70] : memref<4x9x9x8xbf16, #tpu.memory_space<vmem>>, vector<1x8x8x8xbf16>
    %157 = vector.shape_cast %156 : vector<1x8x8x8xbf16> to vector<8x8x8xbf16>
    %158 = vector.shape_cast %157 : vector<8x8x8xbf16> to vector<64x8xbf16>
    %c0_71 = arith.constant 0 : index
    %c0_72 = arith.constant 0 : index
    %c0_73 = arith.constant 0 : index
    %c0_74 = arith.constant 0 : index
    %159 = vector.load %arg2[%c0_71, %c0_72, %c0_73, %c0_74] : memref<3x3x8x8xbf16, #tpu.memory_space<vmem>>, vector<1x1x8x8xbf16>
    %160 = vector.shape_cast %159 : vector<1x1x8x8xbf16> to vector<8x8xbf16>
    %cst_75 = arith.constant dense<0.000000e+00> : vector<64x8xf32>
    %161 = tpu.matmul %158, %160, %cst_75 {dimension_numbers = #tpu.dot_dimension_numbers<[1], [0], [0], [1], [0, 0, 1, 1], [], []>} : vector<64x8xbf16>, vector<8x8xbf16>, vector<64x8xf32> -> vector<64x8xf32>
    %c0_76 = arith.constant 0 : index
    %c0_77 = arith.constant 0 : index
    %162 = vector.load %arg9[%c0_76, %c0_77] : memref<64x8xf32, #tpu.memory_space<vmem>>, vector<64x8xf32>
    tpu.vector_store %arg9[%c0_76, %c0_77], %161 {strides = array<i32>} : memref<64x8xf32, #tpu.memory_space<vmem>>, vector<64x8xf32>,
    %c1_78 = arith.constant 1 : index
    %c0_79 = arith.constant 0 : index
    %c0_80 = arith.constant 0 : index
    %c0_81 = arith.constant 0 : index
    %163 = vector.load %arg8[%c1_78, %c0_79, %c0_80, %c0_81] : memref<4x9x9x8xbf16, #tpu.memory_space<vmem>>, vector<1x8x8x8xbf16>
    %164 = vector.shape_cast %163 : vector<1x8x8x8xbf16> to vector<8x8x8xbf16>
    %165 = vector.shape_cast %164 : vector<8x8x8xbf16> to vector<64x8xbf16>
    %c0_82 = arith.constant 0 : index
    %c1_83 = arith.constant 1 : index
    %c0_84 = arith.constant 0 : index
    %c0_85 = arith.constant 0 : index
    %166 = vector.load %arg2[%c0_82, %c1_83, %c0_84, %c0_85] : memref<3x3x8x8xbf16, #tpu.memory_space<vmem>>, vector<1x1x8x8xbf16>
    %167 = vector.shape_cast %166 : vector<1x1x8x8xbf16> to vector<8x8xbf16>
    %cst_86 = arith.constant dense<0.000000e+00> : vector<64x8xf32>
    %168 = tpu.matmul %165, %167, %cst_86 {dimension_numbers = #tpu.dot_dimension_numbers<[1], [0], [0], [1], [0, 0, 1, 1], [], []>} : vector<64x8xbf16>, vector<8x8xbf16>, vector<64x8xf32> -> vector<64x8xf32>
    %c0_87 = arith.constant 0 : index
    %c0_88 = arith.constant 0 : index
    %169 = vector.load %arg9[%c0_87, %c0_88] : memref<64x8xf32, #tpu.memory_space<vmem>>, vector<64x8xf32>
    %170 = arith.addf %169, %168 : vector<64x8xf32>
    %c0_89 = arith.constant 0 : index
    %c0_90 = arith.constant 0 : index
    %171 = vector.load %arg9[%c0_89, %c0_90] : memref<64x8xf32, #tpu.memory_space<vmem>>, vector<64x8xf32>
    tpu.vector_store %arg9[%c0_89, %c0_90], %170 {strides = array<i32>} : memref<64x8xf32, #tpu.memory_space<vmem>>, vector<64x8xf32>,
    %c0_91 = arith.constant 0 : index
    %c0_92 = arith.constant 0 : index
    %c1_93 = arith.constant 1 : index
    %c0_94 = arith.constant 0 : index
    %172 = vector.load %arg8[%c0_91, %c0_92, %c1_93, %c0_94] : memref<4x9x9x8xbf16, #tpu.memory_space<vmem>>, vector<1x8x8x8xbf16>
    %173 = vector.shape_cast %172 : vector<1x8x8x8xbf16> to vector<8x8x8xbf16>
    %174 = vector.shape_cast %173 : vector<8x8x8xbf16> to vector<64x8xbf16>
    %c0_95 = arith.constant 0 : index
    %c2_96 = arith.constant 2 : index
    %c0_97 = arith.constant 0 : index
    %c0_98 = arith.constant 0 : index
    %175 = vector.load %arg2[%c0_95, %c2_96, %c0_97, %c0_98] : memref<3x3x8x8xbf16, #tpu.memory_space<vmem>>, vector<1x1x8x8xbf16>
    %176 = vector.shape_cast %175 : vector<1x1x8x8xbf16> to vector<8x8xbf16>
    %cst_99 = arith.constant dense<0.000000e+00> : vector<64x8xf32>
    %177 = tpu.matmul %174, %176, %cst_99 {dimension_numbers = #tpu.dot_dimension_numbers<[1], [0], [0], [1], [0, 0, 1, 1], [], []>} : vector<64x8xbf16>, vector<8x8xbf16>, vector<64x8xf32> -> vector<64x8xf32>
    %c0_100 = arith.constant 0 : index
    %c0_101 = arith.constant 0 : index
    %178 = vector.load %arg9[%c0_100, %c0_101] : memref<64x8xf32, #tpu.memory_space<vmem>>, vector<64x8xf32>
    %179 = arith.addf %178, %177 : vector<64x8xf32>
    %c0_102 = arith.constant 0 : index
    %c0_103 = arith.constant 0 : index
    %180 = vector.load %arg9[%c0_102, %c0_103] : memref<64x8xf32, #tpu.memory_space<vmem>>, vector<64x8xf32>
    tpu.vector_store %arg9[%c0_102, %c0_103], %179 {strides = array<i32>} : memref<64x8xf32, #tpu.memory_space<vmem>>, vector<64x8xf32>,
    %c2_104 = arith.constant 2 : index
    %c0_105 = arith.constant 0 : index
    %c0_106 = arith.constant 0 : index
    %c0_107 = arith.constant 0 : index
    %181 = vector.load %arg8[%c2_104, %c0_105, %c0_106, %c0_107] : memref<4x9x9x8xbf16, #tpu.memory_space<vmem>>, vector<1x8x8x8xbf16>
    %182 = vector.shape_cast %181 : vector<1x8x8x8xbf16> to vector<8x8x8xbf16>
    %183 = vector.shape_cast %182 : vector<8x8x8xbf16> to vector<64x8xbf16>
    %c1_108 = arith.constant 1 : index
    %c0_109 = arith.constant 0 : index
    %c0_110 = arith.constant 0 : index
    %c0_111 = arith.constant 0 : index
    %184 = vector.load %arg2[%c1_108, %c0_109, %c0_110, %c0_111] : memref<3x3x8x8xbf16, #tpu.memory_space<vmem>>, vector<1x1x8x8xbf16>
    %185 = vector.shape_cast %184 : vector<1x1x8x8xbf16> to vector<8x8xbf16>
    %cst_112 = arith.constant dense<0.000000e+00> : vector<64x8xf32>
    %186 = tpu.matmul %183, %185, %cst_112 {dimension_numbers = #tpu.dot_dimension_numbers<[1], [0], [0], [1], [0, 0, 1, 1], [], []>} : vector<64x8xbf16>, vector<8x8xbf16>, vector<64x8xf32> -> vector<64x8xf32>
    %c0_113 = arith.constant 0 : index
    %c0_114 = arith.constant 0 : index
    %187 = vector.load %arg9[%c0_113, %c0_114] : memref<64x8xf32, #tpu.memory_space<vmem>>, vector<64x8xf32>
    %188 = arith.addf %187, %186 : vector<64x8xf32>
    %c0_115 = arith.constant 0 : index
    %c0_116 = arith.constant 0 : index
    %189 = vector.load %arg9[%c0_115, %c0_116] : memref<64x8xf32, #tpu.memory_space<vmem>>, vector<64x8xf32>
    tpu.vector_store %arg9[%c0_115, %c0_116], %188 {strides = array<i32>} : memref<64x8xf32, #tpu.memory_space<vmem>>, vector<64x8xf32>,
    %c3_117 = arith.constant 3 : index
    %c0_118 = arith.constant 0 : index
    %c0_119 = arith.constant 0 : index
    %c0_120 = arith.constant 0 : index
    %190 = vector.load %arg8[%c3_117, %c0_118, %c0_119, %c0_120] : memref<4x9x9x8xbf16, #tpu.memory_space<vmem>>, vector<1x8x8x8xbf16>
    %191 = vector.shape_cast %190 : vector<1x8x8x8xbf16> to vector<8x8x8xbf16>
    %192 = vector.shape_cast %191 : vector<8x8x8xbf16> to vector<64x8xbf16>
    %c1_121 = arith.constant 1 : index
    %c1_122 = arith.constant 1 : index
    %c0_123 = arith.constant 0 : index
    %c0_124 = arith.constant 0 : index
    %193 = vector.load %arg2[%c1_121, %c1_122, %c0_123, %c0_124] : memref<3x3x8x8xbf16, #tpu.memory_space<vmem>>, vector<1x1x8x8xbf16>
    %194 = vector.shape_cast %193 : vector<1x1x8x8xbf16> to vector<8x8xbf16>
    %cst_125 = arith.constant dense<0.000000e+00> : vector<64x8xf32>
    %195 = tpu.matmul %192, %194, %cst_125 {dimension_numbers = #tpu.dot_dimension_numbers<[1], [0], [0], [1], [0, 0, 1, 1], [], []>} : vector<64x8xbf16>, vector<8x8xbf16>, vector<64x8xf32> -> vector<64x8xf32>
    %c0_126 = arith.constant 0 : index
    %c0_127 = arith.constant 0 : index
    %196 = vector.load %arg9[%c0_126, %c0_127] : memref<64x8xf32, #tpu.memory_space<vmem>>, vector<64x8xf32>
    %197 = arith.addf %196, %195 : vector<64x8xf32>
    %c0_128 = arith.constant 0 : index
    %c0_129 = arith.constant 0 : index
    %198 = vector.load %arg9[%c0_128, %c0_129] : memref<64x8xf32, #tpu.memory_space<vmem>>, vector<64x8xf32>
    tpu.vector_store %arg9[%c0_128, %c0_129], %197 {strides = array<i32>} : memref<64x8xf32, #tpu.memory_space<vmem>>, vector<64x8xf32>,
    %c2_130 = arith.constant 2 : index
    %c0_131 = arith.constant 0 : index
    %c1_132 = arith.constant 1 : index
    %c0_133 = arith.constant 0 : index
    %199 = vector.load %arg8[%c2_130, %c0_131, %c1_132, %c0_133] : memref<4x9x9x8xbf16, #tpu.memory_space<vmem>>, vector<1x8x8x8xbf16>
    %200 = vector.shape_cast %199 : vector<1x8x8x8xbf16> to vector<8x8x8xbf16>
    %201 = vector.shape_cast %200 : vector<8x8x8xbf16> to vector<64x8xbf16>
    %c1_134 = arith.constant 1 : index
    %c2_135 = arith.constant 2 : index
    %c0_136 = arith.constant 0 : index
    %c0_137 = arith.constant 0 : index
    %202 = vector.load %arg2[%c1_134, %c2_135, %c0_136, %c0_137] : memref<3x3x8x8xbf16, #tpu.memory_space<vmem>>, vector<1x1x8x8xbf16>
    %203 = vector.shape_cast %202 : vector<1x1x8x8xbf16> to vector<8x8xbf16>
    %cst_138 = arith.constant dense<0.000000e+00> : vector<64x8xf32>
    %204 = tpu.matmul %201, %203, %cst_138 {dimension_numbers = #tpu.dot_dimension_numbers<[1], [0], [0], [1], [0, 0, 1, 1], [], []>} : vector<64x8xbf16>, vector<8x8xbf16>, vector<64x8xf32> -> vector<64x8xf32>
    %c0_139 = arith.constant 0 : index
    %c0_140 = arith.constant 0 : index
    %205 = vector.load %arg9[%c0_139, %c0_140] : memref<64x8xf32, #tpu.memory_space<vmem>>, vector<64x8xf32>
    %206 = arith.addf %205, %204 : vector<64x8xf32>
    %c0_141 = arith.constant 0 : index
    %c0_142 = arith.constant 0 : index
    %207 = vector.load %arg9[%c0_141, %c0_142] : memref<64x8xf32, #tpu.memory_space<vmem>>, vector<64x8xf32>
    tpu.vector_store %arg9[%c0_141, %c0_142], %206 {strides = array<i32>} : memref<64x8xf32, #tpu.memory_space<vmem>>, vector<64x8xf32>,
    %c0_143 = arith.constant 0 : index
    %c1_144 = arith.constant 1 : index
    %c0_145 = arith.constant 0 : index
    %c0_146 = arith.constant 0 : index
    %208 = vector.load %arg8[%c0_143, %c1_144, %c0_145, %c0_146] : memref<4x9x9x8xbf16, #tpu.memory_space<vmem>>, vector<1x8x8x8xbf16>
    %209 = vector.shape_cast %208 : vector<1x8x8x8xbf16> to vector<8x8x8xbf16>
    %210 = vector.shape_cast %209 : vector<8x8x8xbf16> to vector<64x8xbf16>
    %c2_147 = arith.constant 2 : index
    %c0_148 = arith.constant 0 : index
    %c0_149 = arith.constant 0 : index
    %c0_150 = arith.constant 0 : index
    %211 = vector.load %arg2[%c2_147, %c0_148, %c0_149, %c0_150] : memref<3x3x8x8xbf16, #tpu.memory_space<vmem>>, vector<1x1x8x8xbf16>
    %212 = vector.shape_cast %211 : vector<1x1x8x8xbf16> to vector<8x8xbf16>
    %cst_151 = arith.constant dense<0.000000e+00> : vector<64x8xf32>
    %213 = tpu.matmul %210, %212, %cst_151 {dimension_numbers = #tpu.dot_dimension_numbers<[1], [0], [0], [1], [0, 0, 1, 1], [], []>} : vector<64x8xbf16>, vector<8x8xbf16>, vector<64x8xf32> -> vector<64x8xf32>
    %c0_152 = arith.constant 0 : index
    %c0_153 = arith.constant 0 : index
    %214 = vector.load %arg9[%c0_152, %c0_153] : memref<64x8xf32, #tpu.memory_space<vmem>>, vector<64x8xf32>
    %215 = arith.addf %214, %213 : vector<64x8xf32>
    %c0_154 = arith.constant 0 : index
    %c0_155 = arith.constant 0 : index
    %216 = vector.load %arg9[%c0_154, %c0_155] : memref<64x8xf32, #tpu.memory_space<vmem>>, vector<64x8xf32>
    tpu.vector_store %arg9[%c0_154, %c0_155], %215 {strides = array<i32>} : memref<64x8xf32, #tpu.memory_space<vmem>>, vector<64x8xf32>,
    %c1_156 = arith.constant 1 : index
    %c1_157 = arith.constant 1 : index
    %c0_158 = arith.constant 0 : index
    %c0_159 = arith.constant 0 : index
    %217 = vector.load %arg8[%c1_156, %c1_157, %c0_158, %c0_159] : memref<4x9x9x8xbf16, #tpu.memory_space<vmem>>, vector<1x8x8x8xbf16>
    %218 = vector.shape_cast %217 : vector<1x8x8x8xbf16> to vector<8x8x8xbf16>
    %219 = vector.shape_cast %218 : vector<8x8x8xbf16> to vector<64x8xbf16>
    %c2_160 = arith.constant 2 : index
    %c1_161 = arith.constant 1 : index
    %c0_162 = arith.constant 0 : index
    %c0_163 = arith.constant 0 : index
    %220 = vector.load %arg2[%c2_160, %c1_161, %c0_162, %c0_163] : memref<3x3x8x8xbf16, #tpu.memory_space<vmem>>, vector<1x1x8x8xbf16>
    %221 = vector.shape_cast %220 : vector<1x1x8x8xbf16> to vector<8x8xbf16>
    %cst_164 = arith.constant dense<0.000000e+00> : vector<64x8xf32>
    %222 = tpu.matmul %219, %221, %cst_164 {dimension_numbers = #tpu.dot_dimension_numbers<[1], [0], [0], [1], [0, 0, 1, 1], [], []>} : vector<64x8xbf16>, vector<8x8xbf16>, vector<64x8xf32> -> vector<64x8xf32>
    %c0_165 = arith.constant 0 : index
    %c0_166 = arith.constant 0 : index
    %223 = vector.load %arg9[%c0_165, %c0_166] : memref<64x8xf32, #tpu.memory_space<vmem>>, vector<64x8xf32>
    %224 = arith.addf %223, %222 : vector<64x8xf32>
    %c0_167 = arith.constant 0 : index
    %c0_168 = arith.constant 0 : index
    %225 = vector.load %arg9[%c0_167, %c0_168] : memref<64x8xf32, #tpu.memory_space<vmem>>, vector<64x8xf32>
    tpu.vector_store %arg9[%c0_167, %c0_168], %224 {strides = array<i32>} : memref<64x8xf32, #tpu.memory_space<vmem>>, vector<64x8xf32>,
    %c0_169 = arith.constant 0 : index
    %c1_170 = arith.constant 1 : index
    %c1_171 = arith.constant 1 : index
    %c0_172 = arith.constant 0 : index
    %226 = vector.load %arg8[%c0_169, %c1_170, %c1_171, %c0_172] : memref<4x9x9x8xbf16, #tpu.memory_space<vmem>>, vector<1x8x8x8xbf16>
    %227 = vector.shape_cast %226 : vector<1x8x8x8xbf16> to vector<8x8x8xbf16>
    %228 = vector.shape_cast %227 : vector<8x8x8xbf16> to vector<64x8xbf16>
    %c2_173 = arith.constant 2 : index
    %c2_174 = arith.constant 2 : index
    %c0_175 = arith.constant 0 : index
    %c0_176 = arith.constant 0 : index
    %229 = vector.load %arg2[%c2_173, %c2_174, %c0_175, %c0_176] : memref<3x3x8x8xbf16, #tpu.memory_space<vmem>>, vector<1x1x8x8xbf16>
    %230 = vector.shape_cast %229 : vector<1x1x8x8xbf16> to vector<8x8xbf16>
    %cst_177 = arith.constant dense<0.000000e+00> : vector<64x8xf32>
    %231 = tpu.matmul %228, %230, %cst_177 {dimension_numbers = #tpu.dot_dimension_numbers<[1], [0], [0], [1], [0, 0, 1, 1], [], []>} : vector<64x8xbf16>, vector<8x8xbf16>, vector<64x8xf32> -> vector<64x8xf32>
    %c0_178 = arith.constant 0 : index
    %c0_179 = arith.constant 0 : index
    %232 = vector.load %arg9[%c0_178, %c0_179] : memref<64x8xf32, #tpu.memory_space<vmem>>, vector<64x8xf32>
    %233 = arith.addf %232, %231 : vector<64x8xf32>
    %c0_180 = arith.constant 0 : index
    %c0_181 = arith.constant 0 : index
    %234 = vector.load %arg9[%c0_180, %c0_181] : memref<64x8xf32, #tpu.memory_space<vmem>>, vector<64x8xf32>
    tpu.vector_store %arg9[%c0_180, %c0_181], %233 {strides = array<i32>} : memref<64x8xf32, #tpu.memory_space<vmem>>, vector<64x8xf32>,
    %c0_182 = arith.constant 0 : index
    %c0_183 = arith.constant 0 : index
    %235 = vector.load %arg9[%c0_182, %c0_183] : memref<64x8xf32, #tpu.memory_space<vmem>>, vector<64x8xf32>
    %236 = arith.truncf %235 : vector<64x8xf32> to vector<64x8xbf16>
    %c0_184 = arith.constant 0 : index
    %c0_185 = arith.constant 0 : index
    %237 = vector.load %arg5[%c0_184, %c0_185] : memref<64x8xbf16, #tpu.memory_space<vmem>>, vector<64x8xbf16>
    tpu.vector_store %arg5[%c0_184, %c0_185], %236 {strides = array<i32>} : memref<64x8xbf16, #tpu.memory_space<vmem>>, vector<64x8xbf16>,
    %cst_186 = arith.constant dense<0.000000e+00> : vector<8xf32>
    %238 = vector.multi_reduction <add>, %235, %cst_186 [0] : vector<64x8xf32> to vector<8xf32>
    %239 = vector.shape_cast %238 : vector<8xf32> to vector<1x8xf32>
    %240 = tpu.iota {dimensions = array<i32: 0>} : vector<8x1xi32>
    %c0_i32_187 = arith.constant 0 : i32
    %241 = vector.broadcast %c0_i32_187 : i32 to vector<8x1xi32>
    %242 = arith.cmpi eq, %240, %241 : vector<8x1xi32>
    %cst_188 = arith.constant 0.000000e+00 : f32
    %243 = vector.shape_cast %242 : vector<8x1xi1> to vector<8x1xi1>
    %244 = vector.broadcast %243 : vector<8x1xi1> to vector<8x8xi1>
    %245 = vector.shape_cast %239 : vector<1x8xf32> to vector<1x8xf32>
    %246 = vector.broadcast %245 : vector<1x8xf32> to vector<8x8xf32>
    %247 = vector.broadcast %cst_188 : f32 to vector<8x8xf32>
    %248 = arith.select %244, %246, %247 : vector<8x8xi1>, vector<8x8xf32>
    %c0_189 = arith.constant 0 : index
    %c0_190 = arith.constant 0 : index
    %249 = vector.load %arg6[%c0_189, %c0_190] : memref<8x8xf32, #tpu.memory_space<vmem>>, vector<8x8xf32>
    tpu.vector_store %arg6[%c0_189, %c0_190], %248 {strides = array<i32>} : memref<8x8xf32, #tpu.memory_space<vmem>>, vector<8x8xf32>,
    %250 = arith.mulf %235, %235 : vector<64x8xf32>
    %cst_191 = arith.constant dense<0.000000e+00> : vector<8xf32>
    %251 = vector.multi_reduction <add>, %250, %cst_191 [0] : vector<64x8xf32> to vector<8xf32>
    %252 = vector.shape_cast %251 : vector<8xf32> to vector<1x8xf32>
    %253 = tpu.iota {dimensions = array<i32: 0>} : vector<8x1xi32>
    %c0_i32_192 = arith.constant 0 : i32
    %254 = vector.broadcast %c0_i32_192 : i32 to vector<8x1xi32>
    %255 = arith.cmpi eq, %253, %254 : vector<8x1xi32>
    %cst_193 = arith.constant 0.000000e+00 : f32
    %256 = vector.shape_cast %255 : vector<8x1xi1> to vector<8x1xi1>
    %257 = vector.broadcast %256 : vector<8x1xi1> to vector<8x8xi1>
    %258 = vector.shape_cast %252 : vector<1x8xf32> to vector<1x8xf32>
    %259 = vector.broadcast %258 : vector<1x8xf32> to vector<8x8xf32>
    %260 = vector.broadcast %cst_193 : f32 to vector<8x8xf32>
    %261 = arith.select %257, %259, %260 : vector<8x8xi1>, vector<8x8xf32>
    %c0_194 = arith.constant 0 : index
    %c0_195 = arith.constant 0 : index
    %262 = vector.load %arg7[%c0_194, %c0_195] : memref<8x8xf32, #tpu.memory_space<vmem>>, vector<8x8xf32>
    tpu.vector_store %arg7[%c0_194, %c0_195], %261 {strides = array<i32>} : memref<8x8xf32, #tpu.memory_space<vmem>>, vector<8x8xf32>,
    return
  }
  func.func @transform_0(%arg0: i32) -> (i32, i32, i32, i32) {
    %c0_i32 = arith.constant 0 : i32
    %c0_i32_0 = arith.constant 0 : i32
    %c0_i32_1 = arith.constant 0 : i32
    %c0_i32_2 = arith.constant 0 : i32
    return %arg0, %c0_i32, %c0_i32_0, %c0_i32_1 : i32, i32, i32, i32
  }
  func.func @transform_1(%arg0: i32) -> (i32, i32, i32, i32) {
    %c0_i32 = arith.constant 0 : i32
    %c0_i32_0 = arith.constant 0 : i32
    %c0_i32_1 = arith.constant 0 : i32
    %c0_i32_2 = arith.constant 0 : i32
    %c0_i32_3 = arith.constant 0 : i32
    return %c0_i32, %c0_i32_0, %c0_i32_1, %c0_i32_2 : i32, i32, i32, i32
  }
  func.func @transform_2(%arg0: i32) -> (i32, i32) {
    %c0_i32 = arith.constant 0 : i32
    %c0_i32_0 = arith.constant 0 : i32
    %c0_i32_1 = arith.constant 0 : i32
    return %c0_i32, %c0_i32_0 : i32, i32
  }
  func.func @transform_3(%arg0: i32) -> (i32, i32) {
    %c0_i32 = arith.constant 0 : i32
    %c0_i32_0 = arith.constant 0 : i32
    %c0_i32_1 = arith.constant 0 : i32
    return %c0_i32, %c0_i32_0 : i32, i32
  }
  func.func @transform_4(%arg0: i32) -> (i32, i32) {
    %c0_i32 = arith.constant 0 : i32
    %c0_i32_0 = arith.constant 0 : i32
    return %arg0, %c0_i32 : i32, i32
  }
  func.func @transform_5(%arg0: i32) -> (i32, i32) {
    %c0_i32 = arith.constant 0 : i32
    %c0_i32_0 = arith.constant 0 : i32
    return %arg0, %c0_i32 : i32, i32
  }
  func.func @transform_6(%arg0: i32) -> (i32, i32) {
    %c0_i32 = arith.constant 0 : i32
    %c0_i32_0 = arith.constant 0 : i32
    return %arg0, %c0_i32 : i32, i32
  }
}

module attributes {stable_mosaic.version = 11 : i64} {
  func.func @_mm_stats_kernel(%arg0: i32, %arg1: memref<128x8xbf16, #tpu.memory_space<vmem>>, %arg2: memref<8x32xbf16, #tpu.memory_space<vmem>>, %arg3: memref<1x8xf32, #tpu.memory_space<vmem>>, %arg4: memref<1x8xf32, #tpu.memory_space<vmem>>, %arg5: memref<128x32xbf16, #tpu.memory_space<vmem>>, %arg6: memref<8x32xf32, #tpu.memory_space<vmem>>, %arg7: memref<8x32xf32, #tpu.memory_space<vmem>>) attributes {dimension_semantics = [#tpu.dimension_semantics<parallel>], iteration_bounds = array<i64: 1>, scalar_prefetch = 0 : i64, scratch_operands = 0 : i64, tpu.core_type = #tpu.core_type<tc>, window_params = [{transform_indices = @transform_0, window_bounds = array<i64: 128, 8>}, {pipeline_mode = #tpu.pipeline_mode<synchronous>, transform_indices = @transform_1, window_bounds = array<i64: 8, 32>}, {pipeline_mode = #tpu.pipeline_mode<synchronous>, transform_indices = @transform_2, window_bounds = array<i64: 1, 8>}, {pipeline_mode = #tpu.pipeline_mode<synchronous>, transform_indices = @transform_3, window_bounds = array<i64: 1, 8>}, {transform_indices = @transform_4, window_bounds = array<i64: 128, 32>}, {transform_indices = @transform_5, window_bounds = array<i64: 8, 32>}, {transform_indices = @transform_6, window_bounds = array<i64: 8, 32>}]} {
    %c0 = arith.constant 0 : index
    %c0_0 = arith.constant 0 : index
    %0 = vector.load %arg1[%c0, %c0_0] : memref<128x8xbf16, #tpu.memory_space<vmem>>, vector<128x8xbf16>
    %1 = arith.extf %0 : vector<128x8xbf16> to vector<128x8xf32>
    %c0_1 = arith.constant 0 : index
    %c0_2 = arith.constant 0 : index
    %2 = vector.load %arg3[%c0_1, %c0_2] : memref<1x8xf32, #tpu.memory_space<vmem>>, vector<1x8xf32>
    %3 = vector.broadcast %2 : vector<1x8xf32> to vector<128x8xf32>
    %4 = arith.mulf %1, %3 : vector<128x8xf32>
    %c0_3 = arith.constant 0 : index
    %c0_4 = arith.constant 0 : index
    %5 = vector.load %arg4[%c0_3, %c0_4] : memref<1x8xf32, #tpu.memory_space<vmem>>, vector<1x8xf32>
    %6 = vector.broadcast %5 : vector<1x8xf32> to vector<128x8xf32>
    %7 = arith.addf %4, %6 : vector<128x8xf32>
    %cst = arith.constant 0.000000e+00 : f32
    %8 = vector.broadcast %cst : f32 to vector<128x8xf32>
    %9 = arith.maximumf %7, %8 : vector<128x8xf32>
    %10 = arith.truncf %9 : vector<128x8xf32> to vector<128x8xbf16>
    %c0_5 = arith.constant 0 : index
    %c0_6 = arith.constant 0 : index
    %11 = vector.load %arg2[%c0_5, %c0_6] : memref<8x32xbf16, #tpu.memory_space<vmem>>, vector<8x32xbf16>
    %cst_7 = arith.constant dense<0.000000e+00> : vector<128x32xf32>
    %12 = tpu.matmul %10, %11, %cst_7 {dimension_numbers = #tpu.dot_dimension_numbers<[1], [0], [0], [1], [0, 0, 1, 1], [], []>} : vector<128x8xbf16>, vector<8x32xbf16>, vector<128x32xf32> -> vector<128x32xf32>
    %13 = arith.truncf %12 : vector<128x32xf32> to vector<128x32xbf16>
    %c0_8 = arith.constant 0 : index
    %c0_9 = arith.constant 0 : index
    %14 = vector.load %arg5[%c0_8, %c0_9] : memref<128x32xbf16, #tpu.memory_space<vmem>>, vector<128x32xbf16>
    tpu.vector_store %arg5[%c0_8, %c0_9], %13 {strides = array<i32>} : memref<128x32xbf16, #tpu.memory_space<vmem>>, vector<128x32xbf16>,
    %cst_10 = arith.constant dense<0.000000e+00> : vector<32xf32>
    %15 = vector.multi_reduction <add>, %12, %cst_10 [0] : vector<128x32xf32> to vector<32xf32>
    %16 = vector.shape_cast %15 : vector<32xf32> to vector<1x32xf32>
    %17 = arith.mulf %12, %12 : vector<128x32xf32>
    %cst_11 = arith.constant dense<0.000000e+00> : vector<32xf32>
    %18 = vector.multi_reduction <add>, %17, %cst_11 [0] : vector<128x32xf32> to vector<32xf32>
    %19 = vector.shape_cast %18 : vector<32xf32> to vector<1x32xf32>
    %20 = tpu.iota {dimensions = array<i32: 0>} : vector<8x1xi32>
    %c0_i32 = arith.constant 0 : i32
    %21 = vector.broadcast %c0_i32 : i32 to vector<8x1xi32>
    %22 = arith.cmpi eq, %20, %21 : vector<8x1xi32>
    %cst_12 = arith.constant 0.000000e+00 : f32
    %23 = vector.shape_cast %22 : vector<8x1xi1> to vector<8x1xi1>
    %24 = vector.broadcast %23 : vector<8x1xi1> to vector<8x32xi1>
    %25 = vector.shape_cast %16 : vector<1x32xf32> to vector<1x32xf32>
    %26 = vector.broadcast %25 : vector<1x32xf32> to vector<8x32xf32>
    %27 = vector.broadcast %cst_12 : f32 to vector<8x32xf32>
    %28 = arith.select %24, %26, %27 : vector<8x32xi1>, vector<8x32xf32>
    %c0_13 = arith.constant 0 : index
    %c0_14 = arith.constant 0 : index
    %29 = vector.load %arg6[%c0_13, %c0_14] : memref<8x32xf32, #tpu.memory_space<vmem>>, vector<8x32xf32>
    tpu.vector_store %arg6[%c0_13, %c0_14], %28 {strides = array<i32>} : memref<8x32xf32, #tpu.memory_space<vmem>>, vector<8x32xf32>,
    %30 = tpu.iota {dimensions = array<i32: 0>} : vector<8x1xi32>
    %c0_i32_15 = arith.constant 0 : i32
    %31 = vector.broadcast %c0_i32_15 : i32 to vector<8x1xi32>
    %32 = arith.cmpi eq, %30, %31 : vector<8x1xi32>
    %cst_16 = arith.constant 0.000000e+00 : f32
    %33 = vector.shape_cast %32 : vector<8x1xi1> to vector<8x1xi1>
    %34 = vector.broadcast %33 : vector<8x1xi1> to vector<8x32xi1>
    %35 = vector.shape_cast %19 : vector<1x32xf32> to vector<1x32xf32>
    %36 = vector.broadcast %35 : vector<1x32xf32> to vector<8x32xf32>
    %37 = vector.broadcast %cst_16 : f32 to vector<8x32xf32>
    %38 = arith.select %34, %36, %37 : vector<8x32xi1>, vector<8x32xf32>
    %c0_17 = arith.constant 0 : index
    %c0_18 = arith.constant 0 : index
    %39 = vector.load %arg7[%c0_17, %c0_18] : memref<8x32xf32, #tpu.memory_space<vmem>>, vector<8x32xf32>
    tpu.vector_store %arg7[%c0_17, %c0_18], %38 {strides = array<i32>} : memref<8x32xf32, #tpu.memory_space<vmem>>, vector<8x32xf32>,
    return
  }
  func.func @transform_0(%arg0: i32) -> (i32, i32) {
    %c0_i32 = arith.constant 0 : i32
    %c0_i32_0 = arith.constant 0 : i32
    return %arg0, %c0_i32 : i32, i32
  }
  func.func @transform_1(%arg0: i32) -> (i32, i32) {
    %c0_i32 = arith.constant 0 : i32
    %c0_i32_0 = arith.constant 0 : i32
    %c0_i32_1 = arith.constant 0 : i32
    return %c0_i32, %c0_i32_0 : i32, i32
  }
  func.func @transform_2(%arg0: i32) -> (i32, i32) {
    %c0_i32 = arith.constant 0 : i32
    %c0_i32_0 = arith.constant 0 : i32
    %c0_i32_1 = arith.constant 0 : i32
    return %c0_i32, %c0_i32_0 : i32, i32
  }
  func.func @transform_3(%arg0: i32) -> (i32, i32) {
    %c0_i32 = arith.constant 0 : i32
    %c0_i32_0 = arith.constant 0 : i32
    %c0_i32_1 = arith.constant 0 : i32
    return %c0_i32, %c0_i32_0 : i32, i32
  }
  func.func @transform_4(%arg0: i32) -> (i32, i32) {
    %c0_i32 = arith.constant 0 : i32
    %c0_i32_0 = arith.constant 0 : i32
    return %arg0, %c0_i32 : i32, i32
  }
  func.func @transform_5(%arg0: i32) -> (i32, i32) {
    %c0_i32 = arith.constant 0 : i32
    %c0_i32_0 = arith.constant 0 : i32
    return %arg0, %c0_i32 : i32, i32
  }
  func.func @transform_6(%arg0: i32) -> (i32, i32) {
    %c0_i32 = arith.constant 0 : i32
    %c0_i32_0 = arith.constant 0 : i32
    return %arg0, %c0_i32 : i32, i32
  }
}

module attributes {stable_mosaic.version = 11 : i64} {
  func.func @_mm_stats_kernel(%arg0: i32, %arg1: memref<128x16xbf16, #tpu.memory_space<vmem>>, %arg2: memref<16x32xbf16, #tpu.memory_space<vmem>>, %arg3: memref<1x16xf32, #tpu.memory_space<vmem>>, %arg4: memref<1x16xf32, #tpu.memory_space<vmem>>, %arg5: memref<128x32xbf16, #tpu.memory_space<vmem>>, %arg6: memref<8x32xf32, #tpu.memory_space<vmem>>, %arg7: memref<8x32xf32, #tpu.memory_space<vmem>>) attributes {dimension_semantics = [#tpu.dimension_semantics<parallel>], iteration_bounds = array<i64: 1>, scalar_prefetch = 0 : i64, scratch_operands = 0 : i64, tpu.core_type = #tpu.core_type<tc>, window_params = [{transform_indices = @transform_0, window_bounds = array<i64: 128, 16>}, {pipeline_mode = #tpu.pipeline_mode<synchronous>, transform_indices = @transform_1, window_bounds = array<i64: 16, 32>}, {pipeline_mode = #tpu.pipeline_mode<synchronous>, transform_indices = @transform_2, window_bounds = array<i64: 1, 16>}, {pipeline_mode = #tpu.pipeline_mode<synchronous>, transform_indices = @transform_3, window_bounds = array<i64: 1, 16>}, {transform_indices = @transform_4, window_bounds = array<i64: 128, 32>}, {transform_indices = @transform_5, window_bounds = array<i64: 8, 32>}, {transform_indices = @transform_6, window_bounds = array<i64: 8, 32>}]} {
    %c0 = arith.constant 0 : index
    %c0_0 = arith.constant 0 : index
    %0 = vector.load %arg1[%c0, %c0_0] : memref<128x16xbf16, #tpu.memory_space<vmem>>, vector<128x16xbf16>
    %c0_1 = arith.constant 0 : index
    %c0_2 = arith.constant 0 : index
    %1 = vector.load %arg2[%c0_1, %c0_2] : memref<16x32xbf16, #tpu.memory_space<vmem>>, vector<16x32xbf16>
    %cst = arith.constant dense<0.000000e+00> : vector<128x32xf32>
    %2 = tpu.matmul %0, %1, %cst {dimension_numbers = #tpu.dot_dimension_numbers<[1], [0], [0], [1], [0, 0, 1, 1], [], []>} : vector<128x16xbf16>, vector<16x32xbf16>, vector<128x32xf32> -> vector<128x32xf32>
    %3 = arith.truncf %2 : vector<128x32xf32> to vector<128x32xbf16>
    %c0_3 = arith.constant 0 : index
    %c0_4 = arith.constant 0 : index
    %4 = vector.load %arg5[%c0_3, %c0_4] : memref<128x32xbf16, #tpu.memory_space<vmem>>, vector<128x32xbf16>
    tpu.vector_store %arg5[%c0_3, %c0_4], %3 {strides = array<i32>} : memref<128x32xbf16, #tpu.memory_space<vmem>>, vector<128x32xbf16>,
    %cst_5 = arith.constant dense<0.000000e+00> : vector<32xf32>
    %5 = vector.multi_reduction <add>, %2, %cst_5 [0] : vector<128x32xf32> to vector<32xf32>
    %6 = vector.shape_cast %5 : vector<32xf32> to vector<1x32xf32>
    %7 = arith.mulf %2, %2 : vector<128x32xf32>
    %cst_6 = arith.constant dense<0.000000e+00> : vector<32xf32>
    %8 = vector.multi_reduction <add>, %7, %cst_6 [0] : vector<128x32xf32> to vector<32xf32>
    %9 = vector.shape_cast %8 : vector<32xf32> to vector<1x32xf32>
    %10 = tpu.iota {dimensions = array<i32: 0>} : vector<8x1xi32>
    %c0_i32 = arith.constant 0 : i32
    %11 = vector.broadcast %c0_i32 : i32 to vector<8x1xi32>
    %12 = arith.cmpi eq, %10, %11 : vector<8x1xi32>
    %cst_7 = arith.constant 0.000000e+00 : f32
    %13 = vector.shape_cast %12 : vector<8x1xi1> to vector<8x1xi1>
    %14 = vector.broadcast %13 : vector<8x1xi1> to vector<8x32xi1>
    %15 = vector.shape_cast %6 : vector<1x32xf32> to vector<1x32xf32>
    %16 = vector.broadcast %15 : vector<1x32xf32> to vector<8x32xf32>
    %17 = vector.broadcast %cst_7 : f32 to vector<8x32xf32>
    %18 = arith.select %14, %16, %17 : vector<8x32xi1>, vector<8x32xf32>
    %c0_8 = arith.constant 0 : index
    %c0_9 = arith.constant 0 : index
    %19 = vector.load %arg6[%c0_8, %c0_9] : memref<8x32xf32, #tpu.memory_space<vmem>>, vector<8x32xf32>
    tpu.vector_store %arg6[%c0_8, %c0_9], %18 {strides = array<i32>} : memref<8x32xf32, #tpu.memory_space<vmem>>, vector<8x32xf32>,
    %20 = tpu.iota {dimensions = array<i32: 0>} : vector<8x1xi32>
    %c0_i32_10 = arith.constant 0 : i32
    %21 = vector.broadcast %c0_i32_10 : i32 to vector<8x1xi32>
    %22 = arith.cmpi eq, %20, %21 : vector<8x1xi32>
    %cst_11 = arith.constant 0.000000e+00 : f32
    %23 = vector.shape_cast %22 : vector<8x1xi1> to vector<8x1xi1>
    %24 = vector.broadcast %23 : vector<8x1xi1> to vector<8x32xi1>
    %25 = vector.shape_cast %9 : vector<1x32xf32> to vector<1x32xf32>
    %26 = vector.broadcast %25 : vector<1x32xf32> to vector<8x32xf32>
    %27 = vector.broadcast %cst_11 : f32 to vector<8x32xf32>
    %28 = arith.select %24, %26, %27 : vector<8x32xi1>, vector<8x32xf32>
    %c0_12 = arith.constant 0 : index
    %c0_13 = arith.constant 0 : index
    %29 = vector.load %arg7[%c0_12, %c0_13] : memref<8x32xf32, #tpu.memory_space<vmem>>, vector<8x32xf32>
    tpu.vector_store %arg7[%c0_12, %c0_13], %28 {strides = array<i32>} : memref<8x32xf32, #tpu.memory_space<vmem>>, vector<8x32xf32>,
    return
  }
  func.func @transform_0(%arg0: i32) -> (i32, i32) {
    %c0_i32 = arith.constant 0 : i32
    %c0_i32_0 = arith.constant 0 : i32
    return %arg0, %c0_i32 : i32, i32
  }
  func.func @transform_1(%arg0: i32) -> (i32, i32) {
    %c0_i32 = arith.constant 0 : i32
    %c0_i32_0 = arith.constant 0 : i32
    %c0_i32_1 = arith.constant 0 : i32
    return %c0_i32, %c0_i32_0 : i32, i32
  }
  func.func @transform_2(%arg0: i32) -> (i32, i32) {
    %c0_i32 = arith.constant 0 : i32
    %c0_i32_0 = arith.constant 0 : i32
    %c0_i32_1 = arith.constant 0 : i32
    return %c0_i32, %c0_i32_0 : i32, i32
  }
  func.func @transform_3(%arg0: i32) -> (i32, i32) {
    %c0_i32 = arith.constant 0 : i32
    %c0_i32_0 = arith.constant 0 : i32
    %c0_i32_1 = arith.constant 0 : i32
    return %c0_i32, %c0_i32_0 : i32, i32
  }
  func.func @transform_4(%arg0: i32) -> (i32, i32) {
    %c0_i32 = arith.constant 0 : i32
    %c0_i32_0 = arith.constant 0 : i32
    return %arg0, %c0_i32 : i32, i32
  }
  func.func @transform_5(%arg0: i32) -> (i32, i32) {
    %c0_i32 = arith.constant 0 : i32
    %c0_i32_0 = arith.constant 0 : i32
    return %arg0, %c0_i32 : i32, i32
  }
  func.func @transform_6(%arg0: i32) -> (i32, i32) {
    %c0_i32 = arith.constant 0 : i32
    %c0_i32_0 = arith.constant 0 : i32
    return %arg0, %c0_i32 : i32, i32
  }
}

module attributes {stable_mosaic.version = 11 : i64} {
  func.func @_bn_add_relu_kernel(%arg0: i32, %arg1: memref<128x32xbf16, #tpu.memory_space<vmem>>, %arg2: memref<128x32xbf16, #tpu.memory_space<vmem>>, %arg3: memref<1x32xf32, #tpu.memory_space<vmem>>, %arg4: memref<1x32xf32, #tpu.memory_space<vmem>>, %arg5: memref<1x32xf32, #tpu.memory_space<vmem>>, %arg6: memref<1x32xf32, #tpu.memory_space<vmem>>, %arg7: memref<128x32xbf16, #tpu.memory_space<vmem>>) attributes {dimension_semantics = [#tpu.dimension_semantics<parallel>], iteration_bounds = array<i64: 1>, scalar_prefetch = 0 : i64, scratch_operands = 0 : i64, tpu.core_type = #tpu.core_type<tc>, window_params = [{transform_indices = @transform_0, window_bounds = array<i64: 128, 32>}, {transform_indices = @transform_1, window_bounds = array<i64: 128, 32>}, {pipeline_mode = #tpu.pipeline_mode<synchronous>, transform_indices = @transform_2, window_bounds = array<i64: 1, 32>}, {pipeline_mode = #tpu.pipeline_mode<synchronous>, transform_indices = @transform_3, window_bounds = array<i64: 1, 32>}, {pipeline_mode = #tpu.pipeline_mode<synchronous>, transform_indices = @transform_4, window_bounds = array<i64: 1, 32>}, {pipeline_mode = #tpu.pipeline_mode<synchronous>, transform_indices = @transform_5, window_bounds = array<i64: 1, 32>}, {transform_indices = @transform_6, window_bounds = array<i64: 128, 32>}]} {
    %c0 = arith.constant 0 : index
    %c0_0 = arith.constant 0 : index
    %0 = vector.load %arg1[%c0, %c0_0] : memref<128x32xbf16, #tpu.memory_space<vmem>>, vector<128x32xbf16>
    %1 = arith.extf %0 : vector<128x32xbf16> to vector<128x32xf32>
    %c0_1 = arith.constant 0 : index
    %c0_2 = arith.constant 0 : index
    %2 = vector.load %arg3[%c0_1, %c0_2] : memref<1x32xf32, #tpu.memory_space<vmem>>, vector<1x32xf32>
    %3 = vector.broadcast %2 : vector<1x32xf32> to vector<128x32xf32>
    %4 = arith.mulf %1, %3 : vector<128x32xf32>
    %c0_3 = arith.constant 0 : index
    %c0_4 = arith.constant 0 : index
    %5 = vector.load %arg4[%c0_3, %c0_4] : memref<1x32xf32, #tpu.memory_space<vmem>>, vector<1x32xf32>
    %6 = vector.broadcast %5 : vector<1x32xf32> to vector<128x32xf32>
    %7 = arith.addf %4, %6 : vector<128x32xf32>
    %c0_5 = arith.constant 0 : index
    %c0_6 = arith.constant 0 : index
    %8 = vector.load %arg2[%c0_5, %c0_6] : memref<128x32xbf16, #tpu.memory_space<vmem>>, vector<128x32xbf16>
    %9 = arith.extf %8 : vector<128x32xbf16> to vector<128x32xf32>
    %c0_7 = arith.constant 0 : index
    %c0_8 = arith.constant 0 : index
    %10 = vector.load %arg5[%c0_7, %c0_8] : memref<1x32xf32, #tpu.memory_space<vmem>>, vector<1x32xf32>
    %11 = vector.broadcast %10 : vector<1x32xf32> to vector<128x32xf32>
    %12 = arith.mulf %9, %11 : vector<128x32xf32>
    %c0_9 = arith.constant 0 : index
    %c0_10 = arith.constant 0 : index
    %13 = vector.load %arg6[%c0_9, %c0_10] : memref<1x32xf32, #tpu.memory_space<vmem>>, vector<1x32xf32>
    %14 = vector.broadcast %13 : vector<1x32xf32> to vector<128x32xf32>
    %15 = arith.addf %12, %14 : vector<128x32xf32>
    %16 = arith.addf %7, %15 : vector<128x32xf32>
    %cst = arith.constant 0.000000e+00 : f32
    %17 = vector.broadcast %cst : f32 to vector<128x32xf32>
    %18 = arith.maximumf %16, %17 : vector<128x32xf32>
    %19 = arith.truncf %18 : vector<128x32xf32> to vector<128x32xbf16>
    %c0_11 = arith.constant 0 : index
    %c0_12 = arith.constant 0 : index
    %20 = vector.load %arg7[%c0_11, %c0_12] : memref<128x32xbf16, #tpu.memory_space<vmem>>, vector<128x32xbf16>
    tpu.vector_store %arg7[%c0_11, %c0_12], %19 {strides = array<i32>} : memref<128x32xbf16, #tpu.memory_space<vmem>>, vector<128x32xbf16>,
    return
  }
  func.func @transform_0(%arg0: i32) -> (i32, i32) {
    %c0_i32 = arith.constant 0 : i32
    %c0_i32_0 = arith.constant 0 : i32
    return %arg0, %c0_i32 : i32, i32
  }
  func.func @transform_1(%arg0: i32) -> (i32, i32) {
    %c0_i32 = arith.constant 0 : i32
    %c0_i32_0 = arith.constant 0 : i32
    return %arg0, %c0_i32 : i32, i32
  }
  func.func @transform_2(%arg0: i32) -> (i32, i32) {
    %c0_i32 = arith.constant 0 : i32
    %c0_i32_0 = arith.constant 0 : i32
    %c0_i32_1 = arith.constant 0 : i32
    return %c0_i32, %c0_i32_0 : i32, i32
  }
  func.func @transform_3(%arg0: i32) -> (i32, i32) {
    %c0_i32 = arith.constant 0 : i32
    %c0_i32_0 = arith.constant 0 : i32
    %c0_i32_1 = arith.constant 0 : i32
    return %c0_i32, %c0_i32_0 : i32, i32
  }
  func.func @transform_4(%arg0: i32) -> (i32, i32) {
    %c0_i32 = arith.constant 0 : i32
    %c0_i32_0 = arith.constant 0 : i32
    %c0_i32_1 = arith.constant 0 : i32
    return %c0_i32, %c0_i32_0 : i32, i32
  }
  func.func @transform_5(%arg0: i32) -> (i32, i32) {
    %c0_i32 = arith.constant 0 : i32
    %c0_i32_0 = arith.constant 0 : i32
    %c0_i32_1 = arith.constant 0 : i32
    return %c0_i32, %c0_i32_0 : i32, i32
  }
  func.func @transform_6(%arg0: i32) -> (i32, i32) {
    %c0_i32 = arith.constant 0 : i32
    %c0_i32_0 = arith.constant 0 : i32
    return %arg0, %c0_i32 : i32, i32
  }
}

</mosaic_0001>

<bundles_post_ra>
// kernel: bottleneck_forward_nhwc.5
= control target key start
LH: loop header
LB: loop body
LE: loop exit
PB: predicated region body
PF: predicated region fallthrough
CT: control target
= control target key end

     0   :  { %12 = vsyncpa [#allocation3], 0  ;;  %s1681_s21 = smov [#allocation2]   ;;  %s2382_s0 = inlined_call_operand.hbm [shape: bf16[512,16], index: 0, kind: input, shape index: {}]   ;;  %s2383_s1 = inlined_call_operand.vmem [shape: bf16[16,8], index: 1, kind: input, shape index: {}]   ;;  %s2384_s2 = inlined_call_operand.vmem [shape: f32[1,16], index: 2, kind: input, shape index: {}]   ;;  %s2385_s3 = inlined_call_operand.vmem [shape: f32[1,16], index: 3, kind: input, shape index: {}]   ;;  %s2386_s4 = inlined_call_operand.vmem [shape: bf16[512,8], index: 4, kind: output, shape index: {0}]   ;;  %s2387_s5 = inlined_call_operand.vmem [shape: f32[8,8], index: 5, kind: output, shape index: {1}]   ;;  %s2388_s6 = inlined_call_operand.vmem [shape: f32[8,8], index: 6, kind: output, shape index: {2}]  }
   0x1   :  { %s18_s22 = sshll.u32 %s1681_s21, 4  ;;  %s1657_s2 = scalar_lea.hbm %s2382_s0, 4096  ;;  %s19_s22 = int_to_ptr.vmem [resolvable:$true] %s18_s22 }
   0x2   :  { %p1658_p0 = scmp.ne.s32.totalorder %s2382_s0, %s1657_s2  ;;  %p1661_p1 = scmp.lt.u32.totalorder %s1657_s2, %s2382_s0 }
   0x4   :  { %p1663_p2 = pnand %p1661_p1, %p1658_p0 }
   0x6   :  { %1666 = shalt.err (!%p1663_p2)
}
   0x7   :  { %s1667_s28 = scalar_lea.vmem %s19_s22, 4096  ;;  %p1672_p4 = scmp.lt.s32.totalorder %s19_s22, %s19_s22 }
   0x8   :  { %p1668_p3 = scmp.ne.s32.totalorder %s19_s22, %s1667_s28  ;;  %p1673_p5 = scmp.lt.s32.totalorder %s1667_s28, %s1667_s28 }
   0xa   :  { %p1674_p6 = por %p1673_p5, %p1672_p4 }
   0xc   :  { %p1675_p7 = pnand %p1674_p6, %p1668_p3 }
   0xe   :  { %1678 = shalt.err (!%p1675_p7)
}
   0xf   :  { %s1682_s29 = smov 64   ;;  %s1683_s30 = smov 4  }
  0x10   :  { %24 = dma.hbm_to_vmem [thread:$0]  %s2382_s0, 4096, %s19_s22, [#allocation3], %s1682_s29, %s1682_s29, %s1683_s30  }
  0x11   :  { %1679 = dma.done.wait [#allocation3], 4096  }
  0x12   :  { %1680 = vsyncadd [#allocation3], 4294963200  ;;  %v1624_v0 = vld [vmem:[%s2383_s1] sm:$0xff]   ;;  %vm267_vm0 = vcmask 130048   ;;  %v1626_v2 = vld [vmem:[#allocation2 + $0x8] sm:$0xff]   ;;  %vm909_vm1 = vcmask 60416  }
  0x13   :  { %v1625_v1 = vld [vmem:[#allocation2] sm:$0xff]   ;;  %1553 = vmatprep.subr.bf16.mxu0 %v1624_v0  ;;  %1619 = vmatprep.subr.bf16.mxu1 %v1624_v0  ;;  %v1627_v3 = vld [vmem:[#allocation2 + $0x10] sm:$0xff]   ;;  %v1628_v4 = vld [vmem:[#allocation2 + $0x18] sm:$0xff]   ;;  %vm974_vm2 = vcmask 64512  }
  0x14   :  { %1554 = vmatpush3.bf16.msra.mxu0 %v1624_v0  ;;  %1555 = vmatprep.mubr.msk.bf16.mxu0 %vm267_vm0, %v1625_v1  ;;  %v1629_v5 = vld [vmem:[#allocation2 + $0x20] sm:$0xff]   ;;  %v1630_v6 = vld [vmem:[#allocation2 + $0x28] sm:$0xff]   ;;  %v1631_v7 = vld [vmem:[#allocation2 + $0x30] sm:$0xff]  }
  0x15   :  { %1620 = vmatpush3.bf16.msra.mxu1 %v1624_v0  ;;  %v1641_v8 = vld [vmem:[#allocation2 + $0x80] sm:$0xff]   ;;  %v1642_v9 = vld [vmem:[#allocation2 + $0x88] sm:$0xff]   ;;  %v1643_v10 = vld [vmem:[#allocation2 + $0x90] sm:$0xff]  }
  0x16   :  { %1587 = vmatprep.mubr.msk.bf16.mxu1 %vm267_vm0, %v1641_v8  ;;  %v1644_v11 = vld [vmem:[#allocation2 + $0x98] sm:$0xff]   ;;  %v1645_v12 = vld [vmem:[#allocation2 + $0xa0] sm:$0xff]   ;;  %v1646_v15 = vld [vmem:[#allocation2 + $0xa8] sm:$0xff]  }
  0x17   :  { %1556 = vmatmul.mubr.msk.bf16.vlgmr.msra.gmra.mrb[0].mxu0 %vm267_vm0, %v1626_v2  ;;  %v1632_v13 = vld [vmem:[#allocation2 + $0x38] sm:$0xff]   ;;  %v1633_v14 = vld [vmem:[#allocation2 + $0x40] sm:$0xff]   ;;  %v1647_v16 = vld [vmem:[#allocation2 + $0xb0] sm:$0xff]  }
  0x18   :  { %1559 = vmatprep.mubr.msk.bf16.mxu0 %vm267_vm0, %v1627_v3  ;;  %1588 = vmatmul.mubr.msk.bf16.vlgmr.msra.gmra.mrb[0].mxu1 %vm267_vm0, %v1642_v9  ;;  %v1634_v17 = vld [vmem:[#allocation2 + $0x48] sm:$0xff]   ;;  %v1635_v18 = vld [vmem:[#allocation2 + $0x50] sm:$0xff]   ;;  %v1648_v19 = vld [vmem:[#allocation2 + $0xb8] sm:$0xff]  }
  0x19   :  { %1591 = vmatprep.mubr.msk.bf16.mxu1 %vm267_vm0, %v1643_v10  ;;  %v1649_v20 = vld [vmem:[#allocation2 + $0xc0] sm:$0xff]   ;;  %v1636_v21 = vld [vmem:[#allocation2 + $0x58] sm:$0xff]   ;;  %v1650_v23 = vld [vmem:[#allocation2 + $0xc8] sm:$0xff]  }
  0x1a   :  { %v1637_v22 = vld [vmem:[#allocation2 + $0x60] sm:$0xff]   ;;  %v1651_v24 = vld [vmem:[#allocation2 + $0xd0] sm:$0xff]   ;;  %v1638_v25 = vld [vmem:[#allocation2 + $0x68] sm:$0xff]  }
  0x1b   :  { %v1639_v26 = vld [vmem:[#allocation2 + $0x70] sm:$0xff]   ;;  %v1652_v27 = vld [vmem:[#allocation2 + $0xd8] sm:$0xff]   ;;  %v1653_v28 = vld [vmem:[#allocation2 + $0xe0] sm:$0xff]  }
  0x1c   :  { %v1640_v29 = vld [vmem:[#allocation2 + $0x78] sm:$0xff]   ;;  %v1654_v30 = vld [vmem:[#allocation2 + $0xe8] sm:$0xff]   ;;  %v1655_v31 = vld [vmem:[#allocation2 + $0xf0] sm:$0xff]  }
  0x1d   :  { %v1656_v32 = vld [vmem:[#allocation2 + $0xf8] sm:$0xff]  }
  0x1f   :  { %1560 = vmatmul.mubr.msk.bf16.gmra.mrb[4].mxu0 %vm267_vm0, %v1628_v4 }
  0x20   :  { %1563 = vmatprep.mubr.msk.bf16.mxu0 %vm267_vm0, %v1629_v5  ;;  %1592 = vmatmul.mubr.msk.bf16.gmra.mrb[4].mxu1 %vm267_vm0, %v1644_v11 }
  0x21   :  { %1595 = vmatprep.mubr.msk.bf16.mxu1 %vm267_vm0, %v1645_v12 }
  0x27   :  { %1564 = vmatmul.mubr.msk.bf16.gmra.mrb[8].mxu0 %vm267_vm0, %v1630_v6 }
  0x28   :  { %1567 = vmatprep.mubr.msk.bf16.mxu0 %vm267_vm0, %v1631_v7  ;;  %1596 = vmatmul.mubr.msk.bf16.gmra.mrb[8].mxu1 %vm267_vm0, %v1646_v15 }
  0x29   :  { %1599 = vmatprep.mubr.msk.bf16.mxu1 %vm267_vm0, %v1647_v16 }
  0x2f   :  { %1568 = vmatmul.mubr.msk.bf16.gmra.mrb[12].mxu0 %vm267_vm0, %v1632_v13 }
  0x30   :  { %1571 = vmatprep.mubr.msk.bf16.mxu0 %vm267_vm0, %v1633_v14  ;;  %1600 = vmatmul.mubr.msk.bf16.gmra.mrb[12].mxu1 %vm267_vm0, %v1648_v19 }
  0x31   :  { %1603 = vmatprep.mubr.msk.bf16.mxu1 %vm267_vm0, %v1649_v20 }
  0x37   :  { %1572 = vmatmul.mubr.msk.bf16.gmra.mrb[16].mxu0 %vm267_vm0, %v1634_v17 }
  0x38   :  { %1575 = vmatprep.mubr.msk.bf16.mxu0 %vm267_vm0, %v1635_v18  ;;  %1604 = vmatmul.mubr.msk.bf16.gmra.mrb[16].mxu1 %vm267_vm0, %v1650_v23 }
  0x39   :  { %1607 = vmatprep.mubr.msk.bf16.mxu1 %vm267_vm0, %v1651_v24 }
  0x3f   :  { %1576 = vmatmul.mubr.msk.bf16.gmra.mrb[20].mxu0 %vm267_vm0, %v1636_v21 }
  0x40   :  { %1579 = vmatprep.mubr.msk.bf16.mxu0 %vm267_vm0, %v1637_v22  ;;  %1608 = vmatmul.mubr.msk.bf16.gmra.mrb[20].mxu1 %vm267_vm0, %v1652_v27 }
  0x41   :  { %1611 = vmatprep.mubr.msk.bf16.mxu1 %vm267_vm0, %v1653_v28 }
  0x47   :  { %1580 = vmatmul.mubr.msk.bf16.gmra.mrb[24].mxu0 %vm267_vm0, %v1638_v25 }
  0x48   :  { %1583 = vmatprep.mubr.msk.bf16.mxu0 %vm267_vm0, %v1639_v26  ;;  %1612 = vmatmul.mubr.msk.bf16.gmra.mrb[24].mxu1 %vm267_vm0, %v1654_v30 }
  0x49   :  { %1615 = vmatprep.mubr.msk.bf16.mxu1 %vm267_vm0, %v1655_v31 }
  0x4f   :  { %1584 = vmatmul.mubr.msk.bf16.gmra.mrb[28].mxu0 %vm267_vm0, %v1640_v29 }
  0x50   :  { %1616 = vmatmul.mubr.msk.bf16.gmra.mrb[28].mxu1 %vm267_vm0, %v1656_v32 }
  0xea   :  { %v1557_v33 = vpop.f32.mrb[0].mxu0 }
  0xeb   :  { %v1458_v34 = vpack.c.bf16 %v1557_v33, %v1557_v33  ;;  %v398_v35 = vpop.f32.mrb[1].mxu0  ;;  %v1110_v39 = vmul.f32 %v1557_v33, %v1557_v33  ;;  %v978_v48 = vsel %vm974_vm2, %v1557_v33, 0.0  ;;  %v1809_v12 = vpop.f32.mrb[0].mxu1 }
  0xec   :  { %v1456_v36 = vpack.c.bf16 %v398_v35, %v398_v35  ;;  %v1108_v37 = vmul.f32 %v398_v35, %v398_v35  ;;  %v1558_v38 = vpop.f32.mrb[2].mxu0  ;;  %v975_v42 = vsel %vm974_vm2, %v398_v35, 0.0  ;;  %v1490_v16 = vpack.c.bf16 %v1809_v12, %v1809_v12  ;;  %v1815_v17 = vpop.f32.mrb[1].mxu1 }
  0xed   :  { %912 = vst.msk [vmem:[%s2386_s4 + $0x8] sm:$0xf] %vm909_vm1, %v1458_v34  ;;  %v1459_v40 = vpack.c.bf16 %v1558_v38, %v1558_v38  ;;  %v401_v41 = vpop.f32.mrb[3].mxu0  ;;  %v1111_v46 = vmul.f32 %v1558_v38, %v1558_v38  ;;  %v1175_v53 = vsel %vm974_vm2, %v1110_v39, 0.0  ;;  %v980_v55 = vsel %vm974_vm2, %v1558_v38, 0.0  ;;  %v1819_v22 = vpop.f32.mrb[2].mxu1 }
  0xee   :  { %910 = vst.msk [vmem:[%s2386_s4] sm:$0xf] %vm909_vm1, %v1456_v36  ;;  %v1457_v43 = vpack.c.bf16 %v401_v41, %v401_v41  ;;  %v976_v44 = vsel %vm974_vm2, %v401_v41, 0.0  ;;  %v1109_v45 = vmul.f32 %v401_v41, %v401_v41  ;;  %v1172_v49 = vsel %vm974_vm2, %v1108_v37, 0.0  ;;  %944 = vst.msk [vmem:[%s2386_s4 + $0x88] sm:$0xf] %vm909_vm1, %v1490_v16 }
  0xef   :  { %913 = vst.msk [vmem:[%s2386_s4 + $0xc] sm:$0xf] %vm909_vm1, %v1459_v40  ;;  %v977_v47 = vadd.f32 %v976_v44, %v975_v42  ;;  %v1177_v56 = vsel %vm974_vm2, %v1111_v46, 0.0  ;;  %v1488_v21 = vpack.c.bf16 %v1815_v17, %v1815_v17  ;;  %v1827_v27 = vpop.f32.mrb[3].mxu1  ;;  %v1491_v46 = vpack.c.bf16 %v1819_v22, %v1819_v22 }
  0xf0   :  { %911 = vst.msk [vmem:[%s2386_s4 + $0x4] sm:$0xf] %vm909_vm1, %v1457_v43  ;;  %v1173_v50 = vsel %vm974_vm2, %v1109_v45, 0.0 }
  0xf1   :  { %v979_v51 = vadd.f32 %v978_v48, %v977_v47  ;;  %v1174_v52 = vadd.f32 %v1173_v50, %v1172_v49  ;;  %942 = vst.msk [vmem:[%s2386_s4 + $0x80] sm:$0xf] %vm909_vm1, %v1488_v21  ;;  %945 = vst.msk [vmem:[%s2386_s4 + $0x8c] sm:$0xf] %vm909_vm1, %v1491_v46 }
  0xf2   :  { %v1561_v54 = vpop.f32.mrb[4].mxu0 }
  0xf3   :  { %v1176_v57 = vadd.f32 %v1175_v53, %v1174_v52  ;;  %v1462_v58 = vpack.c.bf16 %v1561_v54, %v1561_v54  ;;  %v414_v59 = vpop.f32.mrb[5].mxu0  ;;  %v981_v61 = vadd.f32 %v980_v55, %v979_v51  ;;  %v1114_v7 = vmul.f32 %v1561_v54, %v1561_v54  ;;  %v1855_v47 = vpop.f32.mrb[4].mxu1 }
  0xf4   :  { %v1460_v60 = vpack.c.bf16 %v414_v59, %v414_v59  ;;  %v982_v62 = vsel %vm974_vm2, %v414_v59, 0.0  ;;  %v1112_v63 = vmul.f32 %v414_v59, %v414_v59  ;;  %v1562_v0 = vpop.f32.mrb[6].mxu0  ;;  %v986_v13 = vsel %vm974_vm2, %v1561_v54, 0.0  ;;  %v1859_v51 = vpop.f32.mrb[5].mxu1 }
  0xf5   :  { %916 = vst.msk [vmem:[%s2386_s4 + $0x18] sm:$0xf] %vm909_vm1, %v1462_v58  ;;  %v1178_v1 = vadd.f32 %v1177_v56, %v1176_v57  ;;  %v1463_v2 = vpack.c.bf16 %v1562_v0, %v1562_v0  ;;  %v417_v3 = vpop.f32.mrb[7].mxu0  ;;  %v983_v4 = vadd.f32 %v982_v62, %v981_v61  ;;  %v1115_v14 = vmul.f32 %v1562_v0, %v1562_v0  ;;  %v1867_v56 = vpop.f32.mrb[6].mxu1 }
  0xf6   :  { %914 = vst.msk [vmem:[%s2386_s4 + $0x10] sm:$0xf] %vm909_vm1, %v1460_v60  ;;  %v1179_v5 = vsel %vm974_vm2, %v1112_v63, 0.0  ;;  %v1461_v6 = vpack.c.bf16 %v417_v3, %v417_v3  ;;  %v984_v9 = vsel %vm974_vm2, %v417_v3, 0.0  ;;  %v1113_v10 = vmul.f32 %v417_v3, %v417_v3  ;;  %v1871_v61 = vpop.f32.mrb[7].mxu1 }
  0xf7   :  { %v1180_v8 = vadd.f32 %v1179_v5, %v1178_v1  ;;  %917 = vst.msk [vmem:[%s2386_s4 + $0x1c] sm:$0xf] %vm909_vm1, %v1463_v2  ;;  %v985_v11 = vadd.f32 %v984_v9, %v983_v4  ;;  %v1183_v23 = vsel %vm974_vm2, %v1114_v7, 0.0  ;;  %v988_v24 = vsel %vm974_vm2, %v1562_v0, 0.0 }
  0xf8   :  { %915 = vst.msk [vmem:[%s2386_s4 + $0x14] sm:$0xf] %vm909_vm1, %v1461_v6  ;;  %v1181_v15 = vsel %vm974_vm2, %v1113_v10, 0.0  ;;  %v1185_v33 = vsel %vm974_vm2, %v1115_v14, 0.0  ;;  %v1489_v55 = vpack.c.bf16 %v1827_v27, %v1827_v27 }
  0xf9   :  { %v987_v18 = vadd.f32 %v986_v13, %v985_v11  ;;  %v1182_v19 = vadd.f32 %v1181_v15, %v1180_v8 }
  0xfa   :  { %v1565_v20 = vpop.f32.mrb[8].mxu0  ;;  %943 = vst.msk [vmem:[%s2386_s4 + $0x84] sm:$0xf] %vm909_vm1, %v1489_v55 }
  0xfb   :  { %v1466_v25 = vpack.c.bf16 %v1565_v20, %v1565_v20  ;;  %v430_v26 = vpop.f32.mrb[9].mxu0  ;;  %v1184_v28 = vadd.f32 %v1183_v23, %v1182_v19  ;;  %v989_v30 = vadd.f32 %v988_v24, %v987_v18  ;;  %v1118_v40 = vmul.f32 %v1565_v20, %v1565_v20  ;;  %v1899_v19 = vpop.f32.mrb[8].mxu1 }
  0xfc   :  { %v1464_v29 = vpack.c.bf16 %v430_v26, %v430_v26  ;;  %v990_v31 = vsel %vm974_vm2, %v430_v26, 0.0  ;;  %v1566_v32 = vpop.f32.mrb[10].mxu0  ;;  %v1116_v34 = vmul.f32 %v430_v26, %v430_v26  ;;  %v994_v48 = vsel %vm974_vm2, %v1565_v20, 0.0  ;;  %v1903_v24 = vpop.f32.mrb[9].mxu1 }
  0xfd   :  { %920 = vst.msk [vmem:[%s2386_s4 + $0x28] sm:$0xf] %vm909_vm1, %v1466_v25  ;;  %v1467_v35 = vpack.c.bf16 %v1566_v32, %v1566_v32  ;;  %v433_v36 = vpop.f32.mrb[11].mxu0  ;;  %v991_v37 = vadd.f32 %v990_v31, %v989_v30  ;;  %v1186_v38 = vadd.f32 %v1185_v33, %v1184_v28  ;;  %v1119_v49 = vmul.f32 %v1566_v32, %v1566_v32  ;;  %v1911_v30 = vpop.f32.mrb[10].mxu1 }
  0xfe   :  { %918 = vst.msk [vmem:[%s2386_s4 + $0x20] sm:$0xf] %vm909_vm1, %v1464_v29  ;;  %v1465_v39 = vpack.c.bf16 %v433_v36, %v433_v36  ;;  %v1187_v41 = vsel %vm974_vm2, %v1116_v34, 0.0  ;;  %v992_v42 = vsel %vm974_vm2, %v433_v36, 0.0  ;;  %v1117_v43 = vmul.f32 %v433_v36, %v433_v36 }
  0xff   :  { %921 = vst.msk [vmem:[%s2386_s4 + $0x2c] sm:$0xf] %vm909_vm1, %v1467_v35  ;;  %v1188_v44 = vadd.f32 %v1187_v41, %v1186_v38  ;;  %v993_v45 = vadd.f32 %v992_v42, %v991_v37  ;;  %v1191_v57 = vsel %vm974_vm2, %v1118_v40, 0.0  ;;  %v996_v58 = vsel %vm974_vm2, %v1566_v32, 0.0  ;;  %v1915_v35 = vpop.f32.mrb[11].mxu1 }
 0x100   :  { %919 = vst.msk [vmem:[%s2386_s4 + $0x24] sm:$0xf] %vm909_vm1, %v1465_v39  ;;  %v1189_v50 = vsel %vm974_vm2, %v1117_v43, 0.0  ;;  %v1193_v3 = vsel %vm974_vm2, %v1119_v49, 0.0  ;;  %v1494_v18 = vpack.c.bf16 %v1855_v47, %v1855_v47  ;;  %v1492_v29 = vpack.c.bf16 %v1859_v51, %v1859_v51 }
 0x101   :  { %v995_v52 = vadd.f32 %v994_v48, %v993_v45  ;;  %v1190_v53 = vadd.f32 %v1189_v50, %v1188_v44 }
 0x102   :  { %v1569_v54 = vpop.f32.mrb[12].mxu0  ;;  %948 = vst.msk [vmem:[%s2386_s4 + $0x98] sm:$0xf] %vm909_vm1, %v1494_v18  ;;  %946 = vst.msk [vmem:[%s2386_s4 + $0x90] sm:$0xf] %vm909_vm1, %v1492_v29 }
 0x103   :  { %v1470_v59 = vpack.c.bf16 %v1569_v54, %v1569_v54  ;;  %v446_v60 = vpop.f32.mrb[13].mxu0  ;;  %v1192_v62 = vadd.f32 %v1191_v57, %v1190_v53  ;;  %v997_v0 = vadd.f32 %v996_v58, %v995_v52  ;;  %v1122_v10 = vmul.f32 %v1569_v54, %v1569_v54  ;;  %v1943_v58 = vpop.f32.mrb[12].mxu1 }
 0x104   :  { %v1468_v63 = vpack.c.bf16 %v446_v60, %v446_v60  ;;  %v998_v1 = vsel %vm974_vm2, %v446_v60, 0.0  ;;  %v1570_v2 = vpop.f32.mrb[14].mxu0  ;;  %v1120_v4 = vmul.f32 %v446_v60, %v446_v60  ;;  %v1002_v20 = vsel %vm974_vm2, %v1569_v54, 0.0 }
 0x105   :  { %924 = vst.msk [vmem:[%s2386_s4 + $0x38] sm:$0xf] %vm909_vm1, %v1470_v59  ;;  %v1471_v5 = vpack.c.bf16 %v1570_v2, %v1570_v2  ;;  %v449_v6 = vpop.f32.mrb[15].mxu0  ;;  %v999_v7 = vadd.f32 %v998_v1, %v997_v0  ;;  %v1194_v8 = vadd.f32 %v1193_v3, %v1192_v62  ;;  %v1123_v21 = vmul.f32 %v1570_v2, %v1570_v2 }
 0x106   :  { %922 = vst.msk [vmem:[%s2386_s4 + $0x30] sm:$0xf] %vm909_vm1, %v1468_v63  ;;  %v1469_v9 = vpack.c.bf16 %v449_v6, %v449_v6  ;;  %v1195_v11 = vsel %vm974_vm2, %v1120_v4, 0.0  ;;  %v1000_v13 = vsel %vm974_vm2, %v449_v6, 0.0  ;;  %v1121_v14 = vmul.f32 %v449_v6, %v449_v6  ;;  %v1947_v63 = vpop.f32.mrb[13].mxu1 }
 0x107   :  { %925 = vst.msk [vmem:[%s2386_s4 + $0x3c] sm:$0xf] %vm909_vm1, %v1471_v5  ;;  %v1196_v15 = vadd.f32 %v1195_v11, %v1194_v8  ;;  %v1001_v16 = vadd.f32 %v1000_v13, %v999_v7  ;;  %v1199_v31 = vsel %vm974_vm2, %v1122_v10, 0.0  ;;  %v1004_v32 = vsel %vm974_vm2, %v1570_v2, 0.0  ;;  %v1955_v4 = vpop.f32.mrb[14].mxu1 }
 0x108   :  { %923 = vst.msk [vmem:[%s2386_s4 + $0x34] sm:$0xf] %vm909_vm1, %v1469_v9  ;;  %v1197_v23 = vsel %vm974_vm2, %v1121_v14, 0.0  ;;  %v1201_v41 = vsel %vm974_vm2, %v1123_v21, 0.0  ;;  %v1495_v57 = vpack.c.bf16 %v1867_v56, %v1867_v56  ;;  %v1493_v3 = vpack.c.bf16 %v1871_v61, %v1871_v61  ;;  %v1959_v9 = vpop.f32.mrb[15].mxu1 }
 0x109   :  { %v1003_v25 = vadd.f32 %v1002_v20, %v1001_v16  ;;  %v1198_v26 = vadd.f32 %v1197_v23, %v1196_v15 }
 0x10a   :  { %v1573_v28 = vpop.f32.mrb[16].mxu0  ;;  %949 = vst.msk [vmem:[%s2386_s4 + $0x9c] sm:$0xf] %vm909_vm1, %v1495_v57  ;;  %947 = vst.msk [vmem:[%s2386_s4 + $0x94] sm:$0xf] %vm909_vm1, %v1493_v3 }
 0x10b   :  { %v1474_v33 = vpack.c.bf16 %v1573_v28, %v1573_v28  ;;  %v462_v34 = vpop.f32.mrb[17].mxu0  ;;  %v1200_v36 = vadd.f32 %v1199_v31, %v1198_v26  ;;  %v1005_v38 = vadd.f32 %v1004_v32, %v1003_v25  ;;  %v1126_v49 = vmul.f32 %v1573_v28, %v1573_v28 }
 0x10c   :  { %v1472_v37 = vpack.c.bf16 %v462_v34, %v462_v34  ;;  %v1006_v39 = vsel %vm974_vm2, %v462_v34, 0.0  ;;  %v1574_v40 = vpop.f32.mrb[18].mxu0  ;;  %v1124_v42 = vmul.f32 %v462_v34, %v462_v34  ;;  %v1010_v59 = vsel %vm974_vm2, %v1573_v28, 0.0 }
 0x10d   :  { %928 = vst.msk [vmem:[%s2386_s4 + $0x48] sm:$0xf] %vm909_vm1, %v1474_v33  ;;  %v1475_v43 = vpack.c.bf16 %v1574_v40, %v1574_v40  ;;  %v465_v44 = vpop.f32.mrb[19].mxu0  ;;  %v1007_v45 = vadd.f32 %v1006_v39, %v1005_v38  ;;  %v1202_v46 = vadd.f32 %v1201_v41, %v1200_v36  ;;  %v1127_v60 = vmul.f32 %v1574_v40, %v1574_v40 }
 0x10e   :  { %926 = vst.msk [vmem:[%s2386_s4 + $0x40] sm:$0xf] %vm909_vm1, %v1472_v37  ;;  %v1473_v48 = vpack.c.bf16 %v465_v44, %v465_v44  ;;  %v1203_v50 = vsel %vm974_vm2, %v1124_v42, 0.0  ;;  %v1008_v52 = vsel %vm974_vm2, %v465_v44, 0.0  ;;  %v1125_v53 = vmul.f32 %v465_v44, %v465_v44  ;;  %v1987_v37 = vpop.f32.mrb[16].mxu1 }
 0x10f   :  { %929 = vst.msk [vmem:[%s2386_s4 + $0x4c] sm:$0xf] %vm909_vm1, %v1475_v43  ;;  %v1204_v54 = vadd.f32 %v1203_v50, %v1202_v46  ;;  %v1009_v55 = vadd.f32 %v1008_v52, %v1007_v45  ;;  %v1207_v5 = vsel %vm974_vm2, %v1126_v49, 0.0  ;;  %v1012_v6 = vsel %vm974_vm2, %v1574_v40, 0.0  ;;  %v1991_v41 = vpop.f32.mrb[17].mxu1 }
 0x110   :  { %927 = vst.msk [vmem:[%s2386_s4 + $0x44] sm:$0xf] %vm909_vm1, %v1473_v48  ;;  %v1205_v62 = vsel %vm974_vm2, %v1125_v53, 0.0  ;;  %v1209_v16 = vsel %vm974_vm2, %v1127_v60, 0.0  ;;  %v1498_v36 = vpack.c.bf16 %v1899_v19, %v1899_v19  ;;  %v1496_v45 = vpack.c.bf16 %v1903_v24, %v1903_v24  ;;  %v1999_v46 = vpop.f32.mrb[18].mxu1 }
 0x111   :  { %v1011_v0 = vadd.f32 %v1010_v59, %v1009_v55  ;;  %v1206_v1 = vadd.f32 %v1205_v62, %v1204_v54  ;;  %v2003_v53 = vpop.f32.mrb[19].mxu1 }
 0x112   :  { %v1577_v2 = vpop.f32.mrb[20].mxu0  ;;  %952 = vst.msk [vmem:[%s2386_s4 + $0xa8] sm:$0xf] %vm909_vm1, %v1498_v36  ;;  %950 = vst.msk [vmem:[%s2386_s4 + $0xa0] sm:$0xf] %vm909_vm1, %v1496_v45 }
 0x113   :  { %v1478_v7 = vpack.c.bf16 %v1577_v2, %v1577_v2  ;;  %v478_v8 = vpop.f32.mrb[21].mxu0  ;;  %v1208_v10 = vadd.f32 %v1207_v5, %v1206_v1  ;;  %v1013_v13 = vadd.f32 %v1012_v6, %v1011_v0  ;;  %v1130_v28 = vmul.f32 %v1577_v2, %v1577_v2 }
 0x114   :  { %v1476_v11 = vpack.c.bf16 %v478_v8, %v478_v8  ;;  %v1014_v14 = vsel %vm974_vm2, %v478_v8, 0.0  ;;  %v1578_v15 = vpop.f32.mrb[22].mxu0  ;;  %v1128_v18 = vmul.f32 %v478_v8, %v478_v8  ;;  %v1018_v38 = vsel %vm974_vm2, %v1577_v2, 0.0 }
 0x115   :  { %932 = vst.msk [vmem:[%s2386_s4 + $0x58] sm:$0xf] %vm909_vm1, %v1478_v7  ;;  %v1479_v20 = vpack.c.bf16 %v1578_v15, %v1578_v15  ;;  %v481_v21 = vpop.f32.mrb[23].mxu0  ;;  %v1015_v23 = vadd.f32 %v1014_v14, %v1013_v13  ;;  %v1210_v25 = vadd.f32 %v1209_v16, %v1208_v10  ;;  %v1131_v39 = vmul.f32 %v1578_v15, %v1578_v15  ;;  %v2031_v16 = vpop.f32.mrb[20].mxu1 }
 0x116   :  { %930 = vst.msk [vmem:[%s2386_s4 + $0x50] sm:$0xf] %vm909_vm1, %v1476_v11  ;;  %v1477_v26 = vpack.c.bf16 %v481_v21, %v481_v21  ;;  %v1211_v29 = vsel %vm974_vm2, %v1128_v18, 0.0  ;;  %v1016_v31 = vsel %vm974_vm2, %v481_v21, 0.0  ;;  %v1129_v32 = vmul.f32 %v481_v21, %v481_v21 }
 0x117   :  { %933 = vst.msk [vmem:[%s2386_s4 + $0x5c] sm:$0xf] %vm909_vm1, %v1479_v20  ;;  %v1212_v33 = vadd.f32 %v1211_v29, %v1210_v25  ;;  %v1017_v34 = vadd.f32 %v1016_v31, %v1015_v23  ;;  %v1215_v48 = vsel %vm974_vm2, %v1130_v28, 0.0  ;;  %v1020_v49 = vsel %vm974_vm2, %v1578_v15, 0.0  ;;  %v2035_v23 = vpop.f32.mrb[21].mxu1 }
 0x118   :  { %931 = vst.msk [vmem:[%s2386_s4 + $0x54] sm:$0xf] %vm909_vm1, %v1477_v26  ;;  %v1213_v40 = vsel %vm974_vm2, %v1129_v32, 0.0  ;;  %v1217_v62 = vsel %vm974_vm2, %v1131_v39, 0.0  ;;  %v1499_v15 = vpack.c.bf16 %v1911_v30, %v1911_v30  ;;  %v1497_v29 = vpack.c.bf16 %v1915_v35, %v1915_v35  ;;  %v2043_v31 = vpop.f32.mrb[22].mxu1 }
 0x119   :  { %v1019_v42 = vadd.f32 %v1018_v38, %v1017_v34  ;;  %v1214_v43 = vadd.f32 %v1213_v40, %v1212_v33  ;;  %v2047_v38 = vpop.f32.mrb[23].mxu1 }
 0x11a   :  { %v1581_v44 = vpop.f32.mrb[24].mxu0  ;;  %953 = vst.msk [vmem:[%s2386_s4 + $0xac] sm:$0xf] %vm909_vm1, %v1499_v15  ;;  %951 = vst.msk [vmem:[%s2386_s4 + $0xa4] sm:$0xf] %vm909_vm1, %v1497_v29 }
 0x11b   :  { %v1482_v50 = vpack.c.bf16 %v1581_v44, %v1581_v44  ;;  %v494_v52 = vpop.f32.mrb[25].mxu0  ;;  %v1216_v54 = vadd.f32 %v1215_v48, %v1214_v43  ;;  %v1021_v57 = vadd.f32 %v1020_v49, %v1019_v42  ;;  %v1134_v7 = vmul.f32 %v1581_v44, %v1581_v44 }
 0x11c   :  { %v1480_v55 = vpack.c.bf16 %v494_v52, %v494_v52  ;;  %v1022_v59 = vsel %vm974_vm2, %v494_v52, 0.0  ;;  %v1582_v60 = vpop.f32.mrb[26].mxu0  ;;  %v1132_v0 = vmul.f32 %v494_v52, %v494_v52  ;;  %v1026_v18 = vsel %vm974_vm2, %v1581_v44, 0.0 }
 0x11d   :  { %936 = vst.msk [vmem:[%s2386_s4 + $0x68] sm:$0xf] %vm909_vm1, %v1482_v50  ;;  %v1483_v1 = vpack.c.bf16 %v1582_v60, %v1582_v60  ;;  %v497_v2 = vpop.f32.mrb[27].mxu0  ;;  %v1023_v3 = vadd.f32 %v1022_v59, %v1021_v57  ;;  %v1218_v5 = vadd.f32 %v1217_v62, %v1216_v54  ;;  %v1135_v20 = vmul.f32 %v1582_v60, %v1582_v60 }
 0x11e   :  { %934 = vst.msk [vmem:[%s2386_s4 + $0x60] sm:$0xf] %vm909_vm1, %v1480_v55  ;;  %v1481_v6 = vpack.c.bf16 %v497_v2, %v497_v2  ;;  %v1219_v8 = vsel %vm974_vm2, %v1132_v0, 0.0  ;;  %v1024_v10 = vsel %vm974_vm2, %v497_v2, 0.0  ;;  %v1133_v11 = vmul.f32 %v497_v2, %v497_v2 }
 0x11f   :  { %937 = vst.msk [vmem:[%s2386_s4 + $0x6c] sm:$0xf] %vm909_vm1, %v1483_v1  ;;  %v1220_v13 = vadd.f32 %v1219_v8, %v1218_v5  ;;  %v1025_v14 = vadd.f32 %v1024_v10, %v1023_v3  ;;  %v1223_v32 = vsel %vm974_vm2, %v1134_v7, 0.0  ;;  %v1028_v33 = vsel %vm974_vm2, %v1582_v60, 0.0  ;;  %v2075_v3 = vpop.f32.mrb[24].mxu1 }
 0x120   :  { %935 = vst.msk [vmem:[%s2386_s4 + $0x64] sm:$0xf] %vm909_vm1, %v1481_v6  ;;  %v1221_v21 = vsel %vm974_vm2, %v1133_v11, 0.0  ;;  %v1225_v45 = vsel %vm974_vm2, %v1135_v20, 0.0  ;;  %v1502_v2 = vpack.c.bf16 %v1943_v58, %v1943_v58  ;;  %v1140_v8 = vmul.f32 %v1815_v17, %v1815_v17  ;;  %v2081_v10 = vpop.f32.mrb[25].mxu1 }
 0x121   :  { %v1027_v25 = vadd.f32 %v1026_v18, %v1025_v14  ;;  %v1222_v26 = vadd.f32 %v1221_v21, %v1220_v13  ;;  %v1500_v14 = vpack.c.bf16 %v1947_v63, %v1947_v63  ;;  %v2089_v15 = vpop.f32.mrb[26].mxu1  ;;  %v1038_v21 = vsel %vm974_vm2, %v1815_v17, 0.0 }
 0x122   :  { %v1585_v28 = vpop.f32.mrb[28].mxu0  ;;  %956 = vst.msk [vmem:[%s2386_s4 + $0xb8] sm:$0xf] %vm909_vm1, %v1502_v2  ;;  %v1141_v17 = vmul.f32 %v1827_v27, %v1827_v27  ;;  %v1046_v2 = vsel %vm974_vm2, %v1859_v51, 0.0 }
 0x123   :  { %v1486_v34 = vpack.c.bf16 %v1585_v28, %v1585_v28  ;;  %v510_v36 = vpop.f32.mrb[29].mxu0  ;;  %v1224_v39 = vadd.f32 %v1223_v32, %v1222_v26  ;;  %v1029_v42 = vadd.f32 %v1028_v33, %v1027_v25  ;;  %v1138_v57 = vmul.f32 %v1585_v28, %v1585_v28  ;;  %v2097_v26 = vpop.f32.mrb[27].mxu1  ;;  %954 = vst.msk [vmem:[%s2386_s4 + $0xb0] sm:$0xf] %vm909_vm1, %v1500_v14 }
 0x124   :  { %v1484_v40 = vpack.c.bf16 %v510_v36, %v510_v36  ;;  %v1030_v43 = vsel %vm974_vm2, %v510_v36, 0.0  ;;  %v1586_v44 = vpop.f32.mrb[30].mxu0  ;;  %v1136_v48 = vmul.f32 %v510_v36, %v510_v36  ;;  %v1034_v5 = vsel %vm974_vm2, %v1585_v28, 0.0 }
 0x125   :  { %940 = vst.msk [vmem:[%s2386_s4 + $0x78] sm:$0xf] %vm909_vm1, %v1486_v34  ;;  %v1487_v49 = vpack.c.bf16 %v1586_v44, %v1586_v44  ;;  %v513_v50 = vpop.f32.mrb[31].mxu0  ;;  %v1031_v52 = vadd.f32 %v1030_v43, %v1029_v42  ;;  %v1226_v54 = vadd.f32 %v1225_v45, %v1224_v39  ;;  %v1139_v6 = vmul.f32 %v1586_v44, %v1586_v44 }
 0x126   :  { %938 = vst.msk [vmem:[%s2386_s4 + $0x70] sm:$0xf] %vm909_vm1, %v1484_v40  ;;  %v1485_v55 = vpack.c.bf16 %v513_v50, %v513_v50  ;;  %v1227_v59 = vsel %vm974_vm2, %v1136_v48, 0.0  ;;  %v1032_v60 = vsel %vm974_vm2, %v513_v50, 0.0  ;;  %v1137_v62 = vmul.f32 %v513_v50, %v513_v50 }
 0x127   :  { %941 = vst.msk [vmem:[%s2386_s4 + $0x7c] sm:$0xf] %vm909_vm1, %v1487_v49  ;;  %v1228_v0 = vadd.f32 %v1227_v59, %v1226_v54  ;;  %v1033_v1 = vadd.f32 %v1032_v60, %v1031_v52  ;;  %v1231_v18 = vsel %vm974_vm2, %v1138_v57, 0.0  ;;  %v1036_v20 = vsel %vm974_vm2, %v1586_v44, 0.0  ;;  %v2133_v52 = vpop.f32.mrb[28].mxu1 }
 0x128   :  { %939 = vst.msk [vmem:[%s2386_s4 + $0x74] sm:$0xf] %vm909_vm1, %v1485_v55  ;;  %v1229_v7 = vsel %vm974_vm2, %v1137_v62, 0.0  ;;  %v1503_v25 = vpack.c.bf16 %v1955_v4, %v1955_v4  ;;  %v1501_v32 = vpack.c.bf16 %v1959_v9, %v1959_v9  ;;  %v1233_v33 = vsel %vm974_vm2, %v1139_v6, 0.0  ;;  %v2146_v57 = vpop.f32.mrb[29].mxu1 }
 0x129   :  { %v1035_v11 = vadd.f32 %v1034_v5, %v1033_v1  ;;  %v1230_v13 = vadd.f32 %v1229_v7, %v1228_v0  ;;  %v1235_v34 = vsel %vm974_vm2, %v1140_v8, 0.0  ;;  %v1506_v36 = vpack.c.bf16 %v1987_v37, %v1987_v37  ;;  %v2152_v62 = vpop.f32.mrb[30].mxu1 }
 0x12a   :  { %957 = vst.msk [vmem:[%s2386_s4 + $0xbc] sm:$0xf] %vm909_vm1, %v1503_v25  ;;  %955 = vst.msk [vmem:[%s2386_s4 + $0xb4] sm:$0xf] %vm909_vm1, %v1501_v32  ;;  %v1142_v42 = vmul.f32 %v1809_v12, %v1809_v12  ;;  %v1040_v43 = vsel %vm974_vm2, %v1827_v27, 0.0  ;;  %v1504_v44 = vpack.c.bf16 %v1991_v41, %v1991_v41  ;;  %v1042_v45 = vsel %vm974_vm2, %v1809_v12, 0.0 }
 0x12b   :  { %v1232_v28 = vadd.f32 %v1231_v18, %v1230_v13  ;;  %v1037_v29 = vadd.f32 %v1036_v20, %v1035_v11  ;;  %960 = vst.msk [vmem:[%s2386_s4 + $0xc8] sm:$0xf] %vm909_vm1, %v1506_v36  ;;  %v1507_v50 = vpack.c.bf16 %v1999_v46, %v1999_v46  ;;  %v1143_v27 = vmul.f32 %v1819_v22, %v1819_v22  ;;  %v2165_v6 = vpop.f32.mrb[31].mxu1 }
 0x12c   :  { %v1237_v54 = vsel %vm974_vm2, %v1141_v17, 0.0  ;;  %v1144_v55 = vmul.f32 %v1859_v51, %v1859_v51  ;;  %958 = vst.msk [vmem:[%s2386_s4 + $0xc0] sm:$0xf] %vm909_vm1, %v1504_v44  ;;  %v1505_v12 = vpack.c.bf16 %v2003_v53, %v2003_v53  ;;  %v1239_v0 = vsel %vm974_vm2, %v1142_v42, 0.0 }
 0x12d   :  { %v1039_v39 = vadd.f32 %v1038_v21, %v1037_v29  ;;  %v1234_v40 = vadd.f32 %v1233_v33, %v1232_v28  ;;  %961 = vst.msk [vmem:[%s2386_s4 + $0xcc] sm:$0xf] %vm909_vm1, %v1507_v50  ;;  %v1044_v1 = vsel %vm974_vm2, %v1819_v22, 0.0  ;;  %v1510_v5 = vpack.c.bf16 %v2031_v16, %v2031_v16 }
 0x12e   :  { %959 = vst.msk [vmem:[%s2386_s4 + $0xc4] sm:$0xf] %vm909_vm1, %v1505_v12  ;;  %v1508_v11 = vpack.c.bf16 %v2035_v23, %v2035_v23  ;;  %v1241_v22 = vsel %vm974_vm2, %v1143_v27, 0.0  ;;  %v1243_v13 = vsel %vm974_vm2, %v1144_v55, 0.0  ;;  %v1145_v51 = vmul.f32 %v1871_v61, %v1871_v61 }
 0x12f   :  { %v1236_v48 = vadd.f32 %v1235_v34, %v1234_v40  ;;  %v1041_v49 = vadd.f32 %v1040_v43, %v1039_v39  ;;  %964 = vst.msk [vmem:[%s2386_s4 + $0xd8] sm:$0xf] %vm909_vm1, %v1510_v5  ;;  %v1511_v14 = vpack.c.bf16 %v2043_v31, %v2043_v31  ;;  %v1146_v21 = vmul.f32 %v1855_v47, %v1855_v47 }
 0x130   :  { %962 = vst.msk [vmem:[%s2386_s4 + $0xd0] sm:$0xf] %vm909_vm1, %v1508_v11  ;;  %v1048_v25 = vsel %vm974_vm2, %v1871_v61, 0.0  ;;  %v1509_v28 = vpack.c.bf16 %v2047_v38, %v2047_v38  ;;  %v1050_v29 = vsel %vm974_vm2, %v1855_v47, 0.0  ;;  %v1514_v34 = vpack.c.bf16 %v2075_v3, %v2075_v3 }
 0x131   :  { %v1043_v59 = vadd.f32 %v1042_v45, %v1041_v49  ;;  %v1238_v60 = vadd.f32 %v1237_v54, %v1236_v48  ;;  %965 = vst.msk [vmem:[%s2386_s4 + $0xdc] sm:$0xf] %vm909_vm1, %v1511_v14  ;;  %v1147_v17 = vmul.f32 %v1867_v56, %v1867_v56  ;;  %v1245_v61 = vsel %vm974_vm2, %v1145_v51, 0.0 }
 0x132   :  { %v1148_v36 = vmul.f32 %v1903_v24, %v1903_v24  ;;  %963 = vst.msk [vmem:[%s2386_s4 + $0xd4] sm:$0xf] %vm909_vm1, %v1509_v28  ;;  %v1512_v47 = vpack.c.bf16 %v2081_v10, %v2081_v10  ;;  %968 = vst.msk [vmem:[%s2386_s4 + $0xe8] sm:$0xf] %vm909_vm1, %v1514_v34  ;;  %v1247_v42 = vsel %vm974_vm2, %v1146_v21, 0.0  ;;  %v1052_v43 = vsel %vm974_vm2, %v1867_v56, 0.0 }
 0x133   :  { %v1240_v7 = vadd.f32 %v1239_v0, %v1238_v60  ;;  %v1045_v8 = vadd.f32 %v1044_v1, %v1043_v59  ;;  %v1054_v44 = vsel %vm974_vm2, %v1903_v24, 0.0  ;;  %v1515_v45 = vpack.c.bf16 %v2089_v15, %v2089_v15 }
 0x134   :  { %966 = vst.msk [vmem:[%s2386_s4 + $0xe0] sm:$0xf] %vm909_vm1, %v1512_v47  ;;  %v1513_v50 = vpack.c.bf16 %v2097_v26, %v2097_v26  ;;  %v1249_v27 = vsel %vm974_vm2, %v1147_v17, 0.0  ;;  %v1251_v56 = vsel %vm974_vm2, %v1148_v36, 0.0  ;;  %v1149_v24 = vmul.f32 %v1915_v35, %v1915_v35 }
 0x135   :  { %v1047_v18 = vadd.f32 %v1046_v2, %v1045_v8  ;;  %v1242_v20 = vadd.f32 %v1241_v22, %v1240_v7  ;;  %969 = vst.msk [vmem:[%s2386_s4 + $0xec] sm:$0xf] %vm909_vm1, %v1515_v45  ;;  %v1518_v54 = vpack.c.bf16 %v2133_v52, %v2133_v52  ;;  %v1150_v59 = vmul.f32 %v1899_v19, %v1899_v19 }
 0x136   :  { %967 = vst.msk [vmem:[%s2386_s4 + $0xe4] sm:$0xf] %vm909_vm1, %v1513_v50  ;;  %v1056_v60 = vsel %vm974_vm2, %v1915_v35, 0.0  ;;  %v1516_v0 = vpack.c.bf16 %v2146_v57, %v2146_v57  ;;  %v1058_v1 = vsel %vm974_vm2, %v1899_v19, 0.0  ;;  %v1519_v7 = vpack.c.bf16 %v2152_v62, %v2152_v62 }
 0x137   :  { %v1244_v32 = vadd.f32 %v1243_v13, %v1242_v20  ;;  %v1049_v33 = vadd.f32 %v1048_v25, %v1047_v18  ;;  %972 = vst.msk [vmem:[%s2386_s4 + $0xf8] sm:$0xf] %vm909_vm1, %v1518_v54  ;;  %v1151_v8 = vmul.f32 %v1911_v30, %v1911_v30  ;;  %v1253_v35 = vsel %vm974_vm2, %v1149_v24, 0.0 }
 0x138   :  { %v1152_v11 = vmul.f32 %v1947_v63, %v1947_v63  ;;  %970 = vst.msk [vmem:[%s2386_s4 + $0xf0] sm:$0xf] %vm909_vm1, %v1516_v0  ;;  %v1517_v19 = vpack.c.bf16 %v2165_v6, %v2165_v6  ;;  %973 = vst.msk [vmem:[%s2386_s4 + $0xfc] sm:$0xf] %vm909_vm1, %v1519_v7  ;;  %v1255_v51 = vsel %vm974_vm2, %v1150_v59, 0.0  ;;  %v1060_v14 = vsel %vm974_vm2, %v1911_v30, 0.0 }
 0x139   :  { %v1051_v39 = vadd.f32 %v1050_v29, %v1049_v33  ;;  %v1246_v40 = vadd.f32 %v1245_v61, %v1244_v32  ;;  %v1062_v18 = vsel %vm974_vm2, %v1947_v63, 0.0  ;;  %v1257_v25 = vsel %vm974_vm2, %v1151_v8, 0.0 }
 0x13a   :  { %971 = vst.msk [vmem:[%s2386_s4 + $0xf4] sm:$0xf] %vm909_vm1, %v1517_v19  ;;  %v1259_v28 = vsel %vm974_vm2, %v1152_v11, 0.0  ;;  %v1153_v29 = vmul.f32 %v1959_v9, %v1959_v9  ;;  %v1154_v30 = vmul.f32 %v1943_v58, %v1943_v58  ;;  %v1064_v63 = vsel %vm974_vm2, %v1959_v9, 0.0 }
 0x13b   :  { %v1248_v48 = vadd.f32 %v1247_v42, %v1246_v40  ;;  %v1053_v49 = vadd.f32 %v1052_v43, %v1051_v39  ;;  %v1066_v61 = vsel %vm974_vm2, %v1943_v58, 0.0  ;;  %v1155_v36 = vmul.f32 %v1955_v4, %v1955_v4 }
 0x13c   :  { %v1261_v47 = vsel %vm974_vm2, %v1153_v29, 0.0  ;;  %v1156_v39 = vmul.f32 %v1991_v41, %v1991_v41  ;;  %v1263_v43 = vsel %vm974_vm2, %v1154_v30, 0.0  ;;  %v1068_v9 = vsel %vm974_vm2, %v1955_v4, 0.0 }
 0x13d   :  { %v1055_v55 = vadd.f32 %v1054_v44, %v1053_v49  ;;  %v1250_v12 = vadd.f32 %v1249_v27, %v1248_v48  ;;  %v1070_v44 = vsel %vm974_vm2, %v1991_v41, 0.0  ;;  %v1265_v48 = vsel %vm974_vm2, %v1155_v36, 0.0 }
 0x13e   :  { %v1267_v49 = vsel %vm974_vm2, %v1156_v39, 0.0  ;;  %v1157_v50 = vmul.f32 %v2003_v53, %v2003_v53  ;;  %v1158_v24 = vmul.f32 %v1987_v37, %v1987_v37  ;;  %v1072_v4 = vsel %vm974_vm2, %v2003_v53, 0.0 }
 0x13f   :  { %v1252_v2 = vadd.f32 %v1251_v56, %v1250_v12  ;;  %v1057_v5 = vadd.f32 %v1056_v60, %v1055_v55  ;;  %v1074_v41 = vsel %vm974_vm2, %v1987_v37, 0.0  ;;  %v1159_v12 = vmul.f32 %v1999_v46, %v1999_v46 }
 0x140   :  { %v1269_v59 = vsel %vm974_vm2, %v1157_v50, 0.0  ;;  %v1160_v60 = vmul.f32 %v2035_v23, %v2035_v23  ;;  %v1076_v53 = vsel %vm974_vm2, %v1999_v46, 0.0  ;;  %v1161_v11 = vmul.f32 %v2047_v38, %v2047_v38 }
 0x141   :  { %v1059_v22 = vadd.f32 %v1058_v1, %v1057_v5  ;;  %v1254_v13 = vadd.f32 %v1253_v35, %v1252_v2  ;;  %v1271_v2 = vsel %vm974_vm2, %v1158_v24, 0.0  ;;  %v1078_v5 = vsel %vm974_vm2, %v2035_v23, 0.0 }
 0x142   :  { %v1273_v8 = vsel %vm974_vm2, %v1159_v12, 0.0  ;;  %v1275_v35 = vsel %vm974_vm2, %v1160_v60, 0.0  ;;  %v1080_v46 = vsel %vm974_vm2, %v2047_v38, 0.0  ;;  %v1082_v23 = vsel %vm974_vm2, %v2031_v16, 0.0 }
 0x143   :  { %v1256_v20 = vadd.f32 %v1255_v51, %v1254_v13  ;;  %v1061_v21 = vadd.f32 %v1060_v14, %v1059_v22  ;;  %v1162_v13 = vmul.f32 %v2031_v16, %v2031_v16  ;;  %v1084_v38 = vsel %vm974_vm2, %v2043_v31, 0.0 }
 0x144   :  { %v1166_v36 = vmul.f32 %v2075_v3, %v2075_v3 }
 0x145   :  { %v1063_v32 = vadd.f32 %v1062_v18, %v1061_v21  ;;  %v1258_v33 = vadd.f32 %v1257_v25, %v1256_v20  ;;  %v1163_v18 = vmul.f32 %v2043_v31, %v2043_v31  ;;  %v1277_v20 = vsel %vm974_vm2, %v1161_v11, 0.0 }
 0x146   :  { %v1164_v21 = vmul.f32 %v2081_v10, %v2081_v10  ;;  %v1279_v29 = vsel %vm974_vm2, %v1162_v13, 0.0  ;;  %v1088_v31 = vsel %vm974_vm2, %v2097_v26, 0.0 }
 0x147   :  { %v1260_v34 = vadd.f32 %v1259_v28, %v1258_v33  ;;  %v1065_v17 = vadd.f32 %v1064_v63, %v1063_v32  ;;  %v1086_v32 = vsel %vm974_vm2, %v2081_v10, 0.0  ;;  %v1281_v30 = vsel %vm974_vm2, %v1163_v18, 0.0 }
 0x148   :  { %v1283_v63 = vsel %vm974_vm2, %v1164_v21, 0.0  ;;  %v1090_v10 = vsel %vm974_vm2, %v2075_v3, 0.0 }
 0x149   :  { %v1067_v40 = vadd.f32 %v1066_v61, %v1065_v17  ;;  %v1262_v42 = vadd.f32 %v1261_v47, %v1260_v34  ;;  %v1165_v34 = vmul.f32 %v2097_v26, %v2097_v26  ;;  %v1092_v26 = vsel %vm974_vm2, %v2089_v15, 0.0 }
 0x14b   :  { %v1264_v45 = vadd.f32 %v1263_v43, %v1262_v42  ;;  %v1069_v58 = vadd.f32 %v1068_v9, %v1067_v40  ;;  %v1167_v40 = vmul.f32 %v2089_v15, %v2089_v15  ;;  %v1285_v42 = vsel %vm974_vm2, %v1165_v34, 0.0 }
 0x14c   :  { %v1168_v43 = vmul.f32 %v2146_v57, %v2146_v57  ;;  %v1096_v15 = vsel %vm974_vm2, %v2165_v6, 0.0 }
 0x14d   :  { %v1071_v27 = vadd.f32 %v1070_v44, %v1069_v58  ;;  %v1266_v56 = vadd.f32 %v1265_v48, %v1264_v45  ;;  %v1287_v45 = vsel %vm974_vm2, %v1166_v36, 0.0  ;;  %v1094_v58 = vsel %vm974_vm2, %v2146_v57, 0.0 }
 0x14e   :  { %v1291_v50 = vsel %vm974_vm2, %v1168_v43, 0.0  ;;  %v1098_v57 = vsel %vm974_vm2, %v2133_v52, 0.0 }
 0x14f   :  { %v1268_v54 = vadd.f32 %v1267_v49, %v1266_v56  ;;  %v1073_v55 = vadd.f32 %v1072_v4, %v1071_v27  ;;  %v1289_v49 = vsel %vm974_vm2, %v1167_v40, 0.0  ;;  %v1169_v27 = vmul.f32 %v2165_v6, %v2165_v6 }
 0x150   :  { %v1170_v4 = vmul.f32 %v2133_v52, %v2133_v52 }
 0x151   :  { %v1075_v0 = vadd.f32 %v1074_v41, %v1073_v55  ;;  %v1270_v1 = vadd.f32 %v1269_v59, %v1268_v54  ;;  %v1171_v41 = vmul.f32 %v2152_v62, %v2152_v62  ;;  %v1293_v12 = vsel %vm974_vm2, %v1169_v27, 0.0 }
 0x153   :  { %v1272_v7 = vadd.f32 %v1271_v2, %v1270_v1  ;;  %v1077_v37 = vadd.f32 %v1076_v53, %v1075_v0  ;;  %v1295_v0 = vsel %vm974_vm2, %v1170_v4, 0.0  ;;  %v1100_v1 = vsel %vm974_vm2, %v2152_v62, 0.0 }
 0x154   :  { %v1297_v6 = vsel %vm974_vm2, %v1171_v41, 0.0 }
 0x155   :  { %v1079_v19 = vadd.f32 %v1078_v5, %v1077_v37  ;;  %v1274_v22 = vadd.f32 %v1273_v8, %v1272_v7  ;;  %v1305_v37 = vlaneseq }
 0x157   :  { %v1276_v51 = vadd.f32 %v1275_v35, %v1274_v22  ;;  %v1081_v14 = vadd.f32 %v1080_v46, %v1079_v19  ;;  %v1306_v19 = vshrl.u32 %v1305_v37, 7 }
 0x159   :  { %v1083_v25 = vadd.f32 %v1082_v23, %v1081_v14  ;;  %v1278_v28 = vadd.f32 %v1277_v20, %v1276_v51  ;;  %vm1307_vm3 = vcmp.eq.s32.totalorder %v1306_v19, 0 }
 0x15b   :  { %v1280_v33 = vadd.f32 %v1279_v29, %v1278_v28  ;;  %v1085_v16 = vadd.f32 %v1084_v38, %v1083_v25 }
 0x15d   :  { %v1087_v17 = vadd.f32 %v1086_v32, %v1085_v16  ;;  %v1282_v61 = vadd.f32 %v1281_v30, %v1280_v33 }
 0x15f   :  { %v1284_v47 = vadd.f32 %v1283_v63, %v1282_v61  ;;  %v1089_v39 = vadd.f32 %v1088_v31, %v1087_v17 }
 0x161   :  { %v1091_v9 = vadd.f32 %v1090_v10, %v1089_v39  ;;  %v1286_v44 = vadd.f32 %v1285_v42, %v1284_v47 }
 0x163   :  { %v1288_v48 = vadd.f32 %v1287_v45, %v1286_v44  ;;  %v1093_v3 = vadd.f32 %v1092_v26, %v1091_v9 }
 0x165   :  { %v1095_v56 = vadd.f32 %v1094_v58, %v1093_v3  ;;  %v1290_v24 = vadd.f32 %v1289_v49, %v1288_v48 }
 0x167   :  { %v1292_v54 = vadd.f32 %v1291_v50, %v1290_v24  ;;  %v1097_v55 = vadd.f32 %v1096_v15, %v1095_v56 }
 0x169   :  { %v1099_v59 = vadd.f32 %v1098_v57, %v1097_v55  ;;  %v1294_v60 = vadd.f32 %v1293_v12, %v1292_v54 }
 0x16b   :  { %v1101_v2 = vadd.f32 %v1100_v1, %v1099_v59  ;;  %v1296_v53 = vadd.f32 %v1295_v0, %v1294_v60 }
 0x16d   :  { %v1102_v5 = vrot.slane %v1101_v2, 4  ;;  %v1298_v7 = vadd.f32 %v1297_v6, %v1296_v53 }
 0x16f   :  { %v1103_v52 = vadd.f32 %v1102_v5, %v1101_v2  ;;  %v1299_v8 = vrot.slane %v1298_v7, 4 }
 0x171   :  { %v1104_v35 = vrot.slane %v1103_v52, 2  ;;  %v1300_v11 = vadd.f32 %v1299_v8, %v1298_v7 }
 0x173   :  { %v1105_v22 = vadd.f32 %v1104_v35, %v1103_v52  ;;  %v1301_v13 = vrot.slane %v1300_v11, 2 }
 0x175   :  { %v1106_v46 = vrot.slane %v1105_v22, 1  ;;  %v1302_v51 = vadd.f32 %v1301_v13, %v1300_v11 }
 0x177   :  { %v1107_v14 = vadd.f32 %v1106_v46, %v1105_v22  ;;  %v1303_v23 = vrot.slane %v1302_v51, 1 }
 0x179   :  { %v1304_v62 = vadd.f32 %v1303_v23, %v1302_v51  ;;  %v1310_v18 = vsel %vm1307_vm3, %v1107_v14, 0.0 }
 0x17a   :  { %1311 = vst.msk [vmem:[%s2387_s5] sm:$0xff] %vm974_vm2, %v1310_v18 }
 0x17b   :  { %v1312_v20 = vsel %vm1307_vm3, %v1304_v62, 0.0 }
 0x17c   :  { %1313 = vst.msk [vmem:[%s2388_s6] sm:$0xff] %vm974_vm2, %v1312_v20 }
 0x17d   :  { %1326 = vsyncpa [#allocation3], 1 }

// kernel: bottleneck_forward_nhwc.7
= control target key start
LH: loop header
LB: loop body
LE: loop exit
PB: predicated region body
PF: predicated region fallthrough
CT: control target
= control target key end

     0   :  { %vm149_vm0 = vcmask 1043456   ;;  %vm124_vm1 = vcmask 64512   ;;  %vm314_vm2 = vcmask 257024   ;;  %vm331_vm3 = vcmask 261120   ;;  %s771_s1 = inlined_call_operand.vmem [shape: bf16[8,32], index: 1, kind: input, shape index: {}]   ;;  %s772_s0 = inlined_call_operand.vmem [shape: bf16[128,8], index: 0, kind: input, shape index: {}]   ;;  %s773_s2 = inlined_call_operand.vmem [shape: f32[1,8], index: 2, kind: input, shape index: {}]   ;;  %s774_s3 = inlined_call_operand.vmem [shape: f32[1,8], index: 3, kind: input, shape index: {}]   ;;  %s775_s4 = inlined_call_operand.vmem [shape: bf16[128,32], index: 4, kind: output, shape index: {0}]   ;;  %s776_s5 = inlined_call_operand.vmem [shape: f32[8,32], index: 5, kind: output, shape index: {1}]   ;;  %s777_s6 = inlined_call_operand.vmem [shape: f32[8,32], index: 6, kind: output, shape index: {2}]  }
   0x1   :  { %v123_v0 = vld [vmem:[%s771_s1] sm:$0xf]  ;;  %v517_v6 = vld [vmem:[%s772_s0 + $0x8] sm:$0xff]   ;;  %v518_v7 = vld [vmem:[%s772_s0 + $0x10] sm:$0xff]  }
   0x2   :  { %v486_v1 = vld [vmem:[%s772_s0] sm:$0xff]   ;;  %553 = vmatprep.subr.msk.bf16.mxu0 %vm149_vm0, %v123_v0  ;;  %v151_v3 = vsel %vm149_vm0, %v123_v0, 0  ;;  %554 = vmatprep.subr.msk.bf16.mxu1 %vm149_vm0, %v123_v0  ;;  %v491_v9 = vunpack.c.l.bf16 %v517_v6  ;;  %v492_v10 = vunpack.c.h.bf16 %v517_v6  ;;  %v495_v11 = vunpack.c.l.bf16 %v518_v7  ;;  %v519_v13 = vld [vmem:[%s772_s0 + $0x18] sm:$0xff]   ;;  %v521_v35 = vld [vmem:[%s772_s0 + $0x28] sm:$0xff]  }
   0x3   :  { %v599_v2 = vld [vmem:[%s773_s2] ss:$0 sm:$0xff]  ;;  %v487_v4 = vunpack.c.l.bf16 %v486_v1  ;;  %v488_v5 = vunpack.c.h.bf16 %v486_v1  ;;  %534 = vmatpush3.bf16.msra.mxu0 %v151_v3  ;;  %v496_v12 = vunpack.c.h.bf16 %v518_v7  ;;  %552 = vmatpush3.bf16.msra.mxu1 %v151_v3  ;;  %v499_v16 = vunpack.c.l.bf16 %v519_v13  ;;  %v522_v40 = vld [vmem:[%s772_s0 + $0x30] sm:$0xff]   ;;  %v523_v44 = vld [vmem:[%s772_s0 + $0x38] sm:$0xff]  }
   0x4   :  { %v610_v8 = vld [vmem:[%s774_s3] ss:$0 sm:$0xff]  ;;  %v500_v17 = vunpack.c.h.bf16 %v519_v13  ;;  %v62_v18 = vmul.f32 %v491_v9, %v599_v2  ;;  %v63_v19 = vmul.f32 %v492_v10, %v599_v2  ;;  %v64_v20 = vmul.f32 %v495_v11, %v599_v2 }
   0x5   :  { %v60_v14 = vmul.f32 %v487_v4, %v599_v2  ;;  %v61_v15 = vmul.f32 %v488_v5, %v599_v2  ;;  %v65_v21 = vmul.f32 %v496_v12, %v599_v2  ;;  %v66_v24 = vmul.f32 %v499_v16, %v599_v2  ;;  %v520_v30 = vld [vmem:[%s772_s0 + $0x20] sm:$0xff]  }
   0x6   :  { %v67_v25 = vmul.f32 %v500_v17, %v599_v2  ;;  %v85_v26 = vadd.f32 %v610_v8, %v62_v18  ;;  %v86_v27 = vadd.f32 %v610_v8, %v63_v19  ;;  %v87_v28 = vadd.f32 %v610_v8, %v64_v20 }
   0x7   :  { %v83_v22 = vadd.f32 %v610_v8, %v60_v14  ;;  %v84_v23 = vadd.f32 %v610_v8, %v61_v15  ;;  %v88_v29 = vadd.f32 %v610_v8, %v65_v21  ;;  %v89_v33 = vadd.f32 %v610_v8, %v66_v24 }
   0x8   :  { %v90_v34 = vadd.f32 %v610_v8, %v67_v25  ;;  %v101_v36 = vmax.f32 %v85_v26, 0.0  ;;  %v102_v37 = vmax.f32 %v86_v27, 0.0  ;;  %v103_v38 = vmax.f32 %v87_v28, 0.0 }
   0x9   :  { %v99_v31 = vmax.f32 %v83_v22, 0.0  ;;  %v100_v32 = vmax.f32 %v84_v23, 0.0  ;;  %v104_v39 = vmax.f32 %v88_v29, 0.0  ;;  %v105_v42 = vmax.f32 %v89_v33, 0.0 }
   0xa   :  { %v503_v43 = vunpack.c.l.bf16 %v520_v30  ;;  %v116_v45 = vpack.c.bf16 %v102_v37, %v101_v36  ;;  %v504_v47 = vunpack.c.h.bf16 %v520_v30  ;;  %v507_v48 = vunpack.c.l.bf16 %v521_v35 }
   0xb   :  { %v115_v41 = vpack.c.bf16 %v100_v32, %v99_v31  ;;  %v117_v46 = vpack.c.bf16 %v104_v39, %v103_v38  ;;  %v106_v49 = vmax.f32 %v90_v34, 0.0  ;;  %v508_v51 = vunpack.c.h.bf16 %v521_v35 }
   0xc   :  { %v68_v50 = vmul.f32 %v503_v43, %v599_v2  ;;  %v511_v52 = vunpack.c.l.bf16 %v522_v40  ;;  %v69_v53 = vmul.f32 %v504_v47, %v599_v2  ;;  %v70_v54 = vmul.f32 %v507_v48, %v599_v2 }
   0xd   :  { %535 = vmatprep.mubr.msk.bf16.mxu0 %vm124_vm1, %v115_v41  ;;  %v512_v55 = vunpack.c.h.bf16 %v522_v40  ;;  %v515_v56 = vunpack.c.l.bf16 %v523_v44  ;;  %v71_v58 = vmul.f32 %v508_v51, %v599_v2  ;;  %v516_v60 = vunpack.c.h.bf16 %v523_v44 }
   0xe   :  { %536 = vmatmul.mubr.msk.bf16.vlgmr.msra.gmra.mrb[0].mxu0 %vm124_vm1, %v116_v45  ;;  %v91_v57 = vadd.f32 %v610_v8, %v68_v50  ;;  %v72_v59 = vmul.f32 %v511_v52, %v599_v2  ;;  %v92_v61 = vadd.f32 %v610_v8, %v69_v53  ;;  %v93_v62 = vadd.f32 %v610_v8, %v70_v54 }
   0xf   :  { %539 = vmatprep.mubr.msk.bf16.mxu0 %vm124_vm1, %v117_v46  ;;  %v73_v63 = vmul.f32 %v512_v55, %v599_v2  ;;  %v74_v0 = vmul.f32 %v515_v56, %v599_v2  ;;  %v94_v3 = vadd.f32 %v610_v8, %v71_v58  ;;  %v75_v5 = vmul.f32 %v516_v60, %v599_v2 }
  0x10   :  { %v107_v1 = vmax.f32 %v91_v57, 0.0  ;;  %v95_v4 = vadd.f32 %v610_v8, %v72_v59  ;;  %v118_v6 = vpack.c.bf16 %v106_v49, %v105_v42  ;;  %v108_v7 = vmax.f32 %v92_v61, 0.0 }
  0x11   :  { %v109_v9 = vmax.f32 %v93_v62, 0.0  ;;  %v96_v10 = vadd.f32 %v610_v8, %v73_v63  ;;  %v110_v11 = vmax.f32 %v94_v3, 0.0  ;;  %v97_v13 = vadd.f32 %v610_v8, %v74_v0 }
  0x12   :  { %v111_v12 = vmax.f32 %v95_v4, 0.0  ;;  %v98_v14 = vadd.f32 %v610_v8, %v75_v5  ;;  %v119_v15 = vpack.c.bf16 %v108_v7, %v107_v1 }
  0x13   :  { %v112_v16 = vmax.f32 %v96_v10, 0.0  ;;  %v120_v17 = vpack.c.bf16 %v110_v11, %v109_v9  ;;  %v113_v2 = vmax.f32 %v97_v13, 0.0 }
  0x14   :  { %543 = vmatprep.mubr.msk.bf16.mxu1 %vm124_vm1, %v119_v15  ;;  %v114_v19 = vmax.f32 %v98_v14, 0.0 }
  0x15   :  { %v121_v18 = vpack.c.bf16 %v112_v16, %v111_v12  ;;  %544 = vmatmul.mubr.msk.bf16.vlgmr.msra.gmra.mrb[0].mxu1 %vm124_vm1, %v120_v17 }
  0x16   :  { %540 = vmatmul.mubr.msk.bf16.gmra.mrb[4].mxu0 %vm124_vm1, %v118_v6  ;;  %v122_v20 = vpack.c.bf16 %v114_v19, %v113_v2 }
  0x17   :  { %547 = vmatprep.mubr.msk.bf16.mxu1 %vm124_vm1, %v121_v18 }
  0x1d   :  { %548 = vmatmul.mubr.msk.bf16.gmra.mrb[4].mxu1 %vm124_vm1, %v122_v20 }
  0xe1   :  { %v537_v21 = vpop.f32.mrb[0].mxu0 }
  0xe2   :  { %v471_v8 = vpack.c.bf16 %v537_v21, %v537_v21  ;;  %v187_v22 = vpop.f32.mrb[1].mxu0  ;;  %v371_v26 = vmul.f32 %v537_v21, %v537_v21  ;;  %v335_v35 = vsel %vm331_vm3, %v537_v21, 0.0 }
  0xe3   :  { %v469_v23 = vpack.c.bf16 %v187_v22, %v187_v22  ;;  %v369_v24 = vmul.f32 %v187_v22, %v187_v22  ;;  %v538_v25 = vpop.f32.mrb[2].mxu0  ;;  %v332_v29 = vsel %vm331_vm3, %v187_v22, 0.0 }
  0xe4   :  { %317 = vst.msk [vmem:[%s775_s4 + $0x8] sm:$0xf] %vm314_vm2, %v471_v8  ;;  %v472_v27 = vpack.c.bf16 %v538_v25, %v538_v25  ;;  %v190_v28 = vpop.f32.mrb[3].mxu0  ;;  %v372_v33 = vmul.f32 %v538_v25, %v538_v25  ;;  %v388_v40 = vsel %vm331_vm3, %v371_v26, 0.0  ;;  %v337_v42 = vsel %vm331_vm3, %v538_v25, 0.0 }
  0xe5   :  { %315 = vst.msk [vmem:[%s775_s4] sm:$0xf] %vm314_vm2, %v469_v23  ;;  %v470_v30 = vpack.c.bf16 %v190_v28, %v190_v28  ;;  %v333_v31 = vsel %vm331_vm3, %v190_v28, 0.0  ;;  %v370_v32 = vmul.f32 %v190_v28, %v190_v28  ;;  %v385_v36 = vsel %vm331_vm3, %v369_v24, 0.0 }
  0xe6   :  { %318 = vst.msk [vmem:[%s775_s4 + $0xc] sm:$0xf] %vm314_vm2, %v472_v27  ;;  %v334_v34 = vadd.f32 %v333_v31, %v332_v29  ;;  %v390_v43 = vsel %vm331_vm3, %v372_v33, 0.0 }
  0xe7   :  { %316 = vst.msk [vmem:[%s775_s4 + $0x4] sm:$0xf] %vm314_vm2, %v470_v30  ;;  %v386_v37 = vsel %vm331_vm3, %v370_v32, 0.0 }
  0xe8   :  { %v336_v38 = vadd.f32 %v335_v35, %v334_v34  ;;  %v387_v39 = vadd.f32 %v386_v37, %v385_v36  ;;  %v545_v47 = vpop.f32.mrb[0].mxu1 }
  0xe9   :  { %v541_v41 = vpop.f32.mrb[4].mxu0  ;;  %v219_v53 = vpop.f32.mrb[1].mxu1  ;;  %v479_v3 = vpack.c.bf16 %v545_v47, %v545_v47  ;;  %v379_v29 = vmul.f32 %v545_v47, %v545_v47  ;;  %v351_v32 = vsel %vm331_vm3, %v545_v47, 0.0 }
  0xea   :  { %v389_v44 = vadd.f32 %v388_v40, %v387_v39  ;;  %v475_v45 = vpack.c.bf16 %v541_v41, %v541_v41  ;;  %v203_v46 = vpop.f32.mrb[5].mxu0  ;;  %v338_v49 = vadd.f32 %v337_v42, %v336_v38  ;;  %v546_v57 = vpop.f32.mrb[2].mxu1  ;;  %v375_v58 = vmul.f32 %v541_v41, %v541_v41 }
  0xeb   :  { %v473_v48 = vpack.c.bf16 %v203_v46, %v203_v46  ;;  %v339_v50 = vsel %vm331_vm3, %v203_v46, 0.0  ;;  %v373_v51 = vmul.f32 %v203_v46, %v203_v46  ;;  %v542_v52 = vpop.f32.mrb[6].mxu0  ;;  %v222_v62 = vpop.f32.mrb[3].mxu1  ;;  %v343_v4 = vsel %vm331_vm3, %v541_v41, 0.0  ;;  %325 = vst.msk [vmem:[%s775_s4 + $0x28] sm:$0xf] %vm314_vm2, %v479_v3 }
  0xec   :  { %321 = vst.msk [vmem:[%s775_s4 + $0x18] sm:$0xf] %vm314_vm2, %v475_v45  ;;  %v391_v54 = vadd.f32 %v390_v43, %v389_v44  ;;  %v476_v55 = vpack.c.bf16 %v542_v52, %v542_v52  ;;  %v206_v56 = vpop.f32.mrb[7].mxu0  ;;  %v340_v59 = vadd.f32 %v339_v50, %v338_v49  ;;  %v376_v6 = vmul.f32 %v542_v52, %v542_v52 }
  0xed   :  { %319 = vst.msk [vmem:[%s775_s4 + $0x10] sm:$0xf] %vm314_vm2, %v473_v48  ;;  %v392_v60 = vsel %vm331_vm3, %v373_v51, 0.0  ;;  %v474_v61 = vpack.c.bf16 %v206_v56, %v206_v56  ;;  %v341_v0 = vsel %vm331_vm3, %v206_v56, 0.0  ;;  %v374_v1 = vmul.f32 %v206_v56, %v206_v56 }
  0xee   :  { %v393_v63 = vadd.f32 %v392_v60, %v391_v54  ;;  %322 = vst.msk [vmem:[%s775_s4 + $0x1c] sm:$0xf] %vm314_vm2, %v476_v55  ;;  %v342_v5 = vadd.f32 %v341_v0, %v340_v59  ;;  %v477_v9 = vpack.c.bf16 %v219_v53, %v219_v53  ;;  %v377_v10 = vmul.f32 %v219_v53, %v219_v53 }
  0xef   :  { %320 = vst.msk [vmem:[%s775_s4 + $0x14] sm:$0xf] %vm314_vm2, %v474_v61  ;;  %v394_v7 = vsel %vm331_vm3, %v374_v1, 0.0  ;;  %v480_v13 = vpack.c.bf16 %v546_v57, %v546_v57  ;;  %v396_v14 = vsel %vm331_vm3, %v375_v58, 0.0  ;;  %v345_v15 = vsel %vm331_vm3, %v542_v52, 0.0 }
  0xf0   :  { %v344_v11 = vadd.f32 %v343_v4, %v342_v5  ;;  %v395_v12 = vadd.f32 %v394_v7, %v393_v63  ;;  %323 = vst.msk [vmem:[%s775_s4 + $0x20] sm:$0xf] %vm314_vm2, %v477_v9  ;;  %v347_v16 = vsel %vm331_vm3, %v219_v53, 0.0  ;;  %v478_v17 = vpack.c.bf16 %v222_v62, %v222_v62  ;;  %v549_v18 = vpop.f32.mrb[4].mxu1 }
  0xf1   :  { %326 = vst.msk [vmem:[%s775_s4 + $0x2c] sm:$0xf] %vm314_vm2, %v480_v13  ;;  %v235_v20 = vpop.f32.mrb[5].mxu1  ;;  %v398_v21 = vsel %vm331_vm3, %v376_v6, 0.0  ;;  %v400_v8 = vsel %vm331_vm3, %v377_v10, 0.0  ;;  %v378_v22 = vmul.f32 %v222_v62, %v222_v62  ;;  %v483_v23 = vpack.c.bf16 %v549_v18, %v549_v18 }
  0xf2   :  { %v397_v2 = vadd.f32 %v396_v14, %v395_v12  ;;  %v346_v19 = vadd.f32 %v345_v15, %v344_v11  ;;  %324 = vst.msk [vmem:[%s775_s4 + $0x24] sm:$0xf] %vm314_vm2, %v478_v17  ;;  %v550_v24 = vpop.f32.mrb[6].mxu1  ;;  %v481_v27 = vpack.c.bf16 %v235_v20, %v235_v20  ;;  %v349_v30 = vsel %vm331_vm3, %v222_v62, 0.0 }
  0xf3   :  { %v238_v28 = vpop.f32.mrb[7].mxu1  ;;  %329 = vst.msk [vmem:[%s775_s4 + $0x38] sm:$0xf] %vm314_vm2, %v483_v23  ;;  %v484_v31 = vpack.c.bf16 %v550_v24, %v550_v24  ;;  %v380_v35 = vmul.f32 %v546_v57, %v546_v57  ;;  %v402_v36 = vsel %vm331_vm3, %v378_v22, 0.0  ;;  %v381_v37 = vmul.f32 %v235_v20, %v235_v20 }
  0xf4   :  { %v348_v25 = vadd.f32 %v347_v16, %v346_v19  ;;  %v399_v26 = vadd.f32 %v398_v21, %v397_v2  ;;  %327 = vst.msk [vmem:[%s775_s4 + $0x30] sm:$0xf] %vm314_vm2, %v481_v27  ;;  %v482_v38 = vpack.c.bf16 %v238_v28, %v238_v28  ;;  %v404_v41 = vsel %vm331_vm3, %v379_v29, 0.0 }
  0xf5   :  { %330 = vst.msk [vmem:[%s775_s4 + $0x3c] sm:$0xf] %vm314_vm2, %v484_v31  ;;  %v353_v42 = vsel %vm331_vm3, %v546_v57, 0.0  ;;  %v355_v43 = vsel %vm331_vm3, %v235_v20, 0.0  ;;  %v406_v46 = vsel %vm331_vm3, %v380_v35, 0.0  ;;  %v408_v47 = vsel %vm331_vm3, %v381_v37, 0.0 }
  0xf6   :  { %v401_v33 = vadd.f32 %v400_v8, %v399_v26  ;;  %v350_v34 = vadd.f32 %v349_v30, %v348_v25  ;;  %328 = vst.msk [vmem:[%s775_s4 + $0x34] sm:$0xf] %vm314_vm2, %v482_v38  ;;  %v382_v48 = vmul.f32 %v238_v28, %v238_v28  ;;  %v383_v51 = vmul.f32 %v549_v18, %v549_v18 }
  0xf7   :  { %v357_v52 = vsel %vm331_vm3, %v238_v28, 0.0  ;;  %v359_v55 = vsel %vm331_vm3, %v549_v18, 0.0  ;;  %v384_v56 = vmul.f32 %v550_v24, %v550_v24  ;;  %v361_v61 = vsel %vm331_vm3, %v550_v24, 0.0 }
  0xf8   :  { %v352_v39 = vadd.f32 %v351_v32, %v350_v34  ;;  %v403_v40 = vadd.f32 %v402_v36, %v401_v33  ;;  %v410_v57 = vsel %vm331_vm3, %v382_v48, 0.0  ;;  %v412_v60 = vsel %vm331_vm3, %v383_v51, 0.0 }
  0xf9   :  { %v414_v0 = vsel %vm331_vm3, %v384_v56, 0.0  ;;  %v422_v4 = vlaneseq }
  0xfa   :  { %v405_v44 = vadd.f32 %v404_v41, %v403_v40  ;;  %v354_v45 = vadd.f32 %v353_v42, %v352_v39 }
  0xfb   :  { %v423_v10 = vshrl.u32 %v422_v4, 7 }
  0xfc   :  { %v356_v49 = vadd.f32 %v355_v43, %v354_v45  ;;  %v407_v50 = vadd.f32 %v406_v46, %v405_v44 }
  0xfd   :  { %vm424_vm4 = vcmp.eq.s32.totalorder %v423_v10, 0 }
  0xfe   :  { %v409_v53 = vadd.f32 %v408_v47, %v407_v50  ;;  %v358_v54 = vadd.f32 %v357_v52, %v356_v49 }
 0x100   :  { %v360_v58 = vadd.f32 %v359_v55, %v358_v54  ;;  %v411_v59 = vadd.f32 %v410_v57, %v409_v53 }
 0x102   :  { %v362_v62 = vadd.f32 %v361_v61, %v360_v58  ;;  %v413_v63 = vadd.f32 %v412_v60, %v411_v59 }
 0x104   :  { %v363_v1 = vrot.slane %v362_v62, 4  ;;  %v415_v3 = vadd.f32 %v414_v0, %v413_v63 }
 0x106   :  { %v364_v5 = vadd.f32 %v363_v1, %v362_v62  ;;  %v416_v6 = vrot.slane %v415_v3, 4 }
 0x108   :  { %v365_v7 = vrot.slane %v364_v5, 2  ;;  %v417_v9 = vadd.f32 %v416_v6, %v415_v3 }
 0x10a   :  { %v366_v11 = vadd.f32 %v365_v7, %v364_v5  ;;  %v418_v12 = vrot.slane %v417_v9, 2 }
 0x10c   :  { %v367_v13 = vrot.slane %v366_v11, 1  ;;  %v419_v14 = vadd.f32 %v418_v12, %v417_v9 }
 0x10e   :  { %v368_v15 = vadd.f32 %v367_v13, %v366_v11  ;;  %v420_v16 = vrot.slane %v419_v14, 1 }
 0x110   :  { %v421_v17 = vadd.f32 %v420_v16, %v419_v14  ;;  %v427_v18 = vsel %vm424_vm4, %v368_v15, 0.0 }
 0x111   :  { %428 = vst.msk [vmem:[%s776_s5] sm:$0xff] %vm331_vm3, %v427_v18 }
 0x112   :  { %v429_v2 = vsel %vm424_vm4, %v421_v17, 0.0 }
 0x113   :  { %430 = vst.msk [vmem:[%s777_s6] sm:$0xff] %vm331_vm3, %v429_v2 }

// kernel: bottleneck_forward_nhwc.8
= control target key start
LH: loop header
LB: loop body
LE: loop exit
PB: predicated region body
PF: predicated region fallthrough
CT: control target
= control target key end

     0   :  { %vm85_vm0 = vcmask 130048   ;;  %vm271_vm1 = vcmask 257024   ;;  %vm288_vm2 = vcmask 261120   ;;  %s703_s1 = inlined_call_operand.vmem [shape: bf16[16,32], index: 1, kind: input, shape index: {}]   ;;  %s704_s2 = inlined_call_operand.vmem [shape: f32[1,16], index: 2, kind: input, shape index: {}]   ;;  %s705_s3 = inlined_call_operand.vmem [shape: f32[1,16], index: 3, kind: input, shape index: {}]   ;;  %s706_s0 = inlined_call_operand.vmem [shape: bf16[128,16], index: 0, kind: input, shape index: {}]   ;;  %s707_s4 = inlined_call_operand.vmem [shape: bf16[128,32], index: 4, kind: output, shape index: {0}]   ;;  %s708_s5 = inlined_call_operand.vmem [shape: f32[8,32], index: 5, kind: output, shape index: {1}]   ;;  %s709_s6 = inlined_call_operand.vmem [shape: f32[8,32], index: 6, kind: output, shape index: {2}]  }
   0x1   :  { %v478_v0 = vld [vmem:[%s703_s1] sm:$0xff]   ;;  %v480_v2 = vld [vmem:[%s706_s0 + $0x8] sm:$0xff]   ;;  %v481_v3 = vld [vmem:[%s706_s0 + $0x10] sm:$0xff]  }
   0x2   :  { %v479_v1 = vld [vmem:[%s706_s0] sm:$0xff]   ;;  %458 = vmatprep.subr.bf16.mxu0 %v478_v0  ;;  %476 = vmatprep.subr.bf16.mxu1 %v478_v0  ;;  %v484_v5 = vld [vmem:[%s706_s0 + $0x28] sm:$0xff]   ;;  %v485_v6 = vld [vmem:[%s706_s0 + $0x30] sm:$0xff]  }
   0x3   :  { %459 = vmatpush3.bf16.msra.mxu0 %v478_v0  ;;  %460 = vmatprep.mubr.msk.bf16.mxu0 %vm85_vm0, %v479_v1  ;;  %v483_v4 = vld [vmem:[%s706_s0 + $0x20] sm:$0xff]   ;;  %v482_v7 = vld [vmem:[%s706_s0 + $0x18] sm:$0xff]  }
   0x4   :  { %477 = vmatpush3.bf16.msra.mxu1 %v478_v0  ;;  %468 = vmatprep.mubr.msk.bf16.mxu1 %vm85_vm0, %v483_v4  ;;  %v486_v8 = vld [vmem:[%s706_s0 + $0x38] sm:$0xff]  }
   0x6   :  { %461 = vmatmul.mubr.msk.bf16.vlgmr.msra.gmra.mrb[0].mxu0 %vm85_vm0, %v480_v2 }
   0x7   :  { %464 = vmatprep.mubr.msk.bf16.mxu0 %vm85_vm0, %v481_v3  ;;  %469 = vmatmul.mubr.msk.bf16.vlgmr.msra.gmra.mrb[0].mxu1 %vm85_vm0, %v484_v5 }
   0x8   :  { %472 = vmatprep.mubr.msk.bf16.mxu1 %vm85_vm0, %v485_v6 }
   0xe   :  { %465 = vmatmul.mubr.msk.bf16.gmra.mrb[4].mxu0 %vm85_vm0, %v482_v7 }
   0xf   :  { %473 = vmatmul.mubr.msk.bf16.gmra.mrb[4].mxu1 %vm85_vm0, %v486_v8 }
  0xd9   :  { %v462_v9 = vpop.f32.mrb[0].mxu0 }
  0xda   :  { %v435_v10 = vpack.c.bf16 %v462_v9, %v462_v9  ;;  %v144_v11 = vpop.f32.mrb[1].mxu0  ;;  %v557_v15 = vpop.f32.mrb[0].mxu1  ;;  %v328_v16 = vmul.f32 %v462_v9, %v462_v9  ;;  %v292_v29 = vsel %vm288_vm2, %v462_v9, 0.0 }
  0xdb   :  { %v433_v12 = vpack.c.bf16 %v144_v11, %v144_v11  ;;  %v326_v13 = vmul.f32 %v144_v11, %v144_v11  ;;  %v463_v14 = vpop.f32.mrb[2].mxu0  ;;  %v563_v19 = vpop.f32.mrb[1].mxu1  ;;  %v289_v20 = vsel %vm288_vm2, %v144_v11, 0.0  ;;  %v443_v27 = vpack.c.bf16 %v557_v15, %v557_v15 }
  0xdc   :  { %274 = vst.msk [vmem:[%s707_s4 + $0x8] sm:$0xf] %vm271_vm1, %v435_v10  ;;  %v436_v17 = vpack.c.bf16 %v463_v14, %v463_v14  ;;  %v147_v18 = vpop.f32.mrb[3].mxu0  ;;  %v571_v24 = vpop.f32.mrb[2].mxu1  ;;  %v329_v25 = vmul.f32 %v463_v14, %v463_v14  ;;  %v441_v32 = vpack.c.bf16 %v563_v19, %v563_v19  ;;  %v345_v36 = vsel %vm288_vm2, %v328_v16, 0.0 }
  0xdd   :  { %272 = vst.msk [vmem:[%s707_s4] sm:$0xf] %vm271_vm1, %v433_v12  ;;  %v434_v21 = vpack.c.bf16 %v147_v18, %v147_v18  ;;  %v290_v22 = vsel %vm288_vm2, %v147_v18, 0.0  ;;  %v327_v23 = vmul.f32 %v147_v18, %v147_v18  ;;  %v579_v28 = vpop.f32.mrb[3].mxu1  ;;  %v342_v30 = vsel %vm288_vm2, %v326_v13, 0.0 }
  0xde   :  { %275 = vst.msk [vmem:[%s707_s4 + $0xc] sm:$0xf] %vm271_vm1, %v436_v17  ;;  %v291_v26 = vadd.f32 %v290_v22, %v289_v20  ;;  %282 = vst.msk [vmem:[%s707_s4 + $0x28] sm:$0xf] %vm271_vm1, %v443_v27  ;;  %v444_v35 = vpack.c.bf16 %v571_v24, %v571_v24  ;;  %v442_v38 = vpack.c.bf16 %v579_v28, %v579_v28  ;;  %v294_v39 = vsel %vm288_vm2, %v463_v14, 0.0 }
  0xdf   :  { %273 = vst.msk [vmem:[%s707_s4 + $0x4] sm:$0xf] %vm271_vm1, %v434_v21  ;;  %v343_v31 = vsel %vm288_vm2, %v327_v23, 0.0  ;;  %280 = vst.msk [vmem:[%s707_s4 + $0x20] sm:$0xf] %vm271_vm1, %v441_v32  ;;  %v347_v40 = vsel %vm288_vm2, %v329_v25, 0.0  ;;  %v334_v0 = vmul.f32 %v563_v19, %v563_v19  ;;  %v335_v17 = vmul.f32 %v579_v28, %v579_v28 }
  0xe0   :  { %v293_v33 = vadd.f32 %v292_v29, %v291_v26  ;;  %v344_v34 = vadd.f32 %v343_v31, %v342_v30  ;;  %283 = vst.msk [vmem:[%s707_s4 + $0x2c] sm:$0xf] %vm271_vm1, %v444_v35  ;;  %281 = vst.msk [vmem:[%s707_s4 + $0x24] sm:$0xf] %vm271_vm1, %v442_v38  ;;  %v304_v10 = vsel %vm288_vm2, %v563_v19, 0.0  ;;  %v336_v21 = vmul.f32 %v557_v15, %v557_v15 }
  0xe1   :  { %v466_v37 = vpop.f32.mrb[4].mxu0  ;;  %v357_v16 = vsel %vm288_vm2, %v334_v0, 0.0  ;;  %v306_v22 = vsel %vm288_vm2, %v579_v28, 0.0  ;;  %v308_v26 = vsel %vm288_vm2, %v557_v15, 0.0  ;;  %v337_v27 = vmul.f32 %v571_v24, %v571_v24 }
  0xe2   :  { %v346_v41 = vadd.f32 %v345_v36, %v344_v34  ;;  %v439_v42 = vpack.c.bf16 %v466_v37, %v466_v37  ;;  %v160_v43 = vpop.f32.mrb[5].mxu0  ;;  %v295_v45 = vadd.f32 %v294_v39, %v293_v33  ;;  %v614_v49 = vpop.f32.mrb[4].mxu1  ;;  %v332_v58 = vmul.f32 %v466_v37, %v466_v37 }
  0xe3   :  { %v437_v44 = vpack.c.bf16 %v160_v43, %v160_v43  ;;  %v296_v46 = vsel %vm288_vm2, %v160_v43, 0.0  ;;  %v330_v47 = vmul.f32 %v160_v43, %v160_v43  ;;  %v467_v48 = vpop.f32.mrb[6].mxu0  ;;  %v192_v53 = vpop.f32.mrb[5].mxu1  ;;  %v300_v1 = vsel %vm288_vm2, %v466_v37, 0.0 }
  0xe4   :  { %278 = vst.msk [vmem:[%s707_s4 + $0x18] sm:$0xf] %vm271_vm1, %v439_v42  ;;  %v348_v50 = vadd.f32 %v347_v40, %v346_v41  ;;  %v440_v51 = vpack.c.bf16 %v467_v48, %v467_v48  ;;  %v163_v52 = vpop.f32.mrb[7].mxu0  ;;  %v297_v54 = vadd.f32 %v296_v46, %v295_v45  ;;  %v625_v57 = vpop.f32.mrb[6].mxu1  ;;  %v333_v2 = vmul.f32 %v467_v48, %v467_v48 }
  0xe5   :  { %276 = vst.msk [vmem:[%s707_s4 + $0x10] sm:$0xf] %vm271_vm1, %v437_v44  ;;  %v349_v55 = vsel %vm288_vm2, %v330_v47, 0.0  ;;  %v438_v56 = vpack.c.bf16 %v163_v52, %v163_v52  ;;  %v298_v60 = vsel %vm288_vm2, %v163_v52, 0.0  ;;  %v331_v61 = vmul.f32 %v163_v52, %v163_v52  ;;  %v195_v62 = vpop.f32.mrb[7].mxu1 }
  0xe6   :  { %v350_v59 = vadd.f32 %v349_v55, %v348_v50  ;;  %279 = vst.msk [vmem:[%s707_s4 + $0x1c] sm:$0xf] %vm271_vm1, %v440_v51  ;;  %v299_v63 = vadd.f32 %v298_v60, %v297_v54  ;;  %v447_v4 = vpack.c.bf16 %v614_v49, %v614_v49  ;;  %v445_v7 = vpack.c.bf16 %v192_v53, %v192_v53 }
  0xe7   :  { %277 = vst.msk [vmem:[%s707_s4 + $0x14] sm:$0xf] %vm271_vm1, %v438_v56  ;;  %v351_v3 = vsel %vm288_vm2, %v331_v61, 0.0  ;;  %v353_v8 = vsel %vm288_vm2, %v332_v58, 0.0  ;;  %v302_v9 = vsel %vm288_vm2, %v467_v48, 0.0  ;;  %v448_v11 = vpack.c.bf16 %v625_v57, %v625_v57 }
  0xe8   :  { %v301_v5 = vadd.f32 %v300_v1, %v299_v63  ;;  %v352_v6 = vadd.f32 %v351_v3, %v350_v59  ;;  %286 = vst.msk [vmem:[%s707_s4 + $0x38] sm:$0xf] %vm271_vm1, %v447_v4  ;;  %284 = vst.msk [vmem:[%s707_s4 + $0x30] sm:$0xf] %vm271_vm1, %v445_v7  ;;  %v355_v14 = vsel %vm288_vm2, %v333_v2, 0.0  ;;  %v446_v18 = vpack.c.bf16 %v195_v62, %v195_v62 }
  0xe9   :  { %287 = vst.msk [vmem:[%s707_s4 + $0x3c] sm:$0xf] %vm271_vm1, %v448_v11  ;;  %v359_v29 = vsel %vm288_vm2, %v335_v17, 0.0  ;;  %v338_v30 = vmul.f32 %v192_v53, %v192_v53  ;;  %v361_v28 = vsel %vm288_vm2, %v336_v21, 0.0  ;;  %v310_v33 = vsel %vm288_vm2, %v571_v24, 0.0 }
  0xea   :  { %v354_v12 = vadd.f32 %v353_v8, %v352_v6  ;;  %v303_v13 = vadd.f32 %v302_v9, %v301_v5  ;;  %285 = vst.msk [vmem:[%s707_s4 + $0x34] sm:$0xf] %vm271_vm1, %v446_v18  ;;  %v312_v34 = vsel %vm288_vm2, %v192_v53, 0.0  ;;  %v363_v37 = vsel %vm288_vm2, %v337_v27, 0.0 }
  0xeb   :  { %v365_v15 = vsel %vm288_vm2, %v338_v30, 0.0  ;;  %v339_v38 = vmul.f32 %v195_v62, %v195_v62  ;;  %v340_v41 = vmul.f32 %v614_v49, %v614_v49  ;;  %v314_v42 = vsel %vm288_vm2, %v195_v62, 0.0 }
  0xec   :  { %v305_v19 = vadd.f32 %v304_v10, %v303_v13  ;;  %v356_v20 = vadd.f32 %v355_v14, %v354_v12  ;;  %v316_v24 = vsel %vm288_vm2, %v614_v49, 0.0  ;;  %v341_v45 = vmul.f32 %v625_v57, %v625_v57 }
  0xed   :  { %v367_v46 = vsel %vm288_vm2, %v339_v38, 0.0  ;;  %v369_v50 = vsel %vm288_vm2, %v340_v41, 0.0  ;;  %v318_v51 = vsel %vm288_vm2, %v625_v57, 0.0  ;;  %v379_v58 = vlaneseq }
  0xee   :  { %v358_v23 = vadd.f32 %v357_v16, %v356_v20  ;;  %v307_v25 = vadd.f32 %v306_v22, %v305_v19  ;;  %v371_v54 = vsel %vm288_vm2, %v341_v45, 0.0 }
  0xef   :  { %v380_v62 = vshrl.u32 %v379_v58, 7 }
  0xf0   :  { %v309_v31 = vadd.f32 %v308_v26, %v307_v25  ;;  %v360_v32 = vadd.f32 %v359_v29, %v358_v23 }
  0xf1   :  { %vm381_vm3 = vcmp.eq.s32.totalorder %v380_v62, 0 }
  0xf2   :  { %v362_v35 = vadd.f32 %v361_v28, %v360_v32  ;;  %v311_v36 = vadd.f32 %v310_v33, %v309_v31 }
  0xf4   :  { %v313_v39 = vadd.f32 %v312_v34, %v311_v36  ;;  %v364_v40 = vadd.f32 %v363_v37, %v362_v35 }
  0xf6   :  { %v366_v43 = vadd.f32 %v365_v15, %v364_v40  ;;  %v315_v44 = vadd.f32 %v314_v42, %v313_v39 }
  0xf8   :  { %v317_v47 = vadd.f32 %v316_v24, %v315_v44  ;;  %v368_v48 = vadd.f32 %v367_v46, %v366_v43 }
  0xfa   :  { %v319_v52 = vadd.f32 %v318_v51, %v317_v47  ;;  %v370_v53 = vadd.f32 %v369_v50, %v368_v48 }
  0xfc   :  { %v320_v55 = vrot.slane %v319_v52, 4  ;;  %v372_v56 = vadd.f32 %v371_v54, %v370_v53 }
  0xfe   :  { %v321_v49 = vadd.f32 %v320_v55, %v319_v52  ;;  %v373_v59 = vrot.slane %v372_v56, 4 }
 0x100   :  { %v322_v60 = vrot.slane %v321_v49, 2  ;;  %v374_v61 = vadd.f32 %v373_v59, %v372_v56 }
 0x102   :  { %v323_v63 = vadd.f32 %v322_v60, %v321_v49  ;;  %v375_v0 = vrot.slane %v374_v61, 2 }
 0x104   :  { %v324_v1 = vrot.slane %v323_v63, 1  ;;  %v376_v2 = vadd.f32 %v375_v0, %v374_v61 }
 0x106   :  { %v325_v3 = vadd.f32 %v324_v1, %v323_v63  ;;  %v377_v4 = vrot.slane %v376_v2, 1 }
 0x108   :  { %v378_v57 = vadd.f32 %v377_v4, %v376_v2  ;;  %v384_v5 = vsel %vm381_vm3, %v325_v3, 0.0 }
 0x109   :  { %385 = vst.msk [vmem:[%s708_s5] sm:$0xff] %vm288_vm2, %v384_v5 }
 0x10a   :  { %v386_v6 = vsel %vm381_vm3, %v378_v57, 0.0 }
 0x10b   :  { %387 = vst.msk [vmem:[%s709_s6] sm:$0xff] %vm288_vm2, %v386_v6 }

// kernel: bottleneck_forward_nhwc.9
= control target key start
LH: loop header
LB: loop body
LE: loop exit
PB: predicated region body
PF: predicated region fallthrough
CT: control target
= control target key end

     0   :  { %vm276_vm0 = vcmask 257024   ;;  %s648_s0 = inlined_call_operand.vmem [shape: bf16[128,32], index: 0, kind: input, shape index: {}]   ;;  %s649_s1 = inlined_call_operand.vmem [shape: bf16[128,32], index: 1, kind: input, shape index: {}]   ;;  %s650_s2 = inlined_call_operand.vmem [shape: f32[1,32], index: 2, kind: input, shape index: {}]   ;;  %s651_s3 = inlined_call_operand.vmem [shape: f32[1,32], index: 3, kind: input, shape index: {}]   ;;  %s652_s4 = inlined_call_operand.vmem [shape: f32[1,32], index: 4, kind: input, shape index: {}]   ;;  %s653_s5 = inlined_call_operand.vmem [shape: f32[1,32], index: 5, kind: input, shape index: {}]   ;;  %s654_s6 = inlined_call_operand.hbm [shape: bf16[128,32], index: 6, kind: output, shape index: {}]  }
   0x1   :  { %v346_v0 = vld [vmem:[%s648_s0] sm:$0xff]   ;;  %v409_v9 = vld [vmem:[%s648_s0 + $0x8] sm:$0xff]   ;;  %v410_v20 = vld [vmem:[%s648_s0 + $0x10] sm:$0xff]  }
   0x2   :  { %v494_v1 = vld [vmem:[%s650_s2] ss:$0 sm:$0xff]  ;;  %v347_v2 = vunpack.c.l.bf16 %v346_v0  ;;  %v348_v5 = vunpack.c.h.bf16 %v346_v0  ;;  %v416_v10 = vld [vmem:[%s649_s1 + $0x8] sm:$0xff]   ;;  %v351_v14 = vunpack.c.l.bf16 %v409_v9  ;;  %v352_v18 = vunpack.c.h.bf16 %v409_v9  ;;  %v417_v21 = vld [vmem:[%s649_s1 + $0x10] sm:$0xff]  }
   0x3   :  { %v378_v3 = vld [vmem:[%s649_s1] sm:$0xff]   ;;  %v383_v15 = vunpack.c.l.bf16 %v416_v10  ;;  %v384_v19 = vunpack.c.h.bf16 %v416_v10 }
   0x4   :  { %v502_v4 = vld [vmem:[%s652_s4] ss:$0 sm:$0xff]  ;;  %v379_v7 = vunpack.c.l.bf16 %v378_v3  ;;  %v380_v8 = vunpack.c.h.bf16 %v378_v3  ;;  %v63_v11 = vmul.f32 %v347_v2, %v494_v1  ;;  %v64_v13 = vmul.f32 %v348_v5, %v494_v1 }
   0x5   :  { %v507_v6 = vld [vmem:[%s651_s3] ss:$0 sm:$0xff]  ;;  %v65_v24 = vmul.f32 %v351_v14, %v494_v1  ;;  %v143_v25 = vmul.f32 %v383_v15, %v502_v4  ;;  %v66_v28 = vmul.f32 %v352_v18, %v494_v1  ;;  %v144_v29 = vmul.f32 %v384_v19, %v502_v4 }
   0x6   :  { %v519_v12 = vld [vmem:[%s653_s5] ss:$0 sm:$0xff]  ;;  %v141_v16 = vmul.f32 %v379_v7, %v502_v4  ;;  %v142_v17 = vmul.f32 %v380_v8, %v502_v4  ;;  %v86_v22 = vadd.f32 %v507_v6, %v63_v11  ;;  %v87_v23 = vadd.f32 %v507_v6, %v64_v13 }
   0x8   :  { %v164_v26 = vadd.f32 %v519_v12, %v141_v16  ;;  %v165_v27 = vadd.f32 %v519_v12, %v142_v17 }
   0x9   :  { %11 = vsyncpa [#allocation3], 0  ;;  %v88_v30 = vadd.f32 %v507_v6, %v65_v24  ;;  %v166_v31 = vadd.f32 %v519_v12, %v143_v25  ;;  %v355_v32 = vunpack.c.l.bf16 %v410_v20  ;;  %v387_v33 = vunpack.c.l.bf16 %v417_v21  ;;  %v411_v46 = vld [vmem:[%s648_s0 + $0x18] sm:$0xff]   ;;  %v412_v56 = vld [vmem:[%s648_s0 + $0x20] sm:$0xff]  }
   0xa   :  { %v180_v34 = vadd.f32 %v164_v26, %v86_v22  ;;  %v181_v35 = vadd.f32 %v165_v27, %v87_v23  ;;  %v89_v36 = vadd.f32 %v507_v6, %v66_v28  ;;  %v167_v37 = vadd.f32 %v519_v12, %v144_v29  ;;  %v418_v51 = vld [vmem:[%s649_s1 + $0x18] sm:$0xff]   ;;  %v419_v61 = vld [vmem:[%s649_s1 + $0x20] sm:$0xff]   ;;  %v413_v18 = vld [vmem:[%s648_s0 + $0x28] sm:$0xff]  }
   0xb   :  { %v182_v38 = vadd.f32 %v166_v31, %v88_v30  ;;  %v67_v39 = vmul.f32 %v355_v32, %v494_v1  ;;  %v145_v40 = vmul.f32 %v387_v33, %v502_v4  ;;  %v356_v41 = vunpack.c.h.bf16 %v410_v20  ;;  %v420_v23 = vld [vmem:[%s649_s1 + $0x28] sm:$0xff]  }
   0xc   :  { %v196_v42 = vmax.f32 %v180_v34, 0.0  ;;  %v197_v43 = vmax.f32 %v181_v35, 0.0  ;;  %v183_v44 = vadd.f32 %v167_v37, %v89_v36  ;;  %v388_v45 = vunpack.c.h.bf16 %v417_v21 }
   0xd   :  { %v198_v47 = vmax.f32 %v182_v38, 0.0  ;;  %v90_v48 = vadd.f32 %v507_v6, %v67_v39  ;;  %v168_v49 = vadd.f32 %v519_v12, %v145_v40  ;;  %v68_v50 = vmul.f32 %v356_v41, %v494_v1 }
   0xe   :  { %v329_v52 = vpack.c.bf16 %v196_v42, %v196_v42  ;;  %v330_v53 = vpack.c.bf16 %v197_v43, %v197_v43  ;;  %v199_v54 = vmax.f32 %v183_v44, 0.0  ;;  %v146_v55 = vmul.f32 %v388_v45, %v502_v4  ;;  %v414_v44 = vld [vmem:[%s648_s0 + $0x30] sm:$0xff]  }
   0xf   :  { %v331_v57 = vpack.c.bf16 %v198_v47, %v198_v47  ;;  %v184_v58 = vadd.f32 %v168_v49, %v90_v48  ;;  %v91_v59 = vadd.f32 %v507_v6, %v68_v50  ;;  %v359_v60 = vunpack.c.l.bf16 %v411_v46  ;;  %v421_v45 = vld [vmem:[%s649_s1 + $0x30] sm:$0xff]  }
  0x10   :  { %277 = vst.msk [vmem:[#allocation2] sm:$0xf] %vm276_vm0, %v329_v52  ;;  %278 = vst.msk [vmem:[#allocation2 + $0x4] sm:$0xf] %vm276_vm0, %v330_v53  ;;  %v332_v62 = vpack.c.bf16 %v199_v54, %v199_v54  ;;  %v169_v63 = vadd.f32 %v519_v12, %v146_v55  ;;  %v391_v0 = vunpack.c.l.bf16 %v418_v51  ;;  %v360_v2 = vunpack.c.h.bf16 %v411_v46  ;;  %v415_v54 = vld [vmem:[%s648_s0 + $0x38] sm:$0xff]  }
  0x11   :  { %279 = vst.msk [vmem:[#allocation2 + $0x8] sm:$0xf] %vm276_vm0, %v331_v57  ;;  %v200_v3 = vmax.f32 %v184_v58, 0.0  ;;  %v69_v5 = vmul.f32 %v359_v60, %v494_v1  ;;  %v392_v7 = vunpack.c.h.bf16 %v418_v51  ;;  %v363_v8 = vunpack.c.l.bf16 %v412_v56 }
  0x12   :  { %280 = vst.msk [vmem:[#allocation2 + $0xc] sm:$0xf] %vm276_vm0, %v332_v62  ;;  %v185_v9 = vadd.f32 %v169_v63, %v91_v59  ;;  %v147_v10 = vmul.f32 %v391_v0, %v502_v4  ;;  %v70_v11 = vmul.f32 %v360_v2, %v494_v1  ;;  %v395_v13 = vunpack.c.l.bf16 %v419_v61 }
  0x13   :  { %v333_v14 = vpack.c.bf16 %v200_v3, %v200_v3  ;;  %v92_v15 = vadd.f32 %v507_v6, %v69_v5  ;;  %v148_v16 = vmul.f32 %v392_v7, %v502_v4  ;;  %v71_v17 = vmul.f32 %v363_v8, %v494_v1  ;;  %v422_v5 = vld [vmem:[%s649_s1 + $0x38] sm:$0xff]   ;;  %s450_s1 = smov [#allocation2]  }
  0x14   :  { %v201_v19 = vmax.f32 %v185_v9, 0.0  ;;  %v170_v20 = vadd.f32 %v519_v12, %v147_v10  ;;  %v93_v21 = vadd.f32 %v507_v6, %v70_v11  ;;  %v149_v22 = vmul.f32 %v395_v13, %v502_v4  ;;  %s298_s7 = sshll.u32 %s450_s1, 4  ;;  %s299_s7 = int_to_ptr.vmem [resolvable:$true] %s298_s7 }
  0x15   :  { %281 = vst.msk [vmem:[#allocation2 + $0x10] sm:$0xf] %vm276_vm0, %v333_v14  ;;  %v171_v24 = vadd.f32 %v519_v12, %v148_v16  ;;  %v94_v25 = vadd.f32 %v507_v6, %v71_v17  ;;  %v364_v26 = vunpack.c.h.bf16 %v412_v56  ;;  %v396_v27 = vunpack.c.h.bf16 %v419_v61  ;;  %s426_s8 = scalar_lea.vmem %s299_s7, 1024  ;;  %p431_p1 = scmp.lt.s32.totalorder %s299_s7, %s299_s7 }
  0x16   :  { %v334_v28 = vpack.c.bf16 %v201_v19, %v201_v19  ;;  %v186_v29 = vadd.f32 %v170_v20, %v92_v15  ;;  %v172_v30 = vadd.f32 %v519_v12, %v149_v22  ;;  %v367_v31 = vunpack.c.l.bf16 %v413_v18  ;;  %p427_p0 = scmp.ne.s32.totalorder %s299_s7, %s426_s8  ;;  %p432_p2 = scmp.lt.s32.totalorder %s426_s8, %s426_s8 }
  0x17   :  { %v187_v32 = vadd.f32 %v171_v24, %v93_v21  ;;  %v72_v33 = vmul.f32 %v364_v26, %v494_v1  ;;  %v150_v34 = vmul.f32 %v396_v27, %v502_v4  ;;  %v399_v35 = vunpack.c.l.bf16 %v420_v23 }
  0x18   :  { %282 = vst.msk [vmem:[#allocation2 + $0x14] sm:$0xf] %vm276_vm0, %v334_v28  ;;  %v202_v36 = vmax.f32 %v186_v29, 0.0  ;;  %v188_v37 = vadd.f32 %v172_v30, %v94_v25  ;;  %v73_v38 = vmul.f32 %v367_v31, %v494_v1  ;;  %v368_v39 = vunpack.c.h.bf16 %v413_v18  ;;  %p433_p3 = por %p432_p2, %p431_p1 }
  0x19   :  { %v203_v40 = vmax.f32 %v187_v32, 0.0  ;;  %v95_v41 = vadd.f32 %v507_v6, %v72_v33  ;;  %v173_v42 = vadd.f32 %v519_v12, %v150_v34  ;;  %v151_v43 = vmul.f32 %v399_v35, %v502_v4 }
  0x1a   :  { %v335_v46 = vpack.c.bf16 %v202_v36, %v202_v36  ;;  %v204_v47 = vmax.f32 %v188_v37, 0.0  ;;  %v96_v48 = vadd.f32 %v507_v6, %v73_v38  ;;  %v74_v49 = vmul.f32 %v368_v39, %v494_v1  ;;  %p434_p4 = pnand %p433_p3, %p427_p0 }
  0x1b   :  { %v336_v50 = vpack.c.bf16 %v203_v40, %v203_v40  ;;  %v189_v51 = vadd.f32 %v173_v42, %v95_v41  ;;  %v174_v52 = vadd.f32 %v519_v12, %v151_v43  ;;  %v400_v53 = vunpack.c.h.bf16 %v420_v23 }
  0x1c   :  { %283 = vst.msk [vmem:[#allocation2 + $0x18] sm:$0xf] %vm276_vm0, %v335_v46  ;;  %v337_v55 = vpack.c.bf16 %v204_v47, %v204_v47  ;;  %v97_v56 = vadd.f32 %v507_v6, %v74_v49  ;;  %v371_v57 = vunpack.c.l.bf16 %v414_v44  ;;  %v403_v58 = vunpack.c.l.bf16 %v421_v45 }
  0x1d   :  { %284 = vst.msk [vmem:[#allocation2 + $0x1c] sm:$0xf] %vm276_vm0, %v336_v50  ;;  %v205_v59 = vmax.f32 %v189_v51, 0.0  ;;  %v190_v60 = vadd.f32 %v174_v52, %v96_v48  ;;  %v152_v61 = vmul.f32 %v400_v53, %v502_v4  ;;  %v372_v62 = vunpack.c.h.bf16 %v414_v44 }
  0x1e   :  { %285 = vst.msk [vmem:[#allocation2 + $0x20] sm:$0xf] %vm276_vm0, %v337_v55  ;;  %v75_v63 = vmul.f32 %v371_v57, %v494_v1  ;;  %v153_v0 = vmul.f32 %v403_v58, %v502_v4  ;;  %v404_v2 = vunpack.c.h.bf16 %v421_v45  ;;  %v375_v3 = vunpack.c.l.bf16 %v415_v54 }
  0x1f   :  { %v338_v7 = vpack.c.bf16 %v205_v59, %v205_v59  ;;  %v206_v8 = vmax.f32 %v190_v60, 0.0  ;;  %v175_v9 = vadd.f32 %v519_v12, %v152_v61  ;;  %v76_v10 = vmul.f32 %v372_v62, %v494_v1 }
  0x20   :  { %v98_v11 = vadd.f32 %v507_v6, %v75_v63  ;;  %v176_v13 = vadd.f32 %v519_v12, %v153_v0  ;;  %v154_v14 = vmul.f32 %v404_v2, %v502_v4  ;;  %v77_v15 = vmul.f32 %v375_v3, %v494_v1 }
  0x21   :  { %286 = vst.msk [vmem:[#allocation2 + $0x24] sm:$0xf] %vm276_vm0, %v338_v7  ;;  %v339_v16 = vpack.c.bf16 %v206_v8, %v206_v8  ;;  %v191_v17 = vadd.f32 %v175_v9, %v97_v56  ;;  %v99_v18 = vadd.f32 %v507_v6, %v76_v10  ;;  %v407_v19 = vunpack.c.l.bf16 %v422_v5 }
  0x22   :  { %v192_v20 = vadd.f32 %v176_v13, %v98_v11  ;;  %v177_v21 = vadd.f32 %v519_v12, %v154_v14  ;;  %v376_v22 = vunpack.c.h.bf16 %v415_v54  ;;  %v100_v24 = vadd.f32 %v507_v6, %v77_v15 }
  0x23   :  { %287 = vst.msk [vmem:[#allocation2 + $0x28] sm:$0xf] %vm276_vm0, %v339_v16  ;;  %v207_v23 = vmax.f32 %v191_v17, 0.0  ;;  %v155_v25 = vmul.f32 %v407_v19, %v502_v4  ;;  %v408_v26 = vunpack.c.h.bf16 %v422_v5 }
  0x24   :  { %v208_v27 = vmax.f32 %v192_v20, 0.0  ;;  %v193_v28 = vadd.f32 %v177_v21, %v99_v18  ;;  %v78_v29 = vmul.f32 %v376_v22, %v494_v1 }
  0x25   :  { %v340_v30 = vpack.c.bf16 %v207_v23, %v207_v23  ;;  %v178_v31 = vadd.f32 %v519_v12, %v155_v25  ;;  %v156_v32 = vmul.f32 %v408_v26, %v502_v4 }
  0x26   :  { %v341_v33 = vpack.c.bf16 %v208_v27, %v208_v27  ;;  %v209_v34 = vmax.f32 %v193_v28, 0.0  ;;  %v101_v35 = vadd.f32 %v507_v6, %v78_v29 }
  0x27   :  { %288 = vst.msk [vmem:[#allocation2 + $0x2c] sm:$0xf] %vm276_vm0, %v340_v30  ;;  %v194_v36 = vadd.f32 %v178_v31, %v100_v24  ;;  %v179_v37 = vadd.f32 %v519_v12, %v156_v32 }
  0x28   :  { %289 = vst.msk [vmem:[#allocation2 + $0x30] sm:$0xf] %vm276_vm0, %v341_v33  ;;  %v342_v38 = vpack.c.bf16 %v209_v34, %v209_v34 }
  0x29   :  { %v210_v39 = vmax.f32 %v194_v36, 0.0  ;;  %v195_v40 = vadd.f32 %v179_v37, %v101_v35 }
  0x2a   :  { %290 = vst.msk [vmem:[#allocation2 + $0x34] sm:$0xf] %vm276_vm0, %v342_v38 }
  0x2b   :  { %v343_v1 = vpack.c.bf16 %v210_v39, %v210_v39  ;;  %v211_v4 = vmax.f32 %v195_v40, 0.0 }
  0x2d   :  { %291 = vst.msk [vmem:[#allocation2 + $0x38] sm:$0xf] %vm276_vm0, %v343_v1  ;;  %v344_v41 = vpack.c.bf16 %v211_v4, %v211_v4 }
  0x2f   :  { %292 = vst.msk [vmem:[#allocation2 + $0x3c] sm:$0xf] %vm276_vm0, %v344_v41 }
  0x30   :  { %437 = shalt.err (!%p434_p4)
}
  0x31   :  { %s438_s10 = scalar_lea.hbm %s654_s6, 1024 }
  0x32   :  { %p439_p5 = scmp.ne.s32.totalorder %s654_s6, %s438_s10  ;;  %p442_p6 = scmp.lt.u32.totalorder %s438_s10, %s654_s6 }
  0x34   :  { %p444_p7 = pnand %p442_p6, %p439_p5 }
  0x36   :  { %447 = shalt.err (!%p444_p7)
}
  0x37   :  { %s451_s5 = smov 64   ;;  %s452_s14 = smov 4  }
  0x38   :  { %304 = dma.vmem_to_hbm [thread:$0]  %s299_s7, 1024, %s654_s6, [#allocation3], %s451_s5, %s451_s5, %s452_s14  }
  0x39   :  { %448 = dma.done.wait [#allocation3], 1024  }
  0x3a   :  { %449 = vsyncadd [#allocation3], 4294966272 }
  0x3b   :  { %308 = vsyncpa [#allocation3], 1 }

// kernel: bottleneck_forward_nhwc.6
= control target key start
LH: loop header
LB: loop body
LE: loop exit
PB: predicated region body
PF: predicated region fallthrough
CT: control target
= control target key end

     0   :  { %s3498_s21 = smov 0   ;;  %s4372_s0 = inlined_call_operand.vmem [shape: bf16[8,9,9,8], index: 0, kind: input, shape index: {}]   ;;  %s4373_s1 = inlined_call_operand.vmem [shape: bf16[3,3,8,8], index: 1, kind: input, shape index: {}]   ;;  %s4374_s2 = inlined_call_operand.vmem [shape: f32[1,8], index: 2, kind: input, shape index: {}]   ;;  %s4375_s3 = inlined_call_operand.vmem [shape: f32[1,8], index: 3, kind: input, shape index: {}]   ;;  %s4376_s4 = inlined_call_operand.vmem [shape: bf16[128,8], index: 4, kind: output, shape index: {0}]   ;;  %s4377_s5 = inlined_call_operand.vmem [shape: f32[16,8], index: 5, kind: output, shape index: {1}]   ;;  %s4378_s6 = inlined_call_operand.vmem [shape: f32[16,8], index: 6, kind: output, shape index: {2}]  }
   0x1 LB: > { %s3504_s22 = sadd.s32 4294967295, %s3460_s21   ;;  %p2974_p0 = scmp.ge.s32.totalorder %s3460_s21, 1  ;;  %s3460_s21 = sphi %s3498_s21, %s17_s21  }
   0x2   : > { %p219_p1 = scmp.lt.s32.totalorder %s3460_s21, 3 }
   0x4   : > { %p220_p2 = pnand %p2974_p0, %p219_p1 }
   0x5   : > { %v1223_v0 = vld [vmem:[%s4373_s1] sm:$0xf] (!%p220_p2)  ;;  %vm1257_vm0 = vcmask (!%p220_p2), 1043456   ;;  %s2975_s25 = sshll.u32 (!%p220_p2), %s3504_s22, 2  ;;  %v282_v1 = vlaneseq (!%p220_p2)  ;;  %vm499_vm1 = vcmask (!%p220_p2), 60416   ;;  %v3462_v4 = vmov (!%p220_p2), 0.0|0.0  }
   0x6   : > { %223 = sbr.rel (%p220_p2) target bundleno = 451 (0x1c3), region = 36  ;;  %3409 = vmatprep.subr.msk.bf16.mxu1 (!%p220_p2), %vm1257_vm0, %v1223_v0  ;;  %3408 = vmatprep.subr.msk.bf16.mxu0 (!%p220_p2), %vm1257_vm0, %v1223_v0  ;;  %v1259_v2 = vsel (!%p220_p2), %vm1257_vm0, %v1223_v0, 0  ;;  %p259_p3 = scmp.lt.s32.totalorder (!%p220_p2), %s2975_s25, 7  ;;  %v2983_v5 = vcombine.low (!%p220_p2), %v3462_v4, %v3462_v4  ;;  %vm501_vm2 = vcmask (!%p220_p2), 57344   ;;  %v744_v6 = vld [vmem:[#allocation2 + $0x4c] sm:$0x1] (!%p220_p2)  ;;  %v3517_v7 = vcombine.high (!%p220_p2), %v3462_v4, %v3462_v4 }
   0x7   : > { %3407 = vmatpush3.bf16.msra.mxu1 (!%p220_p2), %v1259_v2  ;;  %3317 = vmatpush3.bf16.msra.mxu0 (!%p220_p2), %v1259_v2  ;;  %v3515_v3 = vshrl.u32 (!%p220_p2), %v282_v1, 7  ;;  %vm502_vm3 = vsmask.f32 (!%p220_p2), 256  ;;  %v3540_v13 = vld [vmem:[%s4374_s2] ss:$0 sm:$0xff] (!%p220_p2)  ;;  %vm1244_vm11 = vcmask (!%p220_p2), 64512  }
   0x8   : > { %500 = vst.msk [vmem:[#allocation2] sm:$0xf] (!%p220_p2), %vm499_vm1, %v2983_v5  ;;  %vm3522_vm4 = vmand (!%p220_p2), %vm501_vm2, %vm502_vm3  ;;  %v994_v14 = vld [vmem:[#allocation2 + $0xd4] sm:$0x1] (!%p220_p2)  ;;  %v3545_v15 = vld [vmem:[%s4375_s3] ss:$0 sm:$0xff] (!%p220_p2) }
   0x9   : > { %v284_v8 = vadd.s32 (!%p220_p2), 8, %v3515_v3  ;;  %v285_v9 = vmul.u32 (!%p220_p2), 2, %v3515_v3  ;;  %743 = vst.msk [vmem:[#allocation2 + $0x48] sm:$0xf] (!%p220_p2), %vm499_vm1, %v2983_v5  ;;  %v745_v11 = vsel (!%p220_p2), %vm3522_vm4, %v3517_v7, %v744_v6  ;;  %v995_v19 = vsel (!%p220_p2), %vm3522_vm4, %v3517_v7, %v994_v14  ;;  %v748_v4 = vld [vmem:[#allocation2 + $0x54] sm:$0x1] (!%p220_p2) }
   0xa   : > { %746 = vst [vmem:[#allocation2 + $0x4c] sm:$0x1] (!%p220_p2), %v745_v11  ;;  %996 = vst [vmem:[#allocation2 + $0xd4] sm:$0x1] (!%p220_p2), %v995_v19  ;;  %v752_v5 = vld [vmem:[#allocation2 + $0x5c] sm:$0x1] (!%p220_p2) }
   0xb   : > { %v3530_v12 = vmul.u32 (!%p220_p2), 2, %v284_v8  ;;  %vm287_vm5 = vcmp.ge.s32.totalorder (!%p220_p2), %v285_v9, 1  ;;  %vm293_vm6 = vcmp.le.s32.totalorder (!%p220_p2), %v285_v9, 16  ;;  %v3555_v20 = vadd.s32 (!%p220_p2), 1, %v285_v9  ;;  %v756_v14 = vld [vmem:[#allocation2 + $0x64] sm:$0x1] (!%p220_p2) }
   0xc   : > { %vm3575_vm9 = vmand (!%p220_p2), %vm287_vm5, %vm293_vm6  ;;  %v768_v19 = vld [vmem:[#allocation2 + $0x7c] sm:$0x1] (!%p220_p2)  ;;  %vm1484_vm3 = vsmask.f32 (!%p220_p2), 3328  ;;  %vm1485_vm5 = vsmask.f32 (!%p220_p2), 7440 }
   0xd   : > { %s4392_s25 = smov (!%p259_p3, %s2975_s25), 7  ;;  %v540_v17 = vadd.s32 1, %v3530_v12  ;;  %vm541_vm12 = vcmp.ge.s32.totalorder %v3555_v20, 1  ;;  %vm547_vm13 = vcmp.le.s32.totalorder %v3555_v20, 16  ;;  %vm288_vm15 = vcmp.ge.s32.totalorder %v3530_v12, 1  ;;  %p271_p5 = scmp.lt.s32.totalorder %s3504_s22, 1 }
   0xe   : > { %s3418_s26 = smul.u32 72, %s4392_s25  ;;  %vm3753_vm14 = vmand %vm541_vm12, %vm547_vm13  ;;  %vm294_vm2 = vcmp.le.s32.totalorder %v3530_v12, 16 }
   0xf   : > { %vm542_vm7 = vcmp.ge.s32.totalorder %v540_v17, 1  ;;  %vm548_vm8 = vcmp.le.s32.totalorder %v540_v17, 16  ;;  %v760_v17 = vld [vmem:[#allocation2 + $0x6c] sm:$0x1]  ;;  %vm3797_vm6 = vmand %vm288_vm15, %vm294_vm2 }
  0x10   : > { %s3535_s29 = scalar_lea.vmem %s4372_s0, %s3418_s26  ;;  %vm3588_vm10 = vmand %vm542_vm7, %vm548_vm8 }
  0x11   : > { %v3548_v16 = vld [vmem:[%s3535_s29 + $0x8] ss:$24 sps:$4 sm:$0xff]   ;;  %v3004_v18 = vld [vmem:[%s3535_s29 + $0x54] sm:$0x1]  ;;  %v3006_v22 = vld [vmem:[%s3535_s29 + $0x5c] sm:$0x1] }
  0x12   : > { %v319_v21 = vunpack.c.l.bf16 %v3548_v16  ;;  %v3008_v23 = vld [vmem:[%s3535_s29 + $0x64] sm:$0x1]  ;;  %v3010_v24 = vld [vmem:[%s3535_s29 + $0x6c] sm:$0x1]  ;;  %v575_v25 = vunpack.c.l.bf16 %v3004_v18  ;;  %v325_v26 = vunpack.c.h.bf16 %v3548_v16  ;;  %v3012_v27 = vld [vmem:[%s3535_s29 + $0x74] sm:$0x1]  ;;  %v577_v29 = vunpack.c.l.bf16 %v3006_v22 }
  0x13   : > { %v3014_v28 = vld [vmem:[%s3535_s29 + $0x7c] sm:$0x1]  ;;  %v579_v30 = vunpack.c.l.bf16 %v3008_v23  ;;  %v3016_v32 = vld [vmem:[%s3535_s29 + $0x84] sm:$0x1]  ;;  %v3018_v33 = vld [vmem:[%s3535_s29 + $0x8c] sm:$0x1]  ;;  %v581_v34 = vunpack.c.l.bf16 %v3010_v24  ;;  %v583_v35 = vunpack.c.l.bf16 %v3012_v27 }
  0x14   : > { %v343_v31 = vmul.f32 %v3540_v13, %v319_v21  ;;  %v585_v36 = vunpack.c.l.bf16 %v3014_v28  ;;  %v587_v37 = vunpack.c.l.bf16 %v3016_v32  ;;  %v589_v38 = vunpack.c.l.bf16 %v3018_v33  ;;  %v764_v18 = vld [vmem:[#allocation2 + $0x74] sm:$0x1]  ;;  %v776_v27 = vld [vmem:[#allocation2 + $0x8c] sm:$0x1]  ;;  %v3074_v28 = vld [vmem:[%s3535_s29 + $0xdc] sm:$0x1] }
  0x15   : > { %v593_v39 = vmul.f32 %v3540_v13, %v575_v25  ;;  %v595_v40 = vmul.f32 %v3540_v13, %v577_v29  ;;  %v597_v42 = vmul.f32 %v3540_v13, %v579_v30  ;;  %v599_v43 = vmul.f32 %v3540_v13, %v581_v34  ;;  %v772_v25 = vld [vmem:[#allocation2 + $0x84] sm:$0x1]  ;;  %vm3833_vm7 = vmor %vm1484_vm3, %vm1485_vm5 }
  0x16   : > { %v367_v41 = vadd.f32 %v3545_v15, %v343_v31  ;;  %v601_v44 = vmul.f32 %v3540_v13, %v583_v35  ;;  %v603_v46 = vmul.f32 %v3540_v13, %v585_v36  ;;  %v605_v47 = vmul.f32 %v3540_v13, %v587_v37  ;;  %v3076_v33 = vld [vmem:[%s3535_s29 + $0xe4] sm:$0x1] }
  0x17   : > { %v607_v48 = vmul.f32 %v3540_v13, %v589_v38  ;;  %v611_v49 = vadd.f32 %v3545_v15, %v593_v39  ;;  %v613_v51 = vadd.f32 %v3545_v15, %v595_v40  ;;  %v615_v52 = vadd.f32 %v3545_v15, %v597_v42  ;;  %v3620_v34 = vld [vmem:[%s4373_s1 + $0x4] sm:$0xf]  ;;  %v3078_v39 = vld [vmem:[%s3535_s29 + $0xec] sm:$0x1]  ;;  %v3080_v40 = vld [vmem:[%s3535_s29 + $0xf4] sm:$0x1] }
  0x18   : > { %v385_v50 = vmax.f32 %v367_v41, 0.0  ;;  %v617_v53 = vadd.f32 %v3545_v15, %v599_v43  ;;  %v619_v55 = vadd.f32 %v3545_v15, %v601_v44  ;;  %v621_v56 = vadd.f32 %v3545_v15, %v603_v46  ;;  %3410 = vmatprep.subr.msk.bf16.mxu1 %vm1257_vm0, %v3620_v34  ;;  %v3082_v46 = vld [vmem:[%s3535_s29 + $0xfc] sm:$0x1] }
  0x19   : > { %v623_v57 = vadd.f32 %v3545_v15, %v605_v47  ;;  %v625_v58 = vadd.f32 %v3545_v15, %v607_v48  ;;  %v629_v60 = vmax.f32 %v611_v49, 0.0  ;;  %v631_v61 = vmax.f32 %v613_v51, 0.0  ;;  %v3084_v47 = vld [vmem:[%s3535_s29 + $0x104] sm:$0x1]  ;;  %v3635_v48 = vld [vmem:[%s4373_s1 + $0x8] sm:$0xf] }
  0x1a   : > { %v411_v59 = vsel %vm3575_vm9, %v385_v50, 0.0  ;;  %v633_v62 = vmax.f32 %v615_v52, 0.0  ;;  %v635_v0 = vmax.f32 %v617_v53, 0.0  ;;  %v637_v1 = vmax.f32 %v619_v55, 0.0  ;;  %v3086_v53 = vld [vmem:[%s3535_s29 + $0x10c] sm:$0x1]  ;;  %3411 = vmatprep.subr.msk.bf16.mxu0 %vm1257_vm0, %v3635_v48 }
  0x1b   : > { %v3199_v63 = vpack.c.bf16 %v411_v59, %v411_v59  ;;  %v639_v2 = vmax.f32 %v621_v56, 0.0  ;;  %v641_v6 = vmax.f32 %v623_v57, 0.0  ;;  %v643_v8 = vmax.f32 %v625_v58, 0.0  ;;  %v3088_v55 = vld [vmem:[%s3535_s29 + $0x114] sm:$0x1] }
  0x1c   : > { %v655_v9 = vsel %vm3588_vm10, %v629_v60, 0.0  ;;  %v657_v11 = vsel %vm3588_vm10, %v631_v61, 0.0  ;;  %v659_v21 = vsel %vm3588_vm10, %v633_v62, 0.0  ;;  %v661_v22 = vsel %vm3588_vm10, %v635_v0, 0.0 }
  0x1d   : > { %507 = vst.msk [vmem:[#allocation2 + $0x8] sm:$0xf] %vm499_vm1, %v3199_v63  ;;  %v663_v23 = vsel %vm3588_vm10, %v637_v1, 0.0  ;;  %v665_v24 = vsel %vm3588_vm10, %v639_v2, 0.0  ;;  %v667_v29 = vsel %vm3588_vm10, %v641_v6, 0.0  ;;  %v669_v30 = vsel %vm3588_vm10, %v643_v8, 0.0 }
  0x1e   : > { %v3216_v31 = vpack.c.bf16 %v655_v9, %v655_v9  ;;  %v3218_v32 = vpack.c.bf16 %v657_v11, %v657_v11  ;;  %v3220_v35 = vpack.c.bf16 %v659_v21, %v659_v21  ;;  %v3222_v36 = vpack.c.bf16 %v661_v22, %v661_v22 }
  0x1f   : > { %v3224_v37 = vpack.c.bf16 %v663_v23, %v663_v23  ;;  %v3226_v38 = vpack.c.bf16 %v665_v24, %v665_v24  ;;  %v3228_v41 = vpack.c.bf16 %v667_v29, %v667_v29  ;;  %v3230_v42 = vpack.c.bf16 %v669_v30, %v669_v30 }
  0x20   : > { %v749_v43 = vsel %vm3522_vm4, %v3216_v31, %v748_v4  ;;  %v753_v44 = vsel %vm3522_vm4, %v3218_v32, %v752_v5  ;;  %v757_v49 = vsel %vm3522_vm4, %v3220_v35, %v756_v14  ;;  %v761_v50 = vsel %vm3522_vm4, %v3222_v36, %v760_v17  ;;  %v1180_v35 = vld [vmem:[#allocation2 + $0xdc] sm:$0x1]  ;;  %v1184_v36 = vld [vmem:[#allocation2 + $0xe4] sm:$0x1] }
  0x21   : > { %750 = vst [vmem:[#allocation2 + $0x54] sm:$0x1] %v749_v43  ;;  %754 = vst [vmem:[#allocation2 + $0x5c] sm:$0x1] %v753_v44  ;;  %v765_v51 = vsel %vm3522_vm4, %v3224_v37, %v764_v18  ;;  %v769_v52 = vsel %vm3522_vm4, %v3226_v38, %v768_v19  ;;  %v773_v56 = vsel %vm3522_vm4, %v3228_v41, %v772_v25  ;;  %v1017_v58 = vunpack.c.l.bf16 %v3074_v28  ;;  %v1188_v41 = vld [vmem:[#allocation2 + $0xec] sm:$0x1] }
  0x22   : > { %758 = vst [vmem:[#allocation2 + $0x64] sm:$0x1] %v757_v49  ;;  %762 = vst [vmem:[#allocation2 + $0x6c] sm:$0x1] %v761_v50  ;;  %v777_v57 = vsel %vm3522_vm4, %v3230_v42, %v776_v27  ;;  %v1019_v59 = vunpack.c.l.bf16 %v3076_v33  ;;  %v1021_v60 = vunpack.c.l.bf16 %v3078_v39  ;;  %v1023_v61 = vunpack.c.l.bf16 %v3080_v40  ;;  %v1192_v42 = vld [vmem:[#allocation2 + $0xf4] sm:$0x1] }
  0x23   : > { %766 = vst [vmem:[#allocation2 + $0x74] sm:$0x1] %v765_v51  ;;  %770 = vst [vmem:[#allocation2 + $0x7c] sm:$0x1] %v769_v52  ;;  %v1025_v62 = vunpack.c.l.bf16 %v3082_v46  ;;  %v1027_v63 = vunpack.c.l.bf16 %v3084_v47  ;;  %v1029_v0 = vunpack.c.l.bf16 %v3086_v53  ;;  %v1031_v1 = vunpack.c.l.bf16 %v3088_v55  ;;  %v1196_v49 = vld [vmem:[#allocation2 + $0xfc] sm:$0x1] }
  0x24   : > { %774 = vst [vmem:[#allocation2 + $0x84] sm:$0x1] %v773_v56  ;;  %778 = vst [vmem:[#allocation2 + $0x8c] sm:$0x1] %v777_v57  ;;  %v1035_v2 = vmul.f32 %v3540_v13, %v1017_v58  ;;  %v1037_v4 = vmul.f32 %v3540_v13, %v1019_v59  ;;  %v3428_v5 = vld [vmem:[#allocation2] ss:$8 sps:$4 sm:$0xff]   ;;  %v1039_v6 = vmul.f32 %v3540_v13, %v1021_v60 }
  0x25   : > { %v1041_v8 = vmul.f32 %v3540_v13, %v1023_v61  ;;  %v1043_v9 = vmul.f32 %v3540_v13, %v1025_v62  ;;  %v1045_v11 = vmul.f32 %v3540_v13, %v1027_v63  ;;  %v1047_v14 = vmul.f32 %v3540_v13, %v1029_v0  ;;  %3318 = vmatprep.mubr.msk.bf16.mxu0 %vm1244_vm11, %v3428_v5  ;;  %v1200_v55 = vld [vmem:[#allocation2 + $0x104] sm:$0x1]  ;;  %v1204_v56 = vld [vmem:[#allocation2 + $0x10c] sm:$0x1]  ;;  %v1208_v61 = vld [vmem:[#allocation2 + $0x114] sm:$0x1] }
  0x26   : > { %v1049_v17 = vmul.f32 %v3540_v13, %v1031_v1  ;;  %v1053_v18 = vadd.f32 %v3545_v15, %v1035_v2  ;;  %v1055_v19 = vadd.f32 %v3545_v15, %v1037_v4  ;;  %v1057_v21 = vadd.f32 %v3545_v15, %v1039_v6  ;;  %v1212_v62 = vld [vmem:[#allocation2 + $0x11c] sm:$0x1]  ;;  %v309_v63 = vld [vmem:[%s3535_s29 + $0x10] ss:$24 sps:$4 sm:$0xff]  }
  0x27   : > { %v1059_v22 = vadd.f32 %v3545_v15, %v1041_v8  ;;  %v1061_v23 = vadd.f32 %v3545_v15, %v1043_v9  ;;  %v1063_v24 = vadd.f32 %v3545_v15, %v1045_v11  ;;  %v1065_v25 = vadd.f32 %v3545_v15, %v1047_v14  ;;  %v305_v4 = vld [vmem:[%s3535_s29 + $0x18] ss:$24 sps:$4 sm:$0xff]  }
  0x28   : > { %v1067_v27 = vadd.f32 %v3545_v15, %v1049_v17  ;;  %v1071_v28 = vmax.f32 %v1053_v18, 0.0  ;;  %v1073_v29 = vmax.f32 %v1055_v19, 0.0  ;;  %v1075_v30 = vmax.f32 %v1057_v21, 0.0  ;;  %v313_v11 = vld [vmem:[%s3535_s29 + $0x38] ss:$24 sps:$4 sm:$0xff]  }
  0x29   : > { %v1077_v31 = vmax.f32 %v1059_v22, 0.0  ;;  %v1079_v32 = vmax.f32 %v1061_v23, 0.0  ;;  %v1081_v33 = vmax.f32 %v1063_v24, 0.0  ;;  %v1083_v37 = vmax.f32 %v1065_v25, 0.0  ;;  %v3005_v25 = vld [vmem:[%s3535_s29 + $0x58] ss:$8 sps:$4 sm:$0xff]  }
  0x2a   : > { %v1085_v38 = vmax.f32 %v1067_v27, 0.0  ;;  %v1089_v39 = vsel %vm3588_vm10, %v1071_v28, 0.0  ;;  %v1091_v40 = vsel %vm3588_vm10, %v1073_v29, 0.0  ;;  %v1093_v43 = vsel %vm3588_vm10, %v1075_v30, 0.0 }
  0x2b   : > { %v1095_v44 = vsel %vm3588_vm10, %v1077_v31, 0.0  ;;  %v1097_v46 = vsel %vm3588_vm10, %v1079_v32, 0.0  ;;  %v1099_v47 = vsel %vm3588_vm10, %v1081_v33, 0.0  ;;  %v1101_v50 = vsel %vm3588_vm10, %v1083_v37, 0.0 }
  0x2c   : > { %v1103_v51 = vsel %vm3588_vm10, %v1085_v38, 0.0  ;;  %v3248_v52 = vpack.c.bf16 %v1089_v39, %v1089_v39  ;;  %v3250_v53 = vpack.c.bf16 %v1091_v40, %v1091_v40  ;;  %v3252_v57 = vpack.c.bf16 %v1093_v43, %v1093_v43 }
  0x2d   : > { %v3254_v58 = vpack.c.bf16 %v1095_v44, %v1095_v44  ;;  %v3256_v59 = vpack.c.bf16 %v1097_v46, %v1097_v46  ;;  %v3258_v60 = vpack.c.bf16 %v1099_v47, %v1099_v47  ;;  %v3260_v0 = vpack.c.bf16 %v1101_v50, %v1101_v50 }
  0x2e   : > { %v3262_v1 = vpack.c.bf16 %v1103_v51, %v1103_v51  ;;  %v1181_v2 = vsel %vm3522_vm4, %v3248_v52, %v1180_v35  ;;  %v1185_v54 = vsel %vm3522_vm4, %v3250_v53, %v1184_v36  ;;  %v1189_v5 = vsel %vm3522_vm4, %v3252_v57, %v1188_v41 }
  0x2f   : > { %1182 = vst [vmem:[#allocation2 + $0xdc] sm:$0x1] %v1181_v2  ;;  %1186 = vst [vmem:[#allocation2 + $0xe4] sm:$0x1] %v1185_v54  ;;  %v1193_v6 = vsel %vm3522_vm4, %v3254_v58, %v1192_v42  ;;  %v1197_v8 = vsel %vm3522_vm4, %v3256_v59, %v1196_v49  ;;  %v1201_v9 = vsel %vm3522_vm4, %v3258_v60, %v1200_v55  ;;  %v327_v19 = vunpack.c.h.bf16 %v309_v63  ;;  %v3744_v59 = vld [vmem:[%s4373_s1 + $0xc] sm:$0xf] }
  0x30   : > { %1190 = vst [vmem:[#allocation2 + $0xec] sm:$0x1] %v1189_v5  ;;  %1194 = vst [vmem:[#allocation2 + $0xf4] sm:$0x1] %v1193_v6  ;;  %v1205_v14 = vsel %vm3522_vm4, %v3260_v0, %v1204_v56  ;;  %v1209_v17 = vsel %vm3522_vm4, %v3262_v1, %v1208_v61  ;;  %v1213_v18 = vsel %vm3522_vm4, %v3517_v7, %v1212_v62  ;;  %v321_v22 = vunpack.c.l.bf16 %v309_v63  ;;  %v302_v1 = vld [vmem:[%s3535_s29 + $0xc] sm:$0x1] }
  0x31   : > { %1198 = vst [vmem:[#allocation2 + $0xfc] sm:$0x1] %v1197_v8  ;;  %1202 = vst [vmem:[#allocation2 + $0x104] sm:$0x1] %v1201_v9  ;;  %v349_v21 = vmul.f32 %v3540_v13, %v325_v26  ;;  %v323_v23 = vunpack.c.l.bf16 %v305_v4  ;;  %v329_v24 = vunpack.c.h.bf16 %v305_v4  ;;  %v351_v27 = vmul.f32 %v3540_v13, %v327_v19  ;;  %v504_v6 = vld [vmem:[#allocation2 + $0x4] sm:$0x1] }
  0x32   : > { %1206 = vst [vmem:[#allocation2 + $0x10c] sm:$0x1] %v1205_v14  ;;  %1210 = vst [vmem:[#allocation2 + $0x114] sm:$0x1] %v1209_v17  ;;  %v331_v28 = vunpack.c.l.bf16 %v313_v11  ;;  %v3716_v29 = vsel %vm1257_vm0, %v3620_v34, 0  ;;  %v345_v31 = vmul.f32 %v3540_v13, %v321_v22  ;;  %v574_v35 = vunpack.c.h.bf16 %v313_v11 }
  0x33   : > { %1214 = vst [vmem:[#allocation2 + $0x11c] sm:$0x1] %v1213_v18  ;;  %v373_v30 = vadd.f32 %v3545_v15, %v349_v21  ;;  %v347_v16 = vmul.f32 %v3540_v13, %v323_v23  ;;  %v353_v26 = vmul.f32 %v3540_v13, %v329_v24  ;;  %v375_v32 = vadd.f32 %v3545_v15, %v351_v27  ;;  %v1468_v8 = vld [vmem:[#allocation2] sm:$0xf]  ;;  %v1470_v18 = vld [vmem:[#allocation2 + $0x8] sm:$0xf] }
  0x34   : > { %v355_v33 = vmul.f32 %v3540_v13, %v331_v28  ;;  %v576_v36 = vunpack.c.l.bf16 %v3005_v25  ;;  %v369_v34 = vadd.f32 %v3545_v15, %v345_v31  ;;  %v592_v42 = vmul.f32 %v3540_v13, %v574_v35  ;;  %v3009_v19 = vld [vmem:[%s3535_s29 + $0x68] ss:$8 sps:$4 sm:$0xff]   ;;  %v304_v24 = vld [vmem:[%s3535_s29 + $0x14] sm:$0x1]  ;;  %v306_v31 = vld [vmem:[%s3535_s29 + $0x1c] sm:$0x1] }
  0x35   : > { %v391_v37 = vmax.f32 %v373_v30, 0.0  ;;  %v371_v38 = vadd.f32 %v3545_v15, %v347_v16  ;;  %v377_v39 = vadd.f32 %v3545_v15, %v353_v26  ;;  %v393_v40 = vmax.f32 %v375_v32, 0.0  ;;  %v3786_v35 = vld [vmem:[%s3535_s29 + $0x78] ss:$8 sps:$4 sm:$0xff]  }
  0x36   : > { %v379_v41 = vadd.f32 %v3545_v15, %v355_v33  ;;  %v578_v43 = vunpack.c.h.bf16 %v3005_v25  ;;  %v387_v46 = vmax.f32 %v369_v34, 0.0  ;;  %v610_v53 = vadd.f32 %v3545_v15, %v592_v42 }
  0x37   : > { %v417_v44 = vsel %vm3575_vm9, %v391_v37, 0.0  ;;  %v389_v47 = vmax.f32 %v371_v38, 0.0  ;;  %v395_v49 = vmax.f32 %v377_v39, 0.0  ;;  %v419_v50 = vsel %vm3575_vm9, %v393_v40, 0.0 }
  0x38   : > { %v3205_v51 = vpack.c.bf16 %v417_v44, %v417_v44  ;;  %v397_v52 = vmax.f32 %v379_v41, 0.0  ;;  %v3207_v55 = vpack.c.bf16 %v419_v50, %v419_v50  ;;  %v413_v56 = vsel %vm3575_vm9, %v387_v46, 0.0  ;;  %v3804_v44 = vld [vmem:[%s4373_s1 + $0x10] sm:$0xf] }
  0x39   : > { %v415_v57 = vsel %vm3575_vm9, %v389_v47, 0.0  ;;  %v421_v58 = vsel %vm3575_vm9, %v395_v49, 0.0  ;;  %v3201_v60 = vpack.c.bf16 %v413_v56, %v413_v56  ;;  %v628_v54 = vmax.f32 %v610_v53, 0.0 }
  0x3a   : > { %519 = vst.msk [vmem:[#allocation2 + $0x20] sm:$0xf] %vm499_vm1, %v3205_v51  ;;  %v3203_v61 = vpack.c.bf16 %v415_v57, %v415_v57  ;;  %v423_v62 = vsel %vm3575_vm9, %v397_v52, 0.0  ;;  %v3209_v63 = vpack.c.bf16 %v421_v58, %v421_v58  ;;  %523 = vst.msk [vmem:[#allocation2 + $0x28] sm:$0xf] %vm499_vm1, %v3207_v55  ;;  %v594_v4 = vmul.f32 %v3540_v13, %v576_v36 }
  0x3b   : > { %v3211_v2 = vpack.c.bf16 %v423_v62, %v423_v62  ;;  %v596_v5 = vmul.f32 %v3540_v13, %v578_v43  ;;  %511 = vst.msk [vmem:[#allocation2 + $0x10] sm:$0xf] %vm499_vm1, %v3201_v60  ;;  %v1626_v20 = vsel %vm1257_vm0, %v3635_v48, 0  ;;  %v3768_v9 = vsel %vm1257_vm0, %v3744_v59, 0 }
  0x3c   : > { %515 = vst.msk [vmem:[#allocation2 + $0x18] sm:$0xf] %vm499_vm1, %v3203_v61  ;;  %527 = vst.msk [vmem:[#allocation2 + $0x30] sm:$0xf] %vm499_vm1, %v3209_v63  ;;  %v654_v11 = vsel %vm3753_vm14, %v628_v54, 0.0  ;;  %v612_v14 = vadd.f32 %v3545_v15, %v594_v4  ;;  %v320_v48 = vunpack.c.l.bf16 %v302_v1  ;;  %v505_v22 = vsel %vm3522_vm4, %v3517_v7, %v504_v6 }
  0x3d   : > { %531 = vst.msk [vmem:[#allocation2 + $0x38] sm:$0xf] %vm499_vm1, %v3211_v2  ;;  %v614_v17 = vadd.f32 %v3545_v15, %v596_v5  ;;  %v3215_v21 = vpack.c.bf16 %v654_v11, %v654_v11  ;;  %v1488_v23 = vshrl.u32 %v1468_v8, 16  ;;  %506 = vst [vmem:[#allocation2 + $0x4] sm:$0x1] %v505_v22  ;;  %v1491_v30 = vshll.u32 %v1468_v8, 16 }
  0x3e   : > { %v630_v25 = vmax.f32 %v612_v14, 0.0  ;;  %v344_v28 = vmul.f32 %v3540_v13, %v320_v48  ;;  %v1502_v26 = vshrl.u32 %v1470_v18, 16  ;;  %v1505_v32 = vshll.u32 %v1470_v18, 16  ;;  %v508_v63 = vld [vmem:[#allocation2 + $0xc] sm:$0x1] }
  0x3f   : > { %v632_v27 = vmax.f32 %v614_v17, 0.0  ;;  %747 = vst.msk [vmem:[#allocation2 + $0x50] sm:$0xf] %vm499_vm1, %v3215_v21  ;;  %v1490_v16 = vrot.slane %v1488_v23, 4  ;;  %v580_v33 = vunpack.c.l.bf16 %v3009_v19  ;;  %v1493_v34 = vrot.slane %v1491_v30, 5 }
  0x40   : > { %v656_v7 = vsel %vm3753_vm14, %v630_v25, 0.0  ;;  %v368_v37 = vadd.f32 %v3545_v15, %v344_v28  ;;  %v1504_v42 = vrot.slane %v1502_v26, 4  ;;  %v1507_v43 = vrot.slane %v1505_v32, 5  ;;  %v308_v26 = vld [vmem:[%s3535_s29 + $0x24] sm:$0x1] }
  0x41   : > { %v658_v36 = vsel %vm3753_vm14, %v632_v27, 0.0  ;;  %v3429_v38 = vld [vmem:[#allocation2 + $0x20] ss:$8 sps:$4 sm:$0xff]   ;;  %v3217_v39 = vpack.c.bf16 %v656_v7, %v656_v7  ;;  %v1494_v47 = vor.u32 %v1493_v34, %v1490_v16  ;;  %v582_v49 = vunpack.c.h.bf16 %v3009_v19  ;;  %v516_v16 = vld [vmem:[#allocation2 + $0x1c] sm:$0x1] }
  0x42   : > { %v3219_v40 = vpack.c.bf16 %v658_v36, %v658_v36  ;;  %v598_v50 = vmul.f32 %v3540_v13, %v580_v33  ;;  %v322_v51 = vunpack.c.l.bf16 %v304_v24  ;;  %3322 = vmatprep.mubr.msk.bf16.mxu1 %vm1244_vm11, %v3429_v38  ;;  %v1508_v52 = vor.u32 %v1507_v43, %v1504_v42  ;;  %v1472_v62 = vld [vmem:[#allocation2 + $0x10] sm:$0xf]  ;;  %v3863_v42 = vld [vmem:[%s4373_s1 + $0x14] sm:$0xf] }
  0x43   : > { %v3430_v46 = vld [vmem:[#allocation2 + $0x10] ss:$8 sps:$4 sm:$0xff]   ;;  %751 = vst.msk [vmem:[#allocation2 + $0x58] sm:$0xf] %vm499_vm1, %v3217_v39  ;;  %v324_v53 = vunpack.c.l.bf16 %v306_v31  ;;  %v584_v55 = vunpack.c.l.bf16 %v3786_v35  ;;  %v586_v56 = vunpack.c.h.bf16 %v3786_v35  ;;  %v386_v57 = vmax.f32 %v368_v37, 0.0 }
  0x44   : > { %v3431_v12 = vld [vmem:[#allocation2 + $0x30] ss:$8 sps:$4 sm:$0xff]   ;;  %755 = vst.msk [vmem:[#allocation2 + $0x60] sm:$0xf] %vm499_vm1, %v3219_v40  ;;  %3319 = vmatmul.mubr.msk.bf16.vlgmr.msra.gmra.mrb[0].mxu0 %vm1244_vm11, %v3430_v46  ;;  %v3813_v58 = vrot.slane %v1494_v47, 4  ;;  %v600_v60 = vmul.f32 %v3540_v13, %v582_v49  ;;  %v616_v61 = vadd.f32 %v3545_v15, %v598_v50  ;;  %v3818_v2 = vrot.slane %v1508_v52, 4 }
  0x45   : > { %3323 = vmatmul.mubr.msk.bf16.vlgmr.msra.gmra.mrb[0].mxu1 %vm1244_vm11, %v3431_v12  ;;  %3337 = vmatpush3.bf16.msra.mxu0 %v1626_v20  ;;  %v1469_v1 = vld [vmem:[#allocation2 + $0x4] sm:$0x1]  ;;  %v346_v54 = vmul.f32 %v3540_v13, %v322_v51  ;;  %v348_v4 = vmul.f32 %v3540_v13, %v324_v53  ;;  %v1516_v5 = vshrl.u32 %v1472_v62, 16  ;;  %v412_v8 = vsel %vm3797_vm6, %v386_v57, 0.0  ;;  %v1474_v23 = vld [vmem:[#allocation2 + $0x18] sm:$0xf] }
  0x46   : > { %3327 = vmatpush3.bf16.msra.mxu1 %v3716_v29  ;;  %v3432_v6 = vld [vmem:[#allocation2 + $0x48] ss:$8 sps:$4 sm:$0xff]   ;;  %v1497_v11 = vshll.u32 %v1469_v1, 16  ;;  %v618_v14 = vadd.f32 %v3545_v15, %v600_v60  ;;  %v602_v20 = vmul.f32 %v3540_v13, %v584_v55  ;;  %3413 = vmatprep.subr.msk.bf16.mxu0 %vm1257_vm0, %v3804_v44  ;;  %v3200_v17 = vpack.c.bf16 %v412_v8, %v412_v8  ;;  %v512_v31 = vld [vmem:[#allocation2 + $0x14] sm:$0x1] }
  0x47   : > { %3412 = vmatprep.subr.msk.bf16.mxu1 %vm1257_vm0, %v3744_v59  ;;  %v634_v48 = vmax.f32 %v616_v61, 0.0  ;;  %v370_v18 = vadd.f32 %v3545_v15, %v346_v54  ;;  %v372_v19 = vadd.f32 %v3545_v15, %v348_v4  ;;  %3328 = vmatprep.mubr.msk.bf16.mxu1 %vm1244_vm11, %v3432_v6  ;;  %v1518_v59 = vrot.slane %v1516_v5, 4  ;;  %v310_v40 = vld [vmem:[%s3535_s29 + $0x2c] sm:$0x1]  ;;  %v1476_v53 = vld [vmem:[#allocation2 + $0x20] sm:$0xf] }
  0x48   : > { %v3840_v21 = vrot.slane %v1497_v11, 5  ;;  %v636_v22 = vmax.f32 %v618_v14, 0.0  ;;  %v1519_v24 = vshll.u32 %v1472_v62, 16  ;;  %v509_v25 = vsel %vm3522_vm4, %v3200_v17, %v508_v63  ;;  %v1478_v61 = vld [vmem:[#allocation2 + $0x28] sm:$0xf] }
  0x49   : > { %v660_v27 = vsel %vm3753_vm14, %v634_v48, 0.0  ;;  %v388_v28 = vmax.f32 %v370_v18, 0.0  ;;  %v390_v30 = vmax.f32 %v372_v19, 0.0  ;;  %510 = vst [vmem:[#allocation2 + $0xc] sm:$0x1] %v509_v25  ;;  %v604_v7 = vmul.f32 %v3540_v13, %v586_v56 }
  0x4a   : > { %v1500_v33 = vsel %vm3833_vm7, %v3813_v58, %v3840_v21  ;;  %v3221_v35 = vpack.c.bf16 %v660_v27, %v660_v27  ;;  %v620_v36 = vadd.f32 %v3545_v15, %v602_v20  ;;  %v662_v37 = vsel %vm3753_vm14, %v636_v22, 0.0  ;;  %v312_v8 = vld [vmem:[%s3535_s29 + $0x34] sm:$0x1]  ;;  %v314_v11 = vld [vmem:[%s3535_s29 + $0x3c] sm:$0x1] }
  0x4b   : > { %v3433_v32 = vld [vmem:[#allocation2 + $0x58] ss:$8 sps:$4 sm:$0xff]   ;;  %v414_v34 = vsel %vm3797_vm6, %v388_v28, 0.0  ;;  %v416_v38 = vsel %vm3797_vm6, %v390_v30, 0.0  ;;  %v1521_v39 = vrot.slane %v1519_v24, 5  ;;  %v3223_v43 = vpack.c.bf16 %v662_v37, %v662_v37 }
  0x4c   : > { %759 = vst.msk [vmem:[#allocation2 + $0x68] sm:$0xf] %vm499_vm1, %v3221_v35  ;;  %v3202_v46 = vpack.c.bf16 %v414_v34, %v414_v34  ;;  %v3204_v47 = vpack.c.bf16 %v416_v38, %v416_v38  ;;  %v1530_v49 = vshrl.u32 %v1474_v23, 16  ;;  %v1533_v51 = vshll.u32 %v1474_v23, 16  ;;  %v3889_v24 = vld [vmem:[%s3535_s29 + $0x90] ss:$8 sps:$4 sm:$0xff]  }
  0x4d   : > { %3329 = vmatmul.mubr.msk.bf16.vlgmr.msra.gmra.mrb[4].mxu1 %vm1244_vm11, %v3433_v32  ;;  %v1522_v50 = vor.u32 %v1521_v39, %v1518_v59  ;;  %v622_v12 = vadd.f32 %v3545_v15, %v604_v7  ;;  %v638_v52 = vmax.f32 %v620_v36, 0.0  ;;  %763 = vst.msk [vmem:[#allocation2 + $0x70] sm:$0xf] %vm499_vm1, %v3223_v43  ;;  %v326_v60 = vunpack.c.l.bf16 %v308_v26  ;;  %v520_v32 = vld [vmem:[#allocation2 + $0x24] sm:$0x1] }
  0x4e   : > { %3347 = vmatpush3.bf16.msra.mxu1 %v3768_v9  ;;  %v513_v55 = vsel %vm3522_vm4, %v3202_v46, %v512_v31  ;;  %v517_v56 = vsel %vm3522_vm4, %v3204_v47, %v516_v16  ;;  %v1532_v57 = vrot.slane %v1530_v49, 4  ;;  %v1535_v63 = vrot.slane %v1533_v51, 5 }
  0x4f   : > { %514 = vst [vmem:[#allocation2 + $0x14] sm:$0x1] %v513_v55  ;;  %518 = vst [vmem:[#allocation2 + $0x1c] sm:$0x1] %v517_v56  ;;  %v3874_v62 = vrot.slane %v1522_v50, 4  ;;  %v640_v1 = vmax.f32 %v622_v12, 0.0  ;;  %3414 = vmatprep.subr.msk.bf16.mxu1 %vm1257_vm0, %v3863_v42  ;;  %v328_v4 = vunpack.c.l.bf16 %v310_v40  ;;  %v350_v5 = vmul.f32 %v3540_v13, %v326_v60 }
  0x50   : > { %v664_v9 = vsel %vm3753_vm14, %v638_v52, 0.0  ;;  %v1544_v6 = vshrl.u32 %v1476_v53, 16  ;;  %v1471_v14 = vld [vmem:[#allocation2 + $0xc] sm:$0x1]  ;;  %v1536_v20 = vor.u32 %v1535_v63, %v1532_v57  ;;  %v1547_v48 = vshll.u32 %v1476_v53, 16 }
  0x51   : > { %v3225_v54 = vpack.c.bf16 %v664_v9, %v664_v9  ;;  %v666_v17 = vsel %vm3753_vm14, %v640_v1, 0.0  ;;  %v1558_v18 = vshrl.u32 %v1478_v61, 16  ;;  %v1511_v19 = vshll.u32 %v1471_v14, 16  ;;  %v524_v53 = vld [vmem:[#allocation2 + $0x2c] sm:$0x1] }
  0x52   : > { %v3227_v22 = vpack.c.bf16 %v666_v17, %v666_v17  ;;  %v352_v23 = vmul.f32 %v3540_v13, %v328_v4  ;;  %v374_v59 = vadd.f32 %v3545_v15, %v350_v5  ;;  %v1537_v25 = vrot.slane %v1536_v20, 4  ;;  %v1482_v9 = vld [vmem:[#allocation2 + $0x38] sm:$0xf] }
  0x53   : > { %767 = vst.msk [vmem:[#allocation2 + $0x78] sm:$0xf] %vm499_vm1, %v3225_v54  ;;  %v1546_v27 = vrot.slane %v1544_v6, 4  ;;  %v1549_v28 = vrot.slane %v1547_v48, 5  ;;  %v1560_v30 = vrot.slane %v1558_v18, 4  ;;  %v1513_v31 = vrot.slane %v1511_v19, 5 }
  0x54   : > { %771 = vst.msk [vmem:[#allocation2 + $0x80] sm:$0xf] %vm499_vm1, %v3227_v22  ;;  %v376_v16 = vadd.f32 %v3545_v15, %v352_v23  ;;  %v392_v26 = vmax.f32 %v374_v59, 0.0  ;;  %v1561_v35 = vshll.u32 %v1478_v61, 16  ;;  %v3434_v7 = vld [vmem:[#allocation2 + $0x68] ss:$8 sps:$4 sm:$0xff]   ;;  %v330_v34 = vunpack.c.l.bf16 %v312_v8 }
  0x55   : > { %v1550_v36 = vor.u32 %v1549_v28, %v1546_v27  ;;  %v1894_v37 = vsel %vm1257_vm0, %v3804_v44, 0  ;;  %v332_v38 = vunpack.c.l.bf16 %v314_v11  ;;  %v1514_v39 = vsel %vm3833_vm7, %v3818_v2, %v1513_v31  ;;  %3332 = vmatprep.mubr.msk.bf16.mxu1 %vm1244_vm11, %v3434_v7  ;;  %v1480_v2 = vld [vmem:[#allocation2 + $0x30] sm:$0xf]  ;;  %v3041_v18 = vld [vmem:[%s3535_s29 + $0xa0] ss:$8 sps:$4 sm:$0xff]  }
  0x56   : > { %v1473_v40 = vld [vmem:[#allocation2 + $0x14] sm:$0x1]  ;;  %v1475_v43 = vld [vmem:[#allocation2 + $0x1c] sm:$0x1]  ;;  %v394_v46 = vmax.f32 %v376_v16, 0.0  ;;  %v418_v47 = vsel %vm3797_vm6, %v392_v26, 0.0  ;;  %v798_v49 = vunpack.c.l.bf16 %v3889_v24  ;;  %v3127_v44 = vcombine.low %v1500_v33, %v1514_v39 }
  0x57   : > { %v1525_v50 = vshll.u32 %v1473_v40, 16  ;;  %v1539_v51 = vshll.u32 %v1475_v43, 16  ;;  %v3206_v12 = vpack.c.bf16 %v418_v47, %v418_v47  ;;  %v3909_v55 = vrot.slane %v1550_v36, 4  ;;  %v3932_v59 = vld [vmem:[%s4373_s1 + $0x18] sm:$0xf] }
  0x58   : > { %v420_v52 = vsel %vm3797_vm6, %v394_v46, 0.0  ;;  %v1563_v56 = vrot.slane %v1561_v35, 5  ;;  %v354_v57 = vmul.f32 %v3540_v13, %v330_v34  ;;  %3338 = vmatprep.mubr.msk.bf16.mxu0 %vm1244_vm11, %v3127_v44  ;;  %v356_v63 = vmul.f32 %v3540_v13, %v332_v38  ;;  %v528_v28 = vld [vmem:[#allocation2 + $0x34] sm:$0x1]  ;;  %v532_v36 = vld [vmem:[#allocation2 + $0x3c] sm:$0x1] }
  0x59   : > { %v1527_v60 = vrot.slane %v1525_v50, 5  ;;  %v1541_v58 = vrot.slane %v1539_v51, 5  ;;  %v3208_v21 = vpack.c.bf16 %v420_v52, %v420_v52  ;;  %v521_v33 = vsel %vm3522_vm4, %v3206_v12, %v520_v32  ;;  %v3045_v40 = vld [vmem:[%s3535_s29 + $0xb0] ss:$8 sps:$4 sm:$0xff]   ;;  %v3958_v52 = vld [vmem:[%s4374_s2] ss:$0 sm:$0xff] }
  0x5a   : > { %522 = vst [vmem:[#allocation2 + $0x24] sm:$0x1] %v521_v33  ;;  %v1564_v61 = vor.u32 %v1563_v56, %v1560_v30  ;;  %v378_v1 = vadd.f32 %v3545_v15, %v354_v57  ;;  %v1572_v54 = vshrl.u32 %v1480_v2, 16  ;;  %v1575_v11 = vshll.u32 %v1480_v2, 16 }
  0x5b   : > { %v1528_v4 = vsel %vm3833_vm7, %v3874_v62, %v1527_v60  ;;  %v1542_v5 = vsel %vm3833_vm7, %v1537_v25, %v1541_v58  ;;  %v3435_v6 = vld [vmem:[#allocation2 + $0x78] ss:$8 sps:$4 sm:$0xff]   ;;  %v525_v8 = vsel %vm3522_vm4, %v3208_v21, %v524_v53  ;;  %v380_v17 = vadd.f32 %v3545_v15, %v356_v63 }
  0x5c   : > { %v3128_v14 = vcombine.low %v1528_v4, %v1542_v5  ;;  %526 = vst [vmem:[#allocation2 + $0x2c] sm:$0x1] %v525_v8  ;;  %v3924_v20 = vrot.slane %v1564_v61, 4  ;;  %v396_v48 = vmax.f32 %v378_v1, 0.0  ;;  %3333 = vmatmul.mubr.msk.bf16.gmra.mrb[8].mxu1 %vm1244_vm11, %v3435_v6  ;;  %v1574_v19 = vrot.slane %v1572_v54, 4 }
  0x5d   : > { %v1577_v62 = vrot.slane %v1575_v11, 5  ;;  %v1586_v22 = vshrl.u32 %v1482_v9, 16  ;;  %v1589_v23 = vshll.u32 %v1482_v9, 16  ;;  %v398_v25 = vmax.f32 %v380_v17, 0.0  ;;  %v3967_v61 = vld [vmem:[%s4375_s3] ss:$0 sm:$0xff] }
  0x5e   : > { %3339 = vmatmul.mubr.msk.bf16.vlgmr.msra.gmra.mrb[4].mxu0 %vm1244_vm11, %v3128_v14  ;;  %v422_v27 = vsel %vm3797_vm6, %v396_v48, 0.0  ;;  %v800_v30 = vunpack.c.h.bf16 %v3889_v24  ;;  %v816_v31 = vmul.f32 %v3540_v13, %v798_v49  ;;  %v802_v39 = vunpack.c.l.bf16 %v3041_v18  ;;  %v3049_v9 = vld [vmem:[%s3535_s29 + $0xc0] ss:$8 sps:$4 sm:$0xff]  }
  0x5f   : > { %3357 = vmatpush3.bf16.msra.mxu0 %v1894_v37  ;;  %v3210_v16 = vpack.c.bf16 %v422_v27, %v422_v27  ;;  %v1578_v26 = vor.u32 %v1577_v62, %v1574_v19  ;;  %v1588_v32 = vrot.slane %v1586_v22, 4  ;;  %v1591_v35 = vrot.slane %v1589_v23, 5  ;;  %v3073_v62 = vld [vmem:[%s3535_s29 + $0xd8] ss:$8 sps:$4 sm:$0xff]  }
  0x60   : > { %v424_v7 = vsel %vm3797_vm6, %v398_v25, 0.0  ;;  %v818_v34 = vmul.f32 %v3540_v13, %v800_v30  ;;  %v834_v38 = vadd.f32 %v3545_v15, %v816_v31  ;;  %3415 = vmatprep.subr.msk.bf16.mxu0 %vm1257_vm0, %v3932_v59  ;;  %v804_v50 = vunpack.c.h.bf16 %v3041_v18 }
  0x61   : > { %v1477_v24 = vld [vmem:[#allocation2 + $0x24] sm:$0x1]  ;;  %v3212_v43 = vpack.c.bf16 %v424_v7, %v424_v7  ;;  %v529_v37 = vsel %vm3522_vm4, %v3210_v16, %v528_v28  ;;  %v3948_v46 = vrot.slane %v1578_v26, 4  ;;  %v1592_v47 = vor.u32 %v1591_v35, %v1588_v32 }
  0x62   : > { %v1553_v49 = vshll.u32 %v1477_v24, 16  ;;  %530 = vst [vmem:[#allocation2 + $0x34] sm:$0x1] %v529_v37  ;;  %v836_v44 = vadd.f32 %v3545_v15, %v818_v34  ;;  %v852_v13 = vmax.f32 %v834_v38, 0.0  ;;  %v820_v53 = vmul.f32 %v3958_v52, %v802_v39 }
  0x63   : > { %v1479_v51 = vld [vmem:[#allocation2 + $0x2c] sm:$0x1]  ;;  %v533_v12 = vsel %vm3522_vm4, %v3212_v43, %v532_v36  ;;  %v3953_v2 = vrot.slane %v1592_v47, 4  ;;  %v806_v56 = vunpack.c.l.bf16 %v3045_v40  ;;  %v822_v33 = vmul.f32 %v3958_v52, %v804_v50 }
  0x64   : > { %v1555_v57 = vrot.slane %v1553_v49, 5  ;;  %v1567_v60 = vshll.u32 %v1479_v51, 16  ;;  %534 = vst [vmem:[#allocation2 + $0x3c] sm:$0x1] %v533_v12  ;;  %v854_v15 = vmax.f32 %v836_v44, 0.0  ;;  %v870_v58 = vsel %vm3575_vm9, %v852_v13, 0.0 }
  0x65   : > { %v3231_v21 = vpack.c.bf16 %v870_v58, %v870_v58  ;;  %v838_v63 = vadd.f32 %v3967_v61, %v820_v53  ;;  %v808_v1 = vunpack.c.h.bf16 %v3045_v40  ;;  %v824_v6 = vmul.f32 %v3958_v52, %v806_v56  ;;  %v3077_v40 = vld [vmem:[%s3535_s29 + $0xe8] ss:$8 sps:$4 sm:$0xff]   ;;  %v3081_v49 = vld [vmem:[%s3535_s29 + $0xf8] ss:$8 sps:$4 sm:$0xff]  }
  0x66   : > { %v1556_v54 = vsel %vm3833_vm7, %v3909_v55, %v1555_v57  ;;  %v1569_v4 = vrot.slane %v1567_v60, 5  ;;  %v872_v5 = vsel %vm3575_vm9, %v854_v15, 0.0  ;;  %v840_v11 = vadd.f32 %v3967_v61, %v822_v33 }
  0x67   : > { %v3233_v8 = vpack.c.bf16 %v872_v5, %v872_v5  ;;  %961 = vst.msk [vmem:[#allocation2 + $0x90] sm:$0xf] %vm499_vm1, %v3231_v21  ;;  %v856_v14 = vmax.f32 %v838_v63, 0.0  ;;  %v826_v17 = vmul.f32 %v3958_v52, %v808_v1  ;;  %v842_v55 = vadd.f32 %v3967_v61, %v824_v6 }
  0x68   : > { %v1570_v48 = vsel %vm3833_vm7, %v3924_v20, %v1569_v4  ;;  %v3986_v18 = vsel %vm1257_vm0, %v3863_v42, 0  ;;  %v810_v19 = vunpack.c.l.bf16 %v3049_v9  ;;  %v858_v25 = vmax.f32 %v840_v11, 0.0 }
  0x69   : > { %v3129_v22 = vcombine.low %v1556_v54, %v1570_v48  ;;  %v1481_v23 = vld [vmem:[#allocation2 + $0x34] sm:$0x1]  ;;  %965 = vst.msk [vmem:[#allocation2 + $0x98] sm:$0xf] %vm499_vm1, %v3233_v8  ;;  %v874_v27 = vsel %vm3575_vm9, %v856_v14, 0.0  ;;  %v844_v28 = vadd.f32 %v3967_v61, %v826_v17  ;;  %v860_v31 = vmax.f32 %v842_v55, 0.0 }
  0x6a   : > { %v1581_v20 = vshll.u32 %v1481_v23, 16  ;;  %v3235_v30 = vpack.c.bf16 %v874_v27, %v874_v27  ;;  %v812_v16 = vunpack.c.h.bf16 %v3049_v9  ;;  %v876_v26 = vsel %vm3575_vm9, %v858_v25, 0.0  ;;  %v3085_v17 = vld [vmem:[%s3535_s29 + $0x108] ss:$8 sps:$4 sm:$0xff]   ;;  %v4037_v23 = vld [vmem:[%s4373_s1 + $0x1c] sm:$0xf] }
  0x6b   : > { %3342 = vmatprep.mubr.msk.bf16.mxu0 %vm1244_vm11, %v3129_v22  ;;  %v1483_v42 = vld [vmem:[#allocation2 + $0x3c] sm:$0x1]  ;;  %v862_v32 = vmax.f32 %v844_v28, 0.0  ;;  %v828_v35 = vmul.f32 %v3958_v52, %v810_v19  ;;  %v1016_v7 = vunpack.c.l.bf16 %v3073_v62  ;;  %v3237_v38 = vpack.c.bf16 %v876_v26, %v876_v26  ;;  %v3038_v22 = vld [vmem:[%s3535_s29 + $0x94] sm:$0x1] }
  0x6c   : > { %v1583_v36 = vrot.slane %v1581_v20, 5  ;;  %v1595_v34 = vshll.u32 %v1483_v42, 16  ;;  %969 = vst.msk [vmem:[#allocation2 + $0xa0] sm:$0xf] %vm499_vm1, %v3235_v30  ;;  %v878_v39 = vsel %vm3575_vm9, %v860_v31, 0.0  ;;  %v830_v37 = vmul.f32 %v3958_v52, %v812_v16 }
  0x6d   : > { %v880_v24 = vsel %vm3575_vm9, %v862_v32, 0.0  ;;  %v3239_v43 = vpack.c.bf16 %v878_v39, %v878_v39  ;;  %v846_v47 = vadd.f32 %v3967_v61, %v828_v35  ;;  %973 = vst.msk [vmem:[#allocation2 + $0xa8] sm:$0xf] %vm499_vm1, %v3237_v38  ;;  %v1018_v51 = vunpack.c.h.bf16 %v3073_v62  ;;  %v3040_v31 = vld [vmem:[%s3535_s29 + $0x9c] sm:$0x1] }
  0x6e   : > { %v1584_v44 = vsel %vm3833_vm7, %v3948_v46, %v1583_v36  ;;  %v1597_v13 = vrot.slane %v1595_v34, 5  ;;  %v3241_v50 = vpack.c.bf16 %v880_v24, %v880_v24  ;;  %v848_v12 = vadd.f32 %v3967_v61, %v830_v37 }
  0x6f   : > { %977 = vst.msk [vmem:[#allocation2 + $0xb0] sm:$0xf] %vm499_vm1, %v3239_v43  ;;  %v864_v53 = vmax.f32 %v846_v47, 0.0  ;;  %v1034_v56 = vmul.f32 %v3958_v52, %v1016_v7  ;;  %v1020_v57 = vunpack.c.l.bf16 %v3077_v40  ;;  %v1036_v46 = vmul.f32 %v3958_v52, %v1018_v51  ;;  %v1985_v43 = vld [vmem:[#allocation2 + $0x90] sm:$0xf] }
  0x70   : > { %v1598_v60 = vsel %vm3833_vm7, %v3953_v2, %v1597_v13  ;;  %v3436_v15 = vld [vmem:[#allocation2 + $0x90] ss:$8 sps:$4 sm:$0xff]   ;;  %981 = vst.msk [vmem:[#allocation2 + $0xb8] sm:$0xf] %vm499_vm1, %v3241_v50  ;;  %v1022_v58 = vunpack.c.h.bf16 %v3077_v40  ;;  %v1024_v21 = vunpack.c.l.bf16 %v3081_v49  ;;  %v866_v63 = vmax.f32 %v848_v12, 0.0 }
  0x71   : > { %v3130_v33 = vcombine.low %v1584_v44, %v1598_v60  ;;  %v882_v1 = vsel %vm3575_vm9, %v864_v53, 0.0  ;;  %v1052_v9 = vadd.f32 %v3967_v61, %v1034_v56  ;;  %3348 = vmatprep.mubr.msk.bf16.mxu1 %vm1244_vm11, %v3436_v15  ;;  %v1054_v2 = vadd.f32 %v3967_v61, %v1036_v46  ;;  %v1987_v12 = vld [vmem:[#allocation2 + $0x98] sm:$0xf]  ;;  %v3042_v53 = vld [vmem:[%s3535_s29 + $0xa4] sm:$0x1] }
  0x72   : > { %v3243_v54 = vpack.c.bf16 %v882_v1, %v882_v1  ;;  %v1038_v4 = vmul.f32 %v3958_v52, %v1020_v57  ;;  %v1040_v5 = vmul.f32 %v3958_v52, %v1022_v58  ;;  %v884_v6 = vsel %vm3575_vm9, %v866_v63, 0.0  ;;  %v3044_v63 = vld [vmem:[%s3535_s29 + $0xac] sm:$0x1]  ;;  %v3046_v1 = vld [vmem:[%s3535_s29 + $0xb4] sm:$0x1] }
  0x73   : > { %3343 = vmatmul.mubr.msk.bf16.gmra.mrb[8].mxu0 %vm1244_vm11, %v3130_v33  ;;  %v1070_v8 = vmax.f32 %v1052_v9, 0.0  ;;  %v1026_v11 = vunpack.c.h.bf16 %v3081_v49  ;;  %v1042_v14 = vmul.f32 %v3958_v52, %v1024_v21  ;;  %v3245_v48 = vpack.c.bf16 %v884_v6, %v884_v6 }
  0x74   : > { %985 = vst.msk [vmem:[#allocation2 + $0xc0] sm:$0xf] %vm499_vm1, %v3243_v54  ;;  %v1072_v55 = vmax.f32 %v1054_v2, 0.0  ;;  %v1056_v19 = vadd.f32 %v3967_v61, %v1038_v4  ;;  %v1058_v62 = vadd.f32 %v3967_v61, %v1040_v5  ;;  %v3437_v25 = vld [vmem:[#allocation2 + $0xa0] ss:$8 sps:$4 sm:$0xff]   ;;  %v4045_v30 = vsel %vm1257_vm0, %v3932_v59, 0 }
  0x75   : > { %v1088_v27 = vsel %vm3753_vm14, %v1070_v8, 0.0  ;;  %v1044_v28 = vmul.f32 %v3958_v52, %v1026_v11  ;;  %v1060_v20 = vadd.f32 %v3967_v61, %v1042_v14  ;;  %989 = vst.msk [vmem:[#allocation2 + $0xc8] sm:$0xf] %vm499_vm1, %v3245_v48  ;;  %3349 = vmatmul.mubr.msk.bf16.vlgmr.msra.gmra.mrb[12].mxu1 %vm1244_vm11, %v3437_v25  ;;  %v1028_v38 = vunpack.c.l.bf16 %v3085_v17  ;;  %v962_v48 = vld [vmem:[#allocation2 + $0x94] sm:$0x1] }
  0x76   : > { %v1090_v16 = vsel %vm3753_vm14, %v1072_v55, 0.0  ;;  %v3247_v42 = vpack.c.bf16 %v1088_v27, %v1088_v27  ;;  %v1074_v26 = vmax.f32 %v1056_v19, 0.0  ;;  %v1076_v32 = vmax.f32 %v1058_v62, 0.0  ;;  %3367 = vmatpush3.bf16.msra.mxu1 %v3986_v18 }
  0x77   : > { %v3438_v35 = vld [vmem:[#allocation2 + $0xb0] ss:$8 sps:$4 sm:$0xff]   ;;  %v3249_v7 = vpack.c.bf16 %v1090_v16, %v1090_v16  ;;  %v1062_v36 = vadd.f32 %v3967_v61, %v1044_v28  ;;  %v1078_v34 = vmax.f32 %v1060_v20, 0.0  ;;  %v1030_v40 = vunpack.c.h.bf16 %v3085_v17  ;;  %3416 = vmatprep.subr.msk.bf16.mxu1 %vm1257_vm0, %v4037_v23 }
  0x78   : > { %1179 = vst.msk [vmem:[#allocation2 + $0xd8] sm:$0xf] %vm499_vm1, %v3247_v42  ;;  %v1092_v59 = vsel %vm3753_vm14, %v1074_v26, 0.0  ;;  %v1094_v39 = vsel %vm3753_vm14, %v1076_v32, 0.0  ;;  %v799_v24 = vunpack.c.l.bf16 %v3038_v22  ;;  %3352 = vmatprep.mubr.msk.bf16.mxu1 %vm1244_vm11, %v3438_v35  ;;  %v1046_v13 = vmul.f32 %v3958_v52, %v1028_v38  ;;  %v3048_v22 = vld [vmem:[%s3535_s29 + $0xbc] sm:$0x1] }
  0x79   : > { %1183 = vst.msk [vmem:[#allocation2 + $0xe0] sm:$0xf] %vm499_vm1, %v3249_v7  ;;  %v3251_v37 = vpack.c.bf16 %v1092_v59, %v1092_v59  ;;  %v3253_v47 = vpack.c.bf16 %v1094_v39, %v1094_v39  ;;  %v1080_v49 = vmax.f32 %v1062_v36, 0.0  ;;  %v1096_v18 = vsel %vm3753_vm14, %v1078_v34, 0.0  ;;  %v966_v35 = vld [vmem:[#allocation2 + $0x9c] sm:$0x1] }
  0x7a   : > { %v3255_v44 = vpack.c.bf16 %v1096_v18, %v1096_v18  ;;  %v1048_v50 = vmul.f32 %v3958_v52, %v1030_v40  ;;  %v801_v51 = vunpack.c.l.bf16 %v3040_v31  ;;  %v817_v57 = vmul.f32 %v3958_v52, %v799_v24  ;;  %v1989_v7 = vld [vmem:[#allocation2 + $0xa0] sm:$0xf]  ;;  %v1991_v36 = vld [vmem:[#allocation2 + $0xa8] sm:$0xf] }
  0x7b   : > { %1187 = vst.msk [vmem:[#allocation2 + $0xe8] sm:$0xf] %vm499_vm1, %v3251_v37  ;;  %1191 = vst.msk [vmem:[#allocation2 + $0xf0] sm:$0xf] %vm499_vm1, %v3253_v47  ;;  %v1098_v56 = vsel %vm3753_vm14, %v1080_v49, 0.0  ;;  %v2002_v60 = vshrl.u32 %v1985_v43, 16  ;;  %v1064_v58 = vadd.f32 %v3967_v61, %v1046_v13  ;;  %v803_v5 = vunpack.c.l.bf16 %v3042_v53 }
  0x7c   : > { %v2005_v15 = vshll.u32 %v1985_v43, 16  ;;  %v3257_v46 = vpack.c.bf16 %v1098_v56, %v1098_v56  ;;  %1195 = vst.msk [vmem:[#allocation2 + $0xf8] sm:$0xf] %vm499_vm1, %v3255_v44  ;;  %v1066_v21 = vadd.f32 %v3967_v61, %v1048_v50  ;;  %v819_v33 = vmul.f32 %v3958_v52, %v801_v51  ;;  %v3439_v9 = vld [vmem:[#allocation2 + $0xc0] ss:$8 sps:$4 sm:$0xff]  }
  0x7d   : > { %v835_v54 = vadd.f32 %v3967_v61, %v817_v57  ;;  %v2004_v2 = vrot.slane %v2002_v60, 4  ;;  %v1082_v6 = vmax.f32 %v1064_v58, 0.0  ;;  %v2016_v14 = vshrl.u32 %v1987_v12, 16  ;;  %3353 = vmatmul.mubr.msk.bf16.gmra.mrb[16].mxu1 %vm1244_vm11, %v3439_v9  ;;  %v4094_v34 = vld [vmem:[%s4373_s1 + $0x20] sm:$0xf] }
  0x7e   : > { %v2007_v4 = vrot.slane %v2005_v15, 5  ;;  %1199 = vst.msk [vmem:[#allocation2 + $0x100] sm:$0xf] %vm499_vm1, %v3257_v46  ;;  %v1084_v8 = vmax.f32 %v1066_v21, 0.0  ;;  %v837_v11 = vadd.f32 %v3967_v61, %v819_v33  ;;  %v2019_v19 = vshll.u32 %v1987_v12, 16 }
  0x7f   : > { %v853_v17 = vmax.f32 %v835_v54, 0.0  ;;  %v805_v62 = vunpack.c.l.bf16 %v3044_v63  ;;  %v1100_v27 = vsel %vm3753_vm14, %v1082_v6, 0.0  ;;  %v821_v20 = vmul.f32 %v3958_v52, %v803_v5  ;;  %v970_v51 = vld [vmem:[#allocation2 + $0xa4] sm:$0x1]  ;;  %v4119_v63 = vld [vmem:[%s3535_s29 + $0xcc] sm:$0x1] }
  0x80   : > { %v2008_v55 = vor.u32 %v2007_v4, %v2004_v2  ;;  %v3440_v25 = vld [vmem:[#allocation2 + $0xd8] ss:$8 sps:$4 sm:$0xff]   ;;  %v1102_v28 = vsel %vm3753_vm14, %v1084_v8, 0.0  ;;  %v807_v31 = vunpack.c.l.bf16 %v3046_v1  ;;  %v3259_v16 = vpack.c.bf16 %v1100_v27, %v1100_v27  ;;  %v4112_v15 = vld [vmem:[%s3535_s29 + $0xc4] sm:$0x1] }
  0x81   : > { %v3261_v42 = vpack.c.bf16 %v1102_v28, %v1102_v28  ;;  %v855_v26 = vmax.f32 %v837_v11, 0.0  ;;  %v871_v32 = vsel %vm3797_vm6, %v853_v17, 0.0  ;;  %3358 = vmatprep.mubr.msk.bf16.mxu0 %vm1244_vm11, %v3440_v25  ;;  %v823_v39 = vmul.f32 %v3958_v52, %v805_v62  ;;  %v4127_v2 = vld [vmem:[%s3535_s29 + $0x40] ss:$72 sps:$4 sm:$0xff]   ;;  %v974_v5 = vld [vmem:[#allocation2 + $0xac] sm:$0x1] }
  0x82   : > { %v3441_v38 = vld [vmem:[#allocation2 + $0xe8] ss:$8 sps:$4 sm:$0xff]   ;;  %v3232_v59 = vpack.c.bf16 %v871_v32, %v871_v32  ;;  %v839_v40 = vadd.f32 %v3967_v61, %v821_v20  ;;  %v809_v24 = vunpack.c.l.bf16 %v3048_v22  ;;  %1203 = vst.msk [vmem:[#allocation2 + $0x108] sm:$0xf] %vm499_vm1, %v3259_v16  ;;  %v4103_v37 = vrot.slane %v2008_v55, 4 }
  0x83   : > { %1207 = vst.msk [vmem:[#allocation2 + $0x110] sm:$0xf] %vm499_vm1, %v3261_v42  ;;  %v873_v43 = vsel %vm3797_vm6, %v855_v26, 0.0  ;;  %v2018_v47 = vrot.slane %v2016_v14, 4  ;;  %v2021_v49 = vrot.slane %v2019_v19, 5  ;;  %3359 = vmatmul.mubr.msk.bf16.vlgmr.msra.gmra.mrb[12].mxu0 %vm1244_vm11, %v3441_v38  ;;  %v841_v13 = vadd.f32 %v3967_v61, %v823_v39 }
  0x84   : > { %v3234_v18 = vpack.c.bf16 %v873_v43, %v873_v43  ;;  %v963_v44 = vsel %vm3522_vm4, %v3232_v59, %v962_v48  ;;  %v857_v50 = vmax.f32 %v839_v40, 0.0  ;;  %3377 = vmatpush3.bf16.msra.mxu0 %v4045_v30  ;;  %v2030_v56 = vshrl.u32 %v1989_v7, 16  ;;  %v1993_v19 = vld [vmem:[#allocation2 + $0xb0] sm:$0xf]  ;;  %v1995_v62 = vld [vmem:[#allocation2 + $0xb8] sm:$0xf] }
  0x85   : > { %v3442_v12 = vld [vmem:[#allocation2 + $0xf8] ss:$8 sps:$4 sm:$0xff]   ;;  %964 = vst [vmem:[#allocation2 + $0x94] sm:$0x1] %v963_v44  ;;  %v2022_v53 = vor.u32 %v2021_v49, %v2018_v47  ;;  %v2033_v57 = vshll.u32 %v1989_v7, 16  ;;  %v825_v60 = vmul.f32 %v3958_v52, %v807_v31  ;;  %v859_v58 = vmax.f32 %v841_v13, 0.0  ;;  %3417 = vmatprep.subr.msk.bf16.mxu0 %vm1257_vm0, %v4094_v34 }
  0x86   : > { %v967_v46 = vsel %vm3522_vm4, %v3234_v18, %v966_v35  ;;  %v875_v21 = vsel %vm3797_vm6, %v857_v50, 0.0  ;;  %v2044_v33 = vshrl.u32 %v1991_v36, 16  ;;  %3362 = vmatprep.mubr.msk.bf16.mxu0 %vm1244_vm11, %v3442_v12  ;;  %v2032_v9 = vrot.slane %v2030_v56, 4  ;;  %v3444_v22 = vld [vmem:[#allocation2 + $0x8] ss:$8 sps:$4 sm:$0xff]  }
  0x87   : > { %968 = vst [vmem:[#allocation2 + $0x9c] sm:$0x1] %v967_v46  ;;  %v4124_v30 = vrot.slane %v2022_v53, 4  ;;  %v3236_v1 = vpack.c.bf16 %v875_v21, %v875_v21  ;;  %v2035_v54 = vrot.slane %v2033_v57, 5  ;;  %v877_v4 = vsel %vm3797_vm6, %v859_v58, 0.0 }
  0x88   : > { %v2046_v6 = vrot.slane %v2044_v33, 4  ;;  %v2047_v8 = vshll.u32 %v1991_v36, 16  ;;  %v827_v11 = vmul.f32 %v3958_v52, %v809_v24  ;;  %v3238_v14 = vpack.c.bf16 %v877_v4, %v877_v4  ;;  %v978_v35 = vld [vmem:[#allocation2 + $0xb4] sm:$0x1]  ;;  %v982_v47 = vld [vmem:[#allocation2 + $0xbc] sm:$0x1] }
  0x89   : > { %v971_v17 = vsel %vm3522_vm4, %v3236_v1, %v970_v51  ;;  %v2036_v48 = vor.u32 %v2035_v54, %v2032_v9  ;;  %v843_v55 = vadd.f32 %v3967_v61, %v825_v60  ;;  %v811_v28 = vunpack.c.l.bf16 %v4112_v15  ;;  %v1997_v21 = vld [vmem:[#allocation2 + $0xc0] sm:$0xf] }
  0x8a   : > { %v3443_v25 = vld [vmem:[#allocation2 + $0x108] ss:$8 sps:$4 sm:$0xff]   ;;  %972 = vst [vmem:[#allocation2 + $0xa4] sm:$0x1] %v971_v17  ;;  %v845_v27 = vadd.f32 %v3967_v61, %v827_v11  ;;  %v813_v20 = vunpack.c.l.bf16 %v4119_v63  ;;  %v333_v31 = vunpack.c.l.bf16 %v4127_v2  ;;  %v975_v16 = vsel %vm3522_vm4, %v3238_v14, %v974_v5  ;;  %v3445_v33 = vld [vmem:[#allocation2 + $0x18] ss:$8 sps:$4 sm:$0xff]  }
  0x8b   : > { %v4141_v42 = vrot.slane %v2036_v48, 4  ;;  %v2049_v26 = vrot.slane %v2047_v8, 5  ;;  %v861_v32 = vmax.f32 %v843_v55, 0.0  ;;  %3363 = vmatmul.mubr.msk.bf16.gmra.mrb[16].mxu0 %vm1244_vm11, %v3443_v25  ;;  %976 = vst [vmem:[#allocation2 + $0xac] sm:$0x1] %v975_v16  ;;  %v2058_v38 = vshrl.u32 %v1993_v19, 16 }
  0x8c   : > { %v1986_v7 = vld [vmem:[#allocation2 + $0x94] sm:$0x1]  ;;  %v863_v36 = vmax.f32 %v845_v27, 0.0  ;;  %v2061_v59 = vshll.u32 %v1993_v19, 16  ;;  %v2072_v39 = vshrl.u32 %v1995_v62, 16  ;;  %v2075_v49 = vshll.u32 %v1995_v62, 16  ;;  %3378 = vmatprep.mubr.msk.bf16.mxu0 %vm1244_vm11, %v3444_v22 }
  0x8d   : > { %v2011_v40 = vshll.u32 %v1986_v7, 16  ;;  %v2050_v24 = vor.u32 %v2049_v26, %v2046_v6  ;;  %v879_v43 = vsel %vm3797_vm6, %v861_v32, 0.0  ;;  %v2060_v50 = vrot.slane %v2058_v38, 4  ;;  %v3446_v5 = vld [vmem:[#allocation2 + $0x28] ss:$8 sps:$4 sm:$0xff]  }
  0x8e   : > { %v1988_v18 = vld [vmem:[#allocation2 + $0x9c] sm:$0x1]  ;;  %v881_v44 = vsel %vm3797_vm6, %v863_v36, 0.0  ;;  %v3240_v13 = vpack.c.bf16 %v879_v43, %v879_v43  ;;  %v2063_v51 = vrot.slane %v2061_v59, 5  ;;  %v2074_v46 = vrot.slane %v2072_v39, 4 }
  0x8f   : > { %v2013_v12 = vrot.slane %v2011_v40, 5  ;;  %v2025_v53 = vshll.u32 %v1988_v18, 16  ;;  %v2051_v56 = vrot.slane %v2050_v24, 4  ;;  %v3242_v57 = vpack.c.bf16 %v881_v44, %v881_v44  ;;  %v1999_v55 = vld [vmem:[#allocation2 + $0xc8] sm:$0xf] }
  0x90   : > { %v979_v60 = vsel %vm3522_vm4, %v3240_v13, %v978_v35  ;;  %v2064_v15 = vor.u32 %v2063_v51, %v2060_v50  ;;  %v2077_v58 = vrot.slane %v2075_v49, 5  ;;  %v2410_v4 = vsel %vm1257_vm0, %v4037_v23, 0  ;;  %v986_v59 = vld [vmem:[#allocation2 + $0xc4] sm:$0x1]  ;;  %v990_v39 = vld [vmem:[#allocation2 + $0xcc] sm:$0x1] }
  0x91   : > { %v2014_v63 = vsel %vm3833_vm7, %v4103_v37, %v2013_v12  ;;  %v2027_v1 = vrot.slane %v2025_v53, 5  ;;  %v1990_v9 = vld [vmem:[#allocation2 + $0xa4] sm:$0x1]  ;;  %980 = vst [vmem:[#allocation2 + $0xb4] sm:$0x1] %v979_v60  ;;  %v983_v54 = vsel %vm3522_vm4, %v3242_v57, %v982_v47  ;;  %v829_v14 = vmul.f32 %v3958_v52, %v811_v28 }
  0x92   : > { %v2039_v6 = vshll.u32 %v1990_v9, 16  ;;  %984 = vst [vmem:[#allocation2 + $0xbc] sm:$0x1] %v983_v54  ;;  %v4158_v8 = vrot.slane %v2064_v15, 4  ;;  %v2078_v11 = vor.u32 %v2077_v58, %v2074_v46  ;;  %v1992_v17 = vld [vmem:[#allocation2 + $0xac] sm:$0x1]  ;;  %v831_v48 = vmul.f32 %v3958_v52, %v813_v20 }
  0x93   : > { %v2028_v37 = vsel %vm3833_vm7, %v4124_v30, %v2027_v1  ;;  %v2086_v19 = vshrl.u32 %v1997_v21, 16  ;;  %v2089_v62 = vshll.u32 %v1997_v21, 16  ;;  %v2053_v25 = vshll.u32 %v1992_v17, 16  ;;  %3379 = vmatmul.mubr.msk.bf16.vlgmr.msra.gmra.mrb[20].mxu0 %vm1244_vm11, %v3445_v33  ;;  %v2501_v44 = vld [vmem:[#allocation2 + $0x8] sm:$0xf] }
  0x94   : > { %v3154_v22 = vcombine.low %v2014_v63, %v2028_v37  ;;  %v2041_v23 = vrot.slane %v2039_v6, 5  ;;  %v2079_v27 = vrot.slane %v2078_v11, 4  ;;  %v847_v16 = vadd.f32 %v3967_v61, %v829_v14  ;;  %3382 = vmatprep.mubr.msk.bf16.mxu0 %vm1244_vm11, %v3446_v5  ;;  %v2502_v21 = vld [vmem:[#allocation2 + $0xc] sm:$0x1]  ;;  %v2503_v9 = vld [vmem:[#allocation2 + $0x10] sm:$0xf] }
  0x95   : > { %v849_v28 = vadd.f32 %v3967_v61, %v831_v48  ;;  %v2088_v26 = vrot.slane %v2086_v19, 4  ;;  %v2091_v32 = vrot.slane %v2089_v62, 5  ;;  %v2055_v20 = vrot.slane %v2053_v25, 5 }
  0x96   : > { %3368 = vmatprep.mubr.msk.bf16.mxu1 %vm1244_vm11, %v3154_v22  ;;  %v2042_v30 = vsel %vm3833_vm7, %v4141_v42, %v2041_v23  ;;  %v2100_v35 = vshrl.u32 %v1999_v55, 16  ;;  %v2103_v7 = vshll.u32 %v1999_v55, 16  ;;  %v865_v36 = vmax.f32 %v847_v16, 0.0  ;;  %v2505_v55 = vld [vmem:[#allocation2 + $0x18] sm:$0xf] }
  0x97   : > { %v867_v38 = vmax.f32 %v849_v28, 0.0  ;;  %v2092_v40 = vor.u32 %v2091_v32, %v2088_v26  ;;  %v2656_v24 = vsel %vm1257_vm0, %v4094_v34, 0  ;;  %v2056_v43 = vsel %vm3833_vm7, %v2051_v56, %v2055_v20  ;;  %v2506_v23 = vld [vmem:[#allocation2 + $0x1c] sm:$0x1]  ;;  %v2507_v32 = vld [vmem:[#allocation2 + $0x20] sm:$0xf] }
  0x98   : > { %v1994_v47 = vld [vmem:[#allocation2 + $0xb4] sm:$0x1]  ;;  %v2102_v49 = vrot.slane %v2100_v35, 4  ;;  %v2105_v18 = vrot.slane %v2103_v7, 5  ;;  %3397 = vmatpush3.bf16.msra.mxu0 %v2656_v24  ;;  %v357_v42 = vmul.f32 %v3958_v52, %v333_v31  ;;  %v3155_v13 = vcombine.low %v2042_v30, %v2056_v43  ;;  %v2508_v24 = vld [vmem:[#allocation2 + $0x24] sm:$0x1] }
  0x99   : > { %v1996_v50 = vld [vmem:[#allocation2 + $0xbc] sm:$0x1]  ;;  %v2067_v51 = vshll.u32 %v1994_v47, 16  ;;  %v883_v12 = vsel %vm3797_vm6, %v865_v36, 0.0  ;;  %v885_v34 = vsel %vm3797_vm6, %v867_v38, 0.0  ;;  %v4184_v60 = vrot.slane %v2092_v40, 4 }
  0x9a   : > { %v2081_v53 = vshll.u32 %v1996_v50, 16  ;;  %v3244_v56 = vpack.c.bf16 %v883_v12, %v883_v12  ;;  %v3246_v57 = vpack.c.bf16 %v885_v34, %v885_v34  ;;  %3369 = vmatmul.mubr.msk.bf16.vlgmr.msra.gmra.mrb[20].mxu1 %vm1244_vm11, %v3155_v13  ;;  %v2106_v46 = vor.u32 %v2105_v18, %v2102_v49 }
  0x9b   : > { %v2069_v15 = vrot.slane %v2067_v51, 5  ;;  %v381_v31 = vadd.f32 %v3967_v61, %v357_v42  ;;  %v588_v58 = vunpack.c.h.bf16 %v4127_v2  ;;  %3387 = vmatpush3.bf16.msra.mxu1 %v2410_v4  ;;  %v2518_v54 = vshrl.u32 %v2501_v44, 16  ;;  %v2504_v4 = vld [vmem:[#allocation2 + $0x14] sm:$0x1] }
  0x9c   : > { %v2083_v33 = vrot.slane %v2081_v53, 5  ;;  %v987_v63 = vsel %vm3522_vm4, %v3244_v56, %v986_v59  ;;  %v991_v1 = vsel %vm3522_vm4, %v3246_v57, %v990_v39  ;;  %v4196_v6 = vrot.slane %v2106_v46, 4  ;;  %v2509_v59 = vld [vmem:[#allocation2 + $0x28] sm:$0xf] }
  0x9d   : > { %v2070_v5 = vsel %vm3833_vm7, %v4158_v8, %v2069_v15  ;;  %988 = vst [vmem:[#allocation2 + $0xc4] sm:$0x1] %v987_v63  ;;  %992 = vst [vmem:[#allocation2 + $0xcc] sm:$0x1] %v991_v1  ;;  %v399_v2 = vmax.f32 %v381_v31, 0.0  ;;  %v606_v11 = vmul.f32 %v3958_v52, %v588_v58  ;;  %v2520_v37 = vrot.slane %v2518_v54, 4 }
  0x9e   : > { %v2084_v14 = vsel %vm3833_vm7, %v2079_v27, %v2083_v33  ;;  %v2521_v17 = vshll.u32 %v2501_v44, 16  ;;  %v2527_v48 = vshll.u32 %v2502_v21, 16  ;;  %v2532_v22 = vshrl.u32 %v2503_v9, 16  ;;  %v3448_v58 = vld [vmem:[#allocation2 + $0x50] ss:$8 sps:$4 sm:$0xff]  }
  0x9f   : > { %v3156_v19 = vcombine.low %v2070_v5, %v2084_v14  ;;  %v425_v62 = vsel %vm3575_vm9, %v399_v2, 0.0  ;;  %v624_v8 = vadd.f32 %v3967_v61, %v606_v11  ;;  %v2535_v26 = vshll.u32 %v2503_v9, 16  ;;  %v2511_v33 = vld [vmem:[#allocation2 + $0x30] sm:$0xf]  ;;  %v316_v1 = vld [vmem:[%s3535_s29 + $0x44] sm:$0x1] }
  0xa0   : > { %v3213_v25 = vpack.c.bf16 %v425_v62, %v425_v62  ;;  %v2523_v16 = vrot.slane %v2521_v17, 5  ;;  %v2529_v28 = vrot.slane %v2527_v48, 5  ;;  %v2534_v30 = vrot.slane %v2532_v22, 4  ;;  %v2510_v2 = vld [vmem:[#allocation2 + $0x2c] sm:$0x1]  ;;  %s2977_s29 = sshll.u32 %s3504_s22, 3 }
  0xa1   : > { %3372 = vmatprep.mubr.msk.bf16.mxu1 %vm1244_vm11, %v3156_v19  ;;  %v642_v27 = vmax.f32 %v624_v8, 0.0  ;;  %v2541_v20 = vshll.u32 %v2504_v4, 16  ;;  %v2546_v35 = vshrl.u32 %v2505_v55, 16  ;;  %v2537_v45 = vrot.slane %v2535_v26, 5  ;;  %v2512_v48 = vld [vmem:[#allocation2 + $0x34] sm:$0x1] }
  0xa2   : > { %535 = vst.msk [vmem:[#allocation2 + $0x40] sm:$0xf] %vm499_vm1, %v3213_v25  ;;  %v2524_v7 = vor.u32 %v2523_v16, %v2520_v37  ;;  %v2549_v36 = vshll.u32 %v2505_v55, 16  ;;  %v2555_v38 = vshll.u32 %v2506_v23, 16  ;;  %v2560_v47 = vshrl.u32 %v2507_v32, 16  ;;  %p266_p4 = scmp.lt.s32.totalorder %s2977_s29, 15 }
  0xa3   : > { %v668_v39 = vsel %vm3753_vm14, %v642_v27, 0.0  ;;  %v2543_v40 = vrot.slane %v2541_v20, 5  ;;  %v2548_v43 = vrot.slane %v2546_v35, 4  ;;  %v2538_v13 = vor.u32 %v2537_v45, %v2534_v30  ;;  %v2513_v45 = vld [vmem:[#allocation2 + $0x38] sm:$0xf]  ;;  %s4396_s22 = smov (!%p271_p5, %s3504_s22), 1 }
  0xa4   : > { %v1998_v49 = vld [vmem:[#allocation2 + $0xc4] sm:$0x1]  ;;  %v2000_v18 = vld [vmem:[#allocation2 + $0xcc] sm:$0x1]  ;;  %v3229_v42 = vpack.c.bf16 %v668_v39, %v668_v39  ;;  %v2525_v44 = vrot.slane %v2524_v7, 4  ;;  %v2551_v50 = vrot.slane %v2549_v36, 5  ;;  %v334_v26 = vunpack.c.l.bf16 %v316_v1 }
  0xa5   : > { %v2095_v51 = vshll.u32 %v1998_v49, 16  ;;  %v2109_v12 = vshll.u32 %v2000_v18, 16  ;;  %v2557_v34 = vrot.slane %v2555_v38, 5  ;;  %v2562_v53 = vrot.slane %v2560_v47, 4  ;;  %s4394_s29 = smov (!%p266_p4, %s2977_s29), 15  ;;  %s2979_s13 = sshll.u32 %s4396_s22, 3 }
  0xa6   : > { %775 = vst.msk [vmem:[#allocation2 + $0x88] sm:$0xf] %vm499_vm1, %v3229_v42  ;;  %v2530_v0 = vsel %vm3833_vm7, %v2525_v44, %v2529_v28  ;;  %v2539_v56 = vrot.slane %v2538_v13, 4  ;;  %v2552_v57 = vor.u32 %v2551_v50, %v2548_v43  ;;  %v2563_v15 = vshll.u32 %v2507_v32, 16  ;;  %v3450_v43 = vld [vmem:[#allocation2 + $0x70] ss:$8 sps:$4 sm:$0xff]   ;;  %s274_s16 = scalar_lea.vmem %s4377_s5, %s2979_s13  ;;  %s278_s19 = scalar_lea.vmem %s4378_s6, %s2979_s13 }
  0xa7   : > { %v2097_v46 = vrot.slane %v2095_v51, 5  ;;  %v2111_v31 = vrot.slane %v2109_v12, 5  ;;  %v2569_v21 = vshll.u32 %v2508_v24, 16  ;;  %v2574_v63 = vshrl.u32 %v2509_v59, 16  ;;  %s2978_s9 = sshll.u32 %s4394_s29, 2 }
  0xa8   : > { %v2544_v9 = vsel %vm3833_vm7, %v2539_v56, %v2543_v40  ;;  %v2553_v54 = vrot.slane %v2552_v57, 4  ;;  %v2565_v5 = vrot.slane %v2563_v15, 5  ;;  %v2577_v11 = vshll.u32 %v2509_v59, 16  ;;  %v3449_v59 = vld [vmem:[#allocation2 + $0x60] ss:$8 sps:$4 sm:$0xff]   ;;  %s4320_s12 = scalar_lea.vmem %s4376_s4, %s2978_s9 }
  0xa9   : > { %v2098_v4 = vsel %vm3833_vm7, %v4184_v60, %v2097_v46  ;;  %v2112_v14 = vsel %vm3833_vm7, %v4196_v6, %v2111_v31  ;;  %v3447_v37 = vld [vmem:[#allocation2 + $0x38] ss:$8 sps:$4 sm:$0xff]   ;;  %v3181_v17 = vcombine.low %v2530_v0, %v2544_v9  ;;  %v2571_v62 = vrot.slane %v2569_v21, 5  ;;  %v2514_v15 = vld [vmem:[#allocation2 + $0x3c] sm:$0x1] }
  0xaa   : > { %v3157_v55 = vcombine.low %v2098_v4, %v2112_v14  ;;  %v2566_v19 = vor.u32 %v2565_v5, %v2562_v53  ;;  %v2576_v8 = vrot.slane %v2574_v63, 4  ;;  %3383 = vmatmul.mubr.msk.bf16.gmra.mrb[24].mxu0 %vm1244_vm11, %v3447_v37  ;;  %v2579_v22 = vrot.slane %v2577_v11, 5  ;;  %v2515_v47 = vld [vmem:[#allocation2 + $0x40] sm:$0xf] }
  0xab   : > { %v2583_v23 = vshll.u32 %v2510_v2, 16  ;;  %v2588_v25 = vshrl.u32 %v2511_v33, 16  ;;  %v2591_v16 = vshll.u32 %v2511_v33, 16  ;;  %3398 = vmatprep.mubr.msk.bf16.mxu0 %vm1244_vm11, %v3181_v17  ;;  %v2558_v60 = vsel %vm3833_vm7, %v2553_v54, %v2557_v34 }
  0xac   : > { %3373 = vmatmul.mubr.msk.bf16.gmra.mrb[24].mxu1 %vm1244_vm11, %v3157_v55  ;;  %v2567_v6 = vrot.slane %v2566_v19, 4  ;;  %v2597_v28 = vshll.u32 %v2512_v48, 16  ;;  %v2580_v32 = vor.u32 %v2579_v22, %v2576_v8  ;;  %v358_v7 = vmul.f32 %v3958_v52, %v334_v26 }
  0xad   : > { %3388 = vmatprep.mubr.msk.bf16.mxu1 %vm1244_vm11, %v3448_v58  ;;  %v2590_v27 = vrot.slane %v2588_v25, 4  ;;  %v2585_v20 = vrot.slane %v2583_v23, 5  ;;  %v2593_v35 = vrot.slane %v2591_v16, 5  ;;  %v2602_v49 = vshrl.u32 %v2513_v45, 16  ;;  %v3451_v46 = vld [vmem:[#allocation2 + $0x80] ss:$8 sps:$4 sm:$0xff]  }
  0xae   : > { %v2572_v30 = vsel %vm3833_vm7, %v2567_v6, %v2571_v62  ;;  %v2581_v38 = vrot.slane %v2580_v32, 4  ;;  %v2599_v40 = vrot.slane %v2597_v28, 5  ;;  %v382_v24 = vadd.f32 %v3967_v61, %v358_v7  ;;  %v536_v61 = vld [vmem:[#allocation2 + $0x44] sm:$0x1] }
  0xaf   : > { %v3182_v36 = vcombine.low %v2558_v60, %v2572_v30  ;;  %v2594_v39 = vor.u32 %v2593_v35, %v2590_v27  ;;  %v2605_v13 = vshll.u32 %v2513_v45, 16  ;;  %v2616_v51 = vshrl.u32 %v2515_v47, 16 }
  0xb0   : > { %v2586_v18 = vsel %vm3833_vm7, %v2581_v38, %v2585_v20  ;;  %v400_v44 = vmax.f32 %v382_v24, 0.0  ;;  %v2619_v12 = vshll.u32 %v2515_v47, 16  ;;  %v2604_v0 = vrot.slane %v2602_v49, 4 }
  0xb1   : > { %v2595_v42 = vrot.slane %v2594_v39, 4  ;;  %v2607_v56 = vrot.slane %v2605_v13, 5  ;;  %v2618_v31 = vrot.slane %v2616_v51, 4  ;;  %v2611_v21 = vshll.u32 %v2514_v15, 16 }
  0xb2   : > { %3399 = vmatmul.mubr.msk.bf16.vlgmr.msra.gmra.mrb[28].mxu0 %vm1244_vm11, %v3182_v36  ;;  %v426_v50 = vsel %vm3797_vm6, %v400_v44, 0.0  ;;  %v2621_v41 = vrot.slane %v2619_v12, 5  ;;  %vm2816_vm0 = vcmp.eq.s32.totalorder %v3515_v3, 0 }
  0xb3   : > { %v2600_v52 = vsel %vm3833_vm7, %v2595_v42, %v2599_v40  ;;  %v3214_v53 = vpack.c.bf16 %v426_v50, %v426_v50  ;;  %v2608_v58 = vor.u32 %v2607_v56, %v2604_v0  ;;  %v2613_v1 = vrot.slane %v2611_v21, 5 }
  0xb4   : > { %3389 = vmatmul.mubr.msk.bf16.vlgmr.msra.gmra.mrb[28].mxu1 %vm1244_vm11, %v3449_v59  ;;  %v3183_v34 = vcombine.low %v2586_v18, %v2600_v52  ;;  %v2622_v33 = vor.u32 %v2621_v41, %v2618_v31 }
  0xb5   : > { %3392 = vmatprep.mubr.msk.bf16.mxu1 %vm1244_vm11, %v3450_v43  ;;  %v537_v57 = vsel %vm3522_vm4, %v3214_v53, %v536_v61  ;;  %v2609_v63 = vrot.slane %v2608_v58, 4 }
  0xb6   : > { %3402 = vmatprep.mubr.msk.bf16.mxu0 %vm1244_vm11, %v3183_v34  ;;  %538 = vst [vmem:[#allocation2 + $0x44] sm:$0x1] %v537_v57  ;;  %v2623_v54 = vrot.slane %v2622_v33, 4 }
  0xb7   : > { %v2614_v2 = vsel %vm3833_vm7, %v2609_v63, %v2613_v1 }
  0xbc   : > { %3393 = vmatmul.mubr.msk.bf16.gmra.mrb[32].mxu1 %vm1244_vm11, %v3451_v46 }
  0xbd   : > { %v2516_v9 = vld [vmem:[#allocation2 + $0x44] sm:$0x1] }
  0xbe   : > { %v2625_v5 = vshll.u32 %v2516_v9, 16 }
  0xc0   : > { %v2627_v10 = vrot.slane %v2625_v5, 5 }
  0xc2   : > { %v2628_v11 = vsel %vm3833_vm7, %v2623_v54, %v2627_v10 }
  0xc3   : > { %v3184_v4 = vcombine.low %v2614_v2, %v2628_v11 }
  0xc5   : > { %3403 = vmatmul.mubr.msk.bf16.gmra.mrb[32].mxu0 %vm1244_vm11, %v3184_v4 }
 0x117   : > { %v3320_v14 = vpop.f32.mrb[0].mxu0 }
 0x118   : > { %1328 = vst.msk [vmem:[#allocation3 + $0x10] sm:$0xff] %vm1244_vm11, %v3320_v14  ;;  %v3324_v37 = vpop.f32.mrb[0].mxu1  ;;  %v1295_v17 = vpop.f32.mrb[1].mxu0 }
 0x119   : > { %1332 = vst.msk [vmem:[#allocation3 + $0x30] sm:$0xff] %vm1244_vm11, %v3324_v37  ;;  %1326 = vst.msk [vmem:[#allocation3] sm:$0xff] %vm1244_vm11, %v1295_v17  ;;  %v1311_v48 = vpop.f32.mrb[1].mxu1  ;;  %v3321_v55 = vpop.f32.mrb[2].mxu0 }
 0x11a   : > { %1330 = vst.msk [vmem:[#allocation3 + $0x20] sm:$0xff] %vm1244_vm11, %v1311_v48  ;;  %1329 = vst.msk [vmem:[#allocation3 + $0x18] sm:$0xff] %vm1244_vm11, %v3321_v55  ;;  %v3325_v29 = vpop.f32.mrb[2].mxu1  ;;  %v1298_v19 = vpop.f32.mrb[3].mxu0 }
 0x11b   : > { %1333 = vst.msk [vmem:[#allocation3 + $0x38] sm:$0xff] %vm1244_vm11, %v3325_v29  ;;  %1327 = vst.msk [vmem:[#allocation3 + $0x8] sm:$0xff] %vm1244_vm11, %v1298_v19  ;;  %v1314_v62 = vpop.f32.mrb[3].mxu1 }
 0x11c   : > { %1331 = vst.msk [vmem:[#allocation3 + $0x28] sm:$0xff] %vm1244_vm11, %v1314_v62 }
 0x11f   : > { %v1446_v8 = vld [vmem:[#allocation3 + $0x10] sm:$0xff] }
 0x120   : > { %v3330_v22 = vpop.f32.mrb[4].mxu1  ;;  %v1444_v23 = vld [vmem:[#allocation3] sm:$0xff]  ;;  %v1450_v7 = vld [vmem:[#allocation3 + $0x30] sm:$0xff] }
 0x121   : > { %v1454_v25 = vadd.f32 %v3330_v22, %v1446_v8  ;;  %v1413_v16 = vpop.f32.mrb[5].mxu1  ;;  %v1447_v60 = vld [vmem:[#allocation3 + $0x18] sm:$0xff]  ;;  %v1448_v39 = vld [vmem:[#allocation3 + $0x20] sm:$0xff] }
 0x122   : > { %v1452_v6 = vadd.f32 %v1444_v23, %v1413_v16  ;;  %v3331_v28 = vpop.f32.mrb[6].mxu1  ;;  %v1445_v26 = vld [vmem:[#allocation3 + $0x8] sm:$0xff]  ;;  %v1451_v18 = vld [vmem:[#allocation3 + $0x38] sm:$0xff] }
 0x123   : > { %1462 = vst.msk [vmem:[#allocation3 + $0x10] sm:$0xff] %vm1244_vm11, %v1454_v25  ;;  %v1455_v32 = vadd.f32 %v3331_v28, %v1447_v60  ;;  %v1416_v27 = vpop.f32.mrb[7].mxu1  ;;  %v1449_v61 = vld [vmem:[#allocation3 + $0x28] sm:$0xff] }
 0x124   : > { %1460 = vst.msk [vmem:[#allocation3] sm:$0xff] %vm1244_vm11, %v1452_v6  ;;  %v1453_v30 = vadd.f32 %v1445_v26, %v1416_v27 }
 0x125   : > { %1463 = vst.msk [vmem:[#allocation3 + $0x18] sm:$0xff] %vm1244_vm11, %v1455_v32 }
 0x126   : > { %1461 = vst.msk [vmem:[#allocation3 + $0x8] sm:$0xff] %vm1244_vm11, %v1453_v30 }
 0x12a   : > { %v1695_v20 = vld [vmem:[#allocation3 + $0x10] sm:$0xff] }
 0x12b   : > { %v1693_v45 = vld [vmem:[#allocation3] sm:$0xff] }
 0x12c   : > { %v1696_v40 = vld [vmem:[#allocation3 + $0x18] sm:$0xff] }
 0x12d   : > { %v1694_v42 = vld [vmem:[#allocation3 + $0x8] sm:$0xff] }
 0x12f   : > { %v3334_v35 = vpop.f32.mrb[8].mxu1 }
 0x130   : > { %v1458_v38 = vadd.f32 %v3334_v35, %v1450_v7  ;;  %v1429_v59 = vpop.f32.mrb[9].mxu1 }
 0x131   : > { %v3340_v36 = vpop.f32.mrb[4].mxu0  ;;  %v1456_v47 = vadd.f32 %v1448_v39, %v1429_v59  ;;  %v3335_v49 = vpop.f32.mrb[10].mxu1 }
 0x132   : > { %v1703_v24 = vadd.f32 %v3340_v36, %v1695_v20  ;;  %v1662_v43 = vpop.f32.mrb[5].mxu0  ;;  %1466 = vst.msk [vmem:[#allocation3 + $0x30] sm:$0xff] %vm1244_vm11, %v1458_v38  ;;  %v1459_v52 = vadd.f32 %v3335_v49, %v1451_v18  ;;  %v1432_v50 = vpop.f32.mrb[11].mxu1 }
 0x133   : > { %v1701_v44 = vadd.f32 %v1693_v45, %v1662_v43  ;;  %v3341_v13 = vpop.f32.mrb[6].mxu0  ;;  %1464 = vst.msk [vmem:[#allocation3 + $0x20] sm:$0xff] %vm1244_vm11, %v1456_v47  ;;  %v1457_v34 = vadd.f32 %v1449_v61, %v1432_v50 }
 0x134   : > { %1711 = vst.msk [vmem:[#allocation3 + $0x10] sm:$0xff] %vm1244_vm11, %v1703_v24  ;;  %v1704_v51 = vadd.f32 %v3341_v13, %v1696_v40  ;;  %v1665_v12 = vpop.f32.mrb[7].mxu0  ;;  %1467 = vst.msk [vmem:[#allocation3 + $0x38] sm:$0xff] %vm1244_vm11, %v1459_v52 }
 0x135   : > { %1709 = vst.msk [vmem:[#allocation3] sm:$0xff] %vm1244_vm11, %v1701_v44  ;;  %v1702_v53 = vadd.f32 %v1694_v42, %v1665_v12  ;;  %1465 = vst.msk [vmem:[#allocation3 + $0x28] sm:$0xff] %vm1244_vm11, %v1457_v34 }
 0x136   : > { %1712 = vst.msk [vmem:[#allocation3 + $0x18] sm:$0xff] %vm1244_vm11, %v1704_v51 }
 0x137   : > { %1710 = vst.msk [vmem:[#allocation3 + $0x8] sm:$0xff] %vm1244_vm11, %v1702_v53 }
 0x139   : > { %v1699_v0 = vld [vmem:[#allocation3 + $0x30] sm:$0xff] }
 0x13a   : > { %v1697_v56 = vld [vmem:[#allocation3 + $0x20] sm:$0xff] }
 0x13b   : > { %v1700_v15 = vld [vmem:[#allocation3 + $0x38] sm:$0xff]  ;;  %v1829_v33 = vld [vmem:[#allocation3 + $0x10] sm:$0xff] }
 0x13c   : > { %v1698_v41 = vld [vmem:[#allocation3 + $0x28] sm:$0xff]  ;;  %v1827_v9 = vld [vmem:[#allocation3] sm:$0xff] }
 0x13d   : > { %v1830_v2 = vld [vmem:[#allocation3 + $0x18] sm:$0xff] }
 0x13e   : > { %v1828_v4 = vld [vmem:[#allocation3 + $0x8] sm:$0xff] }
 0x146   : > { %v3344_v57 = vpop.f32.mrb[8].mxu0 }
 0x147   : > { %v1707_v46 = vadd.f32 %v3344_v57, %v1699_v0  ;;  %v1678_v31 = vpop.f32.mrb[9].mxu0 }
 0x148   : > { %v1705_v58 = vadd.f32 %v1697_v56, %v1678_v31  ;;  %v3345_v21 = vpop.f32.mrb[10].mxu0  ;;  %v3350_v54 = vpop.f32.mrb[12].mxu1 }
 0x149   : > { %1715 = vst.msk [vmem:[#allocation3 + $0x30] sm:$0xff] %vm1244_vm11, %v1707_v46  ;;  %v1708_v63 = vadd.f32 %v3345_v21, %v1700_v15  ;;  %v1681_v1 = vpop.f32.mrb[11].mxu0  ;;  %v1837_v10 = vadd.f32 %v3350_v54, %v1829_v33  ;;  %v1796_v11 = vpop.f32.mrb[13].mxu1 }
 0x14a   : > { %1713 = vst.msk [vmem:[#allocation3 + $0x20] sm:$0xff] %vm1244_vm11, %v1705_v58  ;;  %v1706_v5 = vadd.f32 %v1698_v41, %v1681_v1  ;;  %v1835_v14 = vadd.f32 %v1827_v9, %v1796_v11  ;;  %v3351_v37 = vpop.f32.mrb[14].mxu1 }
 0x14b   : > { %1716 = vst.msk [vmem:[#allocation3 + $0x38] sm:$0xff] %vm1244_vm11, %v1708_v63  ;;  %1845 = vst.msk [vmem:[#allocation3 + $0x10] sm:$0xff] %vm1244_vm11, %v1837_v10  ;;  %v1838_v17 = vadd.f32 %v3351_v37, %v1830_v2  ;;  %v1799_v48 = vpop.f32.mrb[15].mxu1 }
 0x14c   : > { %1714 = vst.msk [vmem:[#allocation3 + $0x28] sm:$0xff] %vm1244_vm11, %v1706_v5  ;;  %1843 = vst.msk [vmem:[#allocation3] sm:$0xff] %vm1244_vm11, %v1835_v14  ;;  %v1836_v55 = vadd.f32 %v1828_v4, %v1799_v48 }
 0x14d   : > { %1846 = vst.msk [vmem:[#allocation3 + $0x18] sm:$0xff] %vm1244_vm11, %v1838_v17 }
 0x14e   : > { %1844 = vst.msk [vmem:[#allocation3 + $0x8] sm:$0xff] %vm1244_vm11, %v1836_v55 }
 0x150   : > { %v1833_v29 = vld [vmem:[#allocation3 + $0x30] sm:$0xff]  ;;  %v3354_v62 = vpop.f32.mrb[16].mxu1 }
 0x151   : > { %v1831_v19 = vld [vmem:[#allocation3 + $0x20] sm:$0xff]  ;;  %v1841_v22 = vadd.f32 %v3354_v62, %v1833_v29  ;;  %v1812_v23 = vpop.f32.mrb[17].mxu1 }
 0x152   : > { %v1834_v8 = vld [vmem:[#allocation3 + $0x38] sm:$0xff]  ;;  %v1839_v16 = vadd.f32 %v1831_v19, %v1812_v23  ;;  %v3355_v60 = vpop.f32.mrb[18].mxu1  ;;  %v1963_v28 = vld [vmem:[#allocation3 + $0x10] sm:$0xff] }
 0x153   : > { %v1832_v25 = vld [vmem:[#allocation3 + $0x28] sm:$0xff]  ;;  %1849 = vst.msk [vmem:[#allocation3 + $0x30] sm:$0xff] %vm1244_vm11, %v1841_v22  ;;  %v1842_v6 = vadd.f32 %v3355_v60, %v1834_v8  ;;  %v1815_v26 = vpop.f32.mrb[19].mxu1  ;;  %v1961_v27 = vld [vmem:[#allocation3] sm:$0xff] }
 0x154   : > { %1847 = vst.msk [vmem:[#allocation3 + $0x20] sm:$0xff] %vm1244_vm11, %v1839_v16  ;;  %v1840_v32 = vadd.f32 %v1832_v25, %v1815_v26  ;;  %v1964_v20 = vld [vmem:[#allocation3 + $0x18] sm:$0xff] }
 0x155   : > { %1850 = vst.msk [vmem:[#allocation3 + $0x38] sm:$0xff] %vm1244_vm11, %v1842_v6  ;;  %v1962_v45 = vld [vmem:[#allocation3 + $0x8] sm:$0xff] }
 0x156   : > { %v3360_v30 = vpop.f32.mrb[12].mxu0  ;;  %1848 = vst.msk [vmem:[#allocation3 + $0x28] sm:$0xff] %vm1244_vm11, %v1840_v32 }
 0x157   : > { %v1971_v35 = vadd.f32 %v3360_v30, %v1963_v28  ;;  %v1930_v7 = vpop.f32.mrb[13].mxu0 }
 0x158   : > { %v1969_v36 = vadd.f32 %v1961_v27, %v1930_v7  ;;  %v3361_v38 = vpop.f32.mrb[14].mxu0 }
 0x159   : > { %1979 = vst.msk [vmem:[#allocation3 + $0x10] sm:$0xff] %vm1244_vm11, %v1971_v35  ;;  %v1972_v59 = vadd.f32 %v3361_v38, %v1964_v20  ;;  %v1933_v39 = vpop.f32.mrb[15].mxu0 }
 0x15a   : > { %1977 = vst.msk [vmem:[#allocation3] sm:$0xff] %vm1244_vm11, %v1969_v36  ;;  %v1970_v40 = vadd.f32 %v1962_v45, %v1933_v39  ;;  %v1967_v24 = vld [vmem:[#allocation3 + $0x30] sm:$0xff] }
 0x15b   : > { %1980 = vst.msk [vmem:[#allocation3 + $0x18] sm:$0xff] %vm1244_vm11, %v1972_v59  ;;  %v1965_v43 = vld [vmem:[#allocation3 + $0x20] sm:$0xff] }
 0x15c   : > { %1978 = vst.msk [vmem:[#allocation3 + $0x8] sm:$0xff] %vm1244_vm11, %v1970_v40  ;;  %v1968_v49 = vld [vmem:[#allocation3 + $0x38] sm:$0xff] }
 0x15d   : > { %v1966_v44 = vld [vmem:[#allocation3 + $0x28] sm:$0xff] }
 0x15e   : > { %v3364_v47 = vpop.f32.mrb[16].mxu0 }
 0x15f   : > { %v1975_v18 = vadd.f32 %v3364_v47, %v1967_v24  ;;  %v1946_v42 = vpop.f32.mrb[17].mxu0 }
 0x160   : > { %v1973_v13 = vadd.f32 %v1965_v43, %v1946_v42  ;;  %v3365_v52 = vpop.f32.mrb[18].mxu0  ;;  %v2209_v56 = vld [vmem:[#allocation3 + $0x10] sm:$0xff] }
 0x161   : > { %1983 = vst.msk [vmem:[#allocation3 + $0x30] sm:$0xff] %vm1244_vm11, %v1975_v18  ;;  %v1976_v50 = vadd.f32 %v3365_v52, %v1968_v49  ;;  %v1949_v61 = vpop.f32.mrb[19].mxu0  ;;  %v2207_v57 = vld [vmem:[#allocation3] sm:$0xff] }
 0x162   : > { %1981 = vst.msk [vmem:[#allocation3 + $0x20] sm:$0xff] %vm1244_vm11, %v1973_v13  ;;  %v1974_v51 = vadd.f32 %v1966_v44, %v1949_v61  ;;  %v2210_v46 = vld [vmem:[#allocation3 + $0x18] sm:$0xff] }
 0x163   : > { %1984 = vst.msk [vmem:[#allocation3 + $0x38] sm:$0xff] %vm1244_vm11, %v1976_v50  ;;  %v2208_v58 = vld [vmem:[#allocation3 + $0x8] sm:$0xff] }
 0x164   : > { %1982 = vst.msk [vmem:[#allocation3 + $0x28] sm:$0xff] %vm1244_vm11, %v1974_v51 }
 0x166   : > { %v3380_v12 = vpop.f32.mrb[20].mxu0 }
 0x167   : > { %v2311_v34 = vpop.f32.mrb[21].mxu0 }
 0x168   : > { %v3381_v53 = vpop.f32.mrb[22].mxu0  ;;  %v2213_v17 = vld [vmem:[#allocation3 + $0x30] sm:$0xff] }
 0x169   : > { %v2314_v0 = vpop.f32.mrb[23].mxu0  ;;  %v2211_v48 = vld [vmem:[#allocation3 + $0x20] sm:$0xff] }
 0x16a   : > { %v2214_v19 = vld [vmem:[#allocation3 + $0x38] sm:$0xff] }
 0x16b   : > { %v2212_v23 = vld [vmem:[#allocation3 + $0x28] sm:$0xff] }
 0x16d   : > { %v3370_v15 = vpop.f32.mrb[20].mxu1 }
 0x16e   : > { %v2217_v31 = vadd.f32 %v3370_v15, %v2209_v56  ;;  %v2176_v41 = vpop.f32.mrb[21].mxu1 }
 0x16f   : > { %v2215_v21 = vadd.f32 %v2207_v57, %v2176_v41  ;;  %v3371_v33 = vpop.f32.mrb[22].mxu1 }
 0x170   : > { %2225 = vst.msk [vmem:[#allocation3 + $0x10] sm:$0xff] %vm1244_vm11, %v2217_v31  ;;  %v2218_v63 = vadd.f32 %v3371_v33, %v2210_v46  ;;  %v2179_v1 = vpop.f32.mrb[23].mxu1 }
 0x171   : > { %2223 = vst.msk [vmem:[#allocation3] sm:$0xff] %vm1244_vm11, %v2215_v21  ;;  %v2216_v9 = vadd.f32 %v2208_v58, %v2179_v1 }
 0x172   : > { %2226 = vst.msk [vmem:[#allocation3 + $0x18] sm:$0xff] %vm1244_vm11, %v2218_v63 }
 0x173   : > { %2224 = vst.msk [vmem:[#allocation3 + $0x8] sm:$0xff] %vm1244_vm11, %v2216_v9 }
 0x177   : > { %v2344_v54 = vld [vmem:[#allocation3 + $0x10] sm:$0xff] }
 0x178   : > { %v2352_v5 = vadd.f32 %v3380_v12, %v2344_v54  ;;  %v2342_v2 = vld [vmem:[#allocation3] sm:$0xff] }
 0x179   : > { %v2350_v10 = vadd.f32 %v2342_v2, %v2311_v34  ;;  %v2345_v11 = vld [vmem:[#allocation3 + $0x18] sm:$0xff] }
 0x17a   : > { %2360 = vst.msk [vmem:[#allocation3 + $0x10] sm:$0xff] %vm1244_vm11, %v2352_v5  ;;  %v2353_v4 = vadd.f32 %v3381_v53, %v2345_v11  ;;  %v2343_v14 = vld [vmem:[#allocation3 + $0x8] sm:$0xff] }
 0x17b   : > { %2358 = vst.msk [vmem:[#allocation3] sm:$0xff] %vm1244_vm11, %v2350_v10  ;;  %v2351_v37 = vadd.f32 %v2343_v14, %v2314_v0 }
 0x17c   : > { %2361 = vst.msk [vmem:[#allocation3 + $0x18] sm:$0xff] %vm1244_vm11, %v2353_v4 }
 0x17d   : > { %2359 = vst.msk [vmem:[#allocation3 + $0x8] sm:$0xff] %vm1244_vm11, %v2351_v37  ;;  %v3384_v55 = vpop.f32.mrb[24].mxu0 }
 0x17e   : > { %v2327_v62 = vpop.f32.mrb[25].mxu0 }
 0x17f   : > { %v3374_v29 = vpop.f32.mrb[24].mxu1  ;;  %v3385_v25 = vpop.f32.mrb[26].mxu0 }
 0x180   : > { %v2221_v8 = vadd.f32 %v3374_v29, %v2213_v17  ;;  %v2192_v22 = vpop.f32.mrb[25].mxu1  ;;  %v2330_v6 = vpop.f32.mrb[27].mxu0 }
 0x181   : > { %v2219_v16 = vadd.f32 %v2211_v48, %v2192_v22  ;;  %v3375_v60 = vpop.f32.mrb[26].mxu1  ;;  %v2479_v27 = vld [vmem:[#allocation3 + $0x10] sm:$0xff] }
 0x182   : > { %2229 = vst.msk [vmem:[#allocation3 + $0x30] sm:$0xff] %vm1244_vm11, %v2221_v8  ;;  %v2222_v28 = vadd.f32 %v3375_v60, %v2214_v19  ;;  %v2195_v26 = vpop.f32.mrb[27].mxu1  ;;  %v2477_v30 = vld [vmem:[#allocation3] sm:$0xff] }
 0x183   : > { %2227 = vst.msk [vmem:[#allocation3 + $0x20] sm:$0xff] %vm1244_vm11, %v2219_v16  ;;  %v2220_v32 = vadd.f32 %v2212_v23, %v2195_v26  ;;  %v2480_v7 = vld [vmem:[#allocation3 + $0x18] sm:$0xff] }
 0x184   : > { %2230 = vst.msk [vmem:[#allocation3 + $0x38] sm:$0xff] %vm1244_vm11, %v2222_v28  ;;  %v2478_v59 = vld [vmem:[#allocation3 + $0x8] sm:$0xff] }
 0x185   : > { %2228 = vst.msk [vmem:[#allocation3 + $0x28] sm:$0xff] %vm1244_vm11, %v2220_v32  ;;  %v3400_v20 = vpop.f32.mrb[28].mxu0 }
 0x186   : > { %v2692_v45 = vpop.f32.mrb[29].mxu0 }
 0x187   : > { %v3390_v35 = vpop.f32.mrb[28].mxu1  ;;  %v3401_v39 = vpop.f32.mrb[30].mxu0 }
 0x188   : > { %v2487_v36 = vadd.f32 %v3390_v35, %v2479_v27  ;;  %v2446_v38 = vpop.f32.mrb[29].mxu1  ;;  %v2695_v47 = vpop.f32.mrb[31].mxu0 }
 0x189   : > { %v2348_v40 = vld [vmem:[#allocation3 + $0x30] sm:$0xff]  ;;  %v2485_v24 = vadd.f32 %v2477_v30, %v2446_v38  ;;  %v3391_v43 = vpop.f32.mrb[30].mxu1 }
 0x18a   : > { %v2356_v49 = vadd.f32 %v3384_v55, %v2348_v40  ;;  %v2346_v18 = vld [vmem:[#allocation3 + $0x20] sm:$0xff]  ;;  %2495 = vst.msk [vmem:[#allocation3 + $0x10] sm:$0xff] %vm1244_vm11, %v2487_v36  ;;  %v2488_v42 = vadd.f32 %v3391_v43, %v2480_v7  ;;  %v2449_v44 = vpop.f32.mrb[31].mxu1 }
 0x18b   : > { %v2354_v13 = vadd.f32 %v2346_v18, %v2327_v62  ;;  %v2349_v52 = vld [vmem:[#allocation3 + $0x38] sm:$0xff]  ;;  %2493 = vst.msk [vmem:[#allocation3] sm:$0xff] %vm1244_vm11, %v2485_v24  ;;  %v2486_v50 = vadd.f32 %v2478_v59, %v2449_v44 }
 0x18c   : > { %2364 = vst.msk [vmem:[#allocation3 + $0x30] sm:$0xff] %vm1244_vm11, %v2356_v49  ;;  %v2357_v61 = vadd.f32 %v3385_v25, %v2349_v52  ;;  %v2347_v51 = vld [vmem:[#allocation3 + $0x28] sm:$0xff]  ;;  %2496 = vst.msk [vmem:[#allocation3 + $0x18] sm:$0xff] %vm1244_vm11, %v2488_v42 }
 0x18d   : > { %2362 = vst.msk [vmem:[#allocation3 + $0x20] sm:$0xff] %vm1244_vm11, %v2354_v13  ;;  %v2355_v12 = vadd.f32 %v2347_v51, %v2330_v6  ;;  %2494 = vst.msk [vmem:[#allocation3 + $0x8] sm:$0xff] %vm1244_vm11, %v2486_v50 }
 0x18e   : > { %2365 = vst.msk [vmem:[#allocation3 + $0x38] sm:$0xff] %vm1244_vm11, %v2357_v61 }
 0x18f   : > { %2363 = vst.msk [vmem:[#allocation3 + $0x28] sm:$0xff] %vm1244_vm11, %v2355_v12  ;;  %v3394_v34 = vpop.f32.mrb[32].mxu1 }
 0x190   : > { %v2462_v53 = vpop.f32.mrb[33].mxu1 }
 0x191   : > { %v3395_v0 = vpop.f32.mrb[34].mxu1  ;;  %v2725_v56 = vld [vmem:[#allocation3 + $0x10] sm:$0xff] }
 0x192   : > { %v2733_v57 = vadd.f32 %v3400_v20, %v2725_v56  ;;  %v2465_v15 = vpop.f32.mrb[35].mxu1  ;;  %v2723_v46 = vld [vmem:[#allocation3] sm:$0xff] }
 0x193   : > { %v2483_v31 = vld [vmem:[#allocation3 + $0x30] sm:$0xff]  ;;  %v2731_v41 = vadd.f32 %v2723_v46, %v2692_v45  ;;  %v2726_v58 = vld [vmem:[#allocation3 + $0x18] sm:$0xff] }
 0x194   : > { %v2491_v21 = vadd.f32 %v3394_v34, %v2483_v31  ;;  %v2481_v33 = vld [vmem:[#allocation3 + $0x20] sm:$0xff]  ;;  %2741 = vst.msk [vmem:[#allocation3 + $0x10] sm:$0xff] %vm1244_vm11, %v2733_v57  ;;  %v2734_v63 = vadd.f32 %v3401_v39, %v2726_v58  ;;  %v2724_v1 = vld [vmem:[#allocation3 + $0x8] sm:$0xff] }
 0x195   : > { %v2489_v9 = vadd.f32 %v2481_v33, %v2462_v53  ;;  %v2484_v54 = vld [vmem:[#allocation3 + $0x38] sm:$0xff]  ;;  %2739 = vst.msk [vmem:[#allocation3] sm:$0xff] %vm1244_vm11, %v2731_v41  ;;  %v2732_v5 = vadd.f32 %v2724_v1, %v2695_v47 }
 0x196   : > { %2499 = vst.msk [vmem:[#allocation3 + $0x30] sm:$0xff] %vm1244_vm11, %v2491_v21  ;;  %v2492_v2 = vadd.f32 %v3395_v0, %v2484_v54  ;;  %v2482_v10 = vld [vmem:[#allocation3 + $0x28] sm:$0xff]  ;;  %2742 = vst.msk [vmem:[#allocation3 + $0x18] sm:$0xff] %vm1244_vm11, %v2734_v63 }
 0x197   : > { %2497 = vst.msk [vmem:[#allocation3 + $0x20] sm:$0xff] %vm1244_vm11, %v2489_v9  ;;  %v2490_v11 = vadd.f32 %v2482_v10, %v2465_v15  ;;  %2740 = vst.msk [vmem:[#allocation3 + $0x8] sm:$0xff] %vm1244_vm11, %v2732_v5 }
 0x198   : > { %2500 = vst.msk [vmem:[#allocation3 + $0x38] sm:$0xff] %vm1244_vm11, %v2492_v2  ;;  %v3404_v4 = vpop.f32.mrb[32].mxu0 }
 0x199   : > { %2498 = vst.msk [vmem:[#allocation3 + $0x28] sm:$0xff] %vm1244_vm11, %v2490_v11  ;;  %v2708_v37 = vpop.f32.mrb[33].mxu0 }
 0x19a   : > { %v3405_v55 = vpop.f32.mrb[34].mxu0 }
 0x19b   : > { %v2749_v14 = vld [vmem:[#allocation3 + $0x10] sm:$0xff]  ;;  %v2711_v22 = vpop.f32.mrb[35].mxu0 }
 0x19c   : > { %v3265_v17 = vpack.c.bf16 %v2749_v14, %v2749_v14  ;;  %v2747_v48 = vld [vmem:[#allocation3] sm:$0xff]  ;;  %v2823_v27 = vmul.f32 %v2749_v14, %v2749_v14  ;;  %v2798_v40 = vsel %vm1244_vm11, %v2749_v14, 0.0 }
 0x19d   : > { %v3263_v29 = vpack.c.bf16 %v2747_v48, %v2747_v48  ;;  %v2821_v19 = vmul.f32 %v2747_v48, %v2747_v48  ;;  %v2750_v62 = vld [vmem:[#allocation3 + $0x18] sm:$0xff]  ;;  %v2729_v8 = vld [vmem:[#allocation3 + $0x30] sm:$0xff]  ;;  %v2795_v60 = vsel %vm1244_vm11, %v2747_v48, 0.0 }
 0x19e   : > { %2789 = vst.msk [vmem:[%s4320_s12 + $0x8] sm:$0xf] %vm499_vm1, %v3265_v17  ;;  %v3266_v23 = vpack.c.bf16 %v2750_v62, %v2750_v62  ;;  %v2748_v25 = vld [vmem:[#allocation3 + $0x8] sm:$0xff]  ;;  %v2727_v16 = vld [vmem:[#allocation3 + $0x20] sm:$0xff]  ;;  %v2737_v20 = vadd.f32 %v3404_v4, %v2729_v8  ;;  %v2832_v43 = vsel %vm1244_vm11, %v2823_v27, 0.0  ;;  %v2824_v47 = vmul.f32 %v2750_v62, %v2750_v62 }
 0x19f   : > { %2787 = vst.msk [vmem:[%s4320_s12] sm:$0xf] %vm499_vm1, %v3263_v29  ;;  %v3264_v6 = vpack.c.bf16 %v2748_v25, %v2748_v25  ;;  %v2796_v28 = vsel %vm1244_vm11, %v2748_v25, 0.0  ;;  %v2822_v26 = vmul.f32 %v2748_v25, %v2748_v25  ;;  %v2730_v32 = vld [vmem:[#allocation3 + $0x38] sm:$0xff]  ;;  %v2735_v35 = vadd.f32 %v2727_v16, %v2708_v37 }
 0x1a0   : > { %2790 = vst.msk [vmem:[%s4320_s12 + $0xc] sm:$0xf] %vm499_vm1, %v3266_v23  ;;  %v2797_v30 = vadd.f32 %v2796_v28, %v2795_v60  ;;  %v2728_v7 = vld [vmem:[#allocation3 + $0x28] sm:$0xff]  ;;  %v2829_v45 = vsel %vm1244_vm11, %v2821_v19, 0.0  ;;  %v2738_v38 = vadd.f32 %v3405_v55, %v2730_v32  ;;  %v2800_v18 = vsel %vm1244_vm11, %v2750_v62, 0.0 }
 0x1a1   : > { %2788 = vst.msk [vmem:[%s4320_s12 + $0x4] sm:$0xf] %vm499_vm1, %v3264_v6  ;;  %v2830_v36 = vsel %vm1244_vm11, %v2822_v26, 0.0  ;;  %v2736_v59 = vadd.f32 %v2728_v7, %v2711_v22  ;;  %v2834_v44 = vsel %vm1244_vm11, %v2824_v47, 0.0 }
 0x1a2   : > { %v2831_v39 = vadd.f32 %v2830_v36, %v2829_v45  ;;  %2745 = vst.msk [vmem:[#allocation3 + $0x30] sm:$0xff] %vm1244_vm11, %v2737_v20  ;;  %2743 = vst.msk [vmem:[#allocation3 + $0x20] sm:$0xff] %vm1244_vm11, %v2735_v35  ;;  %v2799_v24 = vadd.f32 %v2798_v40, %v2797_v30 }
 0x1a3   : > { %2746 = vst.msk [vmem:[#allocation3 + $0x38] sm:$0xff] %vm1244_vm11, %v2738_v38  ;;  %2744 = vst.msk [vmem:[#allocation3 + $0x28] sm:$0xff] %vm1244_vm11, %v2736_v59 }
 0x1a4   : > { %v2833_v49 = vadd.f32 %v2832_v43, %v2831_v39  ;;  %v2801_v42 = vadd.f32 %v2800_v18, %v2799_v24 }
 0x1a6   : > { %v2835_v51 = vadd.f32 %v2834_v44, %v2833_v49 }
 0x1a9   : > { %v2753_v13 = vld [vmem:[#allocation3 + $0x30] sm:$0xff]  ;;  %v2751_v52 = vld [vmem:[#allocation3 + $0x20] sm:$0xff] }
 0x1aa   : > { %v3269_v50 = vpack.c.bf16 %v2753_v13, %v2753_v13  ;;  %v3267_v61 = vpack.c.bf16 %v2751_v52, %v2751_v52  ;;  %v2754_v12 = vld [vmem:[#allocation3 + $0x38] sm:$0xff]  ;;  %v2752_v34 = vld [vmem:[#allocation3 + $0x28] sm:$0xff]  ;;  %v2802_v53 = vsel %vm1244_vm11, %v2751_v52, 0.0  ;;  %v2825_v0 = vmul.f32 %v2751_v52, %v2751_v52 }
 0x1ab   : > { %v3270_v56 = vpack.c.bf16 %v2754_v12, %v2754_v12  ;;  %v2803_v57 = vadd.f32 %v2802_v53, %v2801_v42  ;;  %v3268_v15 = vpack.c.bf16 %v2752_v34, %v2752_v34  ;;  %v2827_v46 = vmul.f32 %v2753_v13, %v2753_v13 }
 0x1ac   : > { %2793 = vst.msk [vmem:[%s4320_s12 + $0x18] sm:$0xf] %vm499_vm1, %v3269_v50  ;;  %2791 = vst.msk [vmem:[%s4320_s12 + $0x10] sm:$0xf] %vm499_vm1, %v3267_v61  ;;  %v2836_v31 = vsel %vm1244_vm11, %v2825_v0, 0.0  ;;  %v2804_v41 = vsel %vm1244_vm11, %v2752_v34, 0.0  ;;  %v2826_v58 = vmul.f32 %v2752_v34, %v2752_v34  ;;  %v2828_v1 = vmul.f32 %v2754_v12, %v2754_v12 }
 0x1ad   : > { %2794 = vst.msk [vmem:[%s4320_s12 + $0x1c] sm:$0xf] %vm499_vm1, %v3270_v56  ;;  %v2837_v21 = vadd.f32 %v2836_v31, %v2835_v51  ;;  %2792 = vst.msk [vmem:[%s4320_s12 + $0x14] sm:$0xf] %vm499_vm1, %v3268_v15  ;;  %v2805_v33 = vadd.f32 %v2804_v41, %v2803_v57  ;;  %v2806_v63 = vsel %vm1244_vm11, %v2753_v13, 0.0  ;;  %v2840_v2 = vsel %vm1244_vm11, %v2827_v46, 0.0 }
 0x1ae   : > { %v2838_v9 = vsel %vm1244_vm11, %v2826_v58, 0.0  ;;  %v2808_v10 = vsel %vm1244_vm11, %v2754_v12, 0.0  ;;  %v2842_v14 = vsel %vm1244_vm11, %v2828_v1, 0.0 }
 0x1af   : > { %v2807_v54 = vadd.f32 %v2806_v63, %v2805_v33  ;;  %v2839_v5 = vadd.f32 %v2838_v9, %v2837_v21 }
 0x1b1   : > { %v2809_v11 = vadd.f32 %v2808_v10, %v2807_v54  ;;  %v2841_v4 = vadd.f32 %v2840_v2, %v2839_v5 }
 0x1b3   : > { %v2810_v37 = vrot.slane %v2809_v11, 4  ;;  %v2843_v17 = vadd.f32 %v2842_v14, %v2841_v4 }
 0x1b5   : > { %v2811_v48 = vadd.f32 %v2810_v37, %v2809_v11  ;;  %v2844_v55 = vrot.slane %v2843_v17, 4 }
 0x1b7   : > { %v2812_v29 = vrot.slane %v2811_v48, 2  ;;  %v2845_v19 = vadd.f32 %v2844_v55, %v2843_v17 }
 0x1b9   : > { %v2813_v62 = vadd.f32 %v2812_v29, %v2811_v48  ;;  %v2846_v8 = vrot.slane %v2845_v19, 2 }
 0x1bb   : > { %v2814_v22 = vrot.slane %v2813_v62, 1  ;;  %v2847_v23 = vadd.f32 %v2846_v8, %v2845_v19 }
 0x1bd   : > { %v2815_v25 = vadd.f32 %v2814_v22, %v2813_v62  ;;  %v2848_v16 = vrot.slane %v2847_v23, 1 }
 0x1bf   : > { %v2819_v60 = vsel %vm2816_vm0, %v2815_v25, 0.0  ;;  %v2849_v6 = vadd.f32 %v2848_v16, %v2847_v23 }
 0x1c0   : > { %2820 = vst.msk [vmem:[%s274_s16] sm:$0xff] %vm1244_vm11, %v2819_v60 }
 0x1c1   : > { %v2850_v28 = vsel %vm2816_vm0, %v2849_v6, 0.0 }
 0x1c2   : > { %2851 = vst.msk [vmem:[%s278_s19] sm:$0xff] %vm1244_vm11, %v2850_v28 }
 0x1c3 PF: > { %s17_s21 = sadd.s32 1, %s3460_s21  }
 0x1c4   : > { %p14_p6 = scmp.ge.s32.totalorder %s17_s21, 4  }
 0x1c6   :  { %16 = sbr.rel (!%p14_p6) target bundleno = 1 (0x1), region = 106 }

</bundles_post_ra>
